<compile_context>
chip_gen: v5e
topology: v5e:2x2
jax: 0.10.0
libtpu: 0.0.40
codegen_flags: <defaults>
</compile_context>

<pallas_src>
import functools

import jax
import jax.numpy as jnp
from jax.experimental import pallas as pl
from jax.experimental.pallas import tpu as pltpu


def _lstm_last_kernel(x_ref, wif_ref, whf_ref, bf_ref, wib_ref, bb_ref, out_ref,
                      *, hidden, seq_len):
    """Bidirectional LSTM over one row-tile, emitting only the last-step output.

    x_ref   : (TILE_N, T, F)   natural (row-major) input tile
    wif_ref : (F, 4H)          forward input->gate weights (pre-transposed)
    whf_ref : (H, 4H)          forward hidden->gate weights (pre-transposed)
    bf_ref  : (1, 4H)          forward combined bias (b_ih + b_hh), order [i, f, g, o]
    wib_ref : (F, 4H)          backward input->gate weights (pre-transposed)
    bb_ref  : (1, 4H)          backward combined bias
    out_ref : (TILE_N, 2H)     [h_fwd(T-1), h_bwd(T-1)]
    """
    H = hidden
    T = seq_len
    tile_n = x_ref.shape[0]
    F = x_ref.shape[2]

    # ---- hoisted input projection: ONE big MXU matmul for all T steps,
    #      bias folded in (no per-iteration broadcast inside the loop). ----
    x_all = x_ref[...].reshape(tile_n * T, F)                       # (TILE_N*T, F)
    gx = (jnp.dot(x_all, wif_ref[...], preferred_element_type=jnp.float32)
          + bf_ref[...])                                            # (TILE_N*T, 4H)
    gx = gx.reshape(tile_n, T, 4 * H)

    whf = whf_ref[...]                                              # load once

    h = jnp.zeros((tile_n, H), jnp.float32)
    c = jnp.zeros((tile_n, H), jnp.float32)

    # ---- forward recurrence, statically unrolled; only h @ W_hh per step. ----
    for t in range(T):
        gates = gx[:, t, :] + jnp.dot(h, whf, preferred_element_type=jnp.float32)
        i = jax.nn.sigmoid(gates[:, 0 * H:1 * H])
        f = jax.nn.sigmoid(gates[:, 1 * H:2 * H])
        g = jnp.tanh(gates[:, 2 * H:3 * H])
        o = jax.nn.sigmoid(gates[:, 3 * H:4 * H])
        c = f * c + i * g
        h = o * jnp.tanh(c)

    # ---- backward direction at position T-1: single step from zero state.
    #      h_prev = 0 and c_prev = 0, so the recurrent matmul is identically
    #      zero (dropped) and the forget gate is irrelevant (c = i*g). ----
    gb = (jnp.dot(x_ref[:, T - 1, :], wib_ref[...],
                  preferred_element_type=jnp.float32) + bb_ref[...])
    ib = jax.nn.sigmoid(gb[:, 0 * H:1 * H])
    gg = jnp.tanh(gb[:, 2 * H:3 * H])
    ob = jax.nn.sigmoid(gb[:, 3 * H:4 * H])
    h_bwd = ob * jnp.tanh(ib * gg)

    # single lane-dense store instead of two masked partial stores
    out_ref[...] = jnp.concatenate([h, h_bwd], axis=-1)


def _pick_tile_n(n):
    # Largest row-tile (<= 512, sized against v7x's 64 MiB VMEM with double
    # buffering) that evenly divides N; fall back to N for tiny problems.
    for t in (512, 256, 128, 64, 32, 16, 8):
        if n % t == 0:
            return t
    return n


def feature_encoder_forward(X, params, hidden_features):
    """X: (batch, n_walk, len_walk, feat_dim) f32 -> (batch, n_walk, hidden_features)."""
    batch, n_walk, len_walk, feat_dim = X.shape
    H = hidden_features // 2
    N = batch * n_walk

    # Natural layout — no wrapper-side HBM transpose.
    x = X.reshape(N, len_walk, feat_dim)

    wif, whf, bf, wib, _whb, bb = params  # _whb only multiplies zeros -> not passed

    tile_n = _pick_tile_n(N)
    grid = (N // tile_n,)

    # Weight specs return a constant block index -> Pallas keeps them resident
    # in VMEM (no re-DMA per row-tile).
    wspec = lambda shape: pl.BlockSpec(shape, lambda i: (0, 0))

    out = pl.pallas_call(
        functools.partial(_lstm_last_kernel, hidden=H, seq_len=len_walk),
        out_shape=jax.ShapeDtypeStruct((N, 2 * H), jnp.float32),
        grid_spec=pltpu.PrefetchScalarGridSpec(
            num_scalar_prefetch=0,
            grid=grid,
            in_specs=[
                pl.BlockSpec((tile_n, len_walk, feat_dim), lambda i: (i, 0, 0)),
                wspec((feat_dim, 4 * H)),   # W_ih fwd^T
                wspec((H, 4 * H)),          # W_hh fwd^T
                wspec((1, 4 * H)),          # bias fwd (b_ih + b_hh)
                wspec((feat_dim, 4 * H)),   # W_ih bwd^T
                wspec((1, 4 * H)),          # bias bwd (b_ih + b_hh)
            ],
            out_specs=pl.BlockSpec((tile_n, 2 * H), lambda i: (i, 0)),
        ),
        compiler_params=pltpu.CompilerParams(
            dimension_semantics=("parallel",),
            vmem_limit_bytes=32 * 1024 * 1024,
        ),
    )(x, wif, whf, bf, wib, bb)

    # dropout in eval mode is identity.
    return out.reshape(batch, n_walk, 2 * H)


def init_params(key, in_features, hidden_features):
    """Deterministic PyTorch-style LSTM init: uniform(-1/sqrt(H), 1/sqrt(H))."""
    H = hidden_features // 2
    k = 1.0 / jnp.sqrt(jnp.float32(H))
    ks = jax.random.split(key, 8)

    def u(kk, shape):
        return jax.random.uniform(kk, shape, jnp.float32, -k, k)

    # PyTorch shapes: weight_ih (4H, F), weight_hh (4H, H), biases (4H,)
    w_ih_f, w_hh_f = u(ks[0], (4 * H, in_features)), u(ks[1], (4 * H, H))
    b_ih_f, b_hh_f = u(ks[2], (4 * H,)), u(ks[3], (4 * H,))
    w_ih_b, w_hh_b = u(ks[4], (4 * H, in_features)), u(ks[5], (4 * H, H))
    b_ih_b, b_hh_b = u(ks[6], (4 * H,)), u(ks[7], (4 * H,))

    params = (
        w_ih_f.T,                                 # (F, 4H)
        w_hh_f.T,                                 # (H, 4H)
        (b_ih_f + b_hh_f).reshape(1, 4 * H),      # (1, 4H)
        w_ih_b.T,
        w_hh_b.T,                                 # kept for the reference; unused by kernel
        (b_ih_b + b_hh_b).reshape(1, 4 * H),
    )
    return params


def _reference(X, params, hidden_features):
    """Pure-JAX reference for the same semantics (sanity check)."""
    batch, n_walk, T, F = X.shape
    H = hidden_features // 2
    N = batch * n_walk
    x = X.reshape(N, T, F)
    wif, whf, bf, wib, whb, bb = params

    def cell(x_t, h, c, wi, wh, b):
        g = x_t @ wi + h @ wh + b
        i = jax.nn.sigmoid(g[:, :H])
        f = jax.nn.sigmoid(g[:, H:2 * H])
        gg = jnp.tanh(g[:, 2 * H:3 * H])
        o = jax.nn.sigmoid(g[:, 3 * H:])
        c = f * c + i * gg
        return o * jnp.tanh(c), c

    h = jnp.zeros((N, H), jnp.float32)
    c = jnp.zeros((N, H), jnp.float32)
    for t in range(T):
        h, c = cell(x[:, t], h, c, wif, whf, bf)
    hb, _ = cell(x[:, T - 1], jnp.zeros((N, H)), jnp.zeros((N, H)), wib, whb, bb)
    return jnp.concatenate([h, hb], axis=-1).reshape(batch, n_walk, 2 * H)


if __name__ == "__main__":
    batch, n_walk, len_walk, feat_dim = 2, 4, 8, 32
    hidden_features = 32  # model_dim = 32, H = 16 per direction

    key = jax.random.PRNGKey(0)
    kx, kp = jax.random.split(key)
    X = jax.random.normal(kx, (batch, n_walk, len_walk, feat_dim), jnp.float32)
    params = init_params(kp, feat_dim, hidden_features)

    out = feature_encoder_forward(X, params, hidden_features)
    out = jax.block_until_ready(out)

    ref = _reference(X, params, hidden_features)
    assert out.shape == (batch, n_walk, hidden_features)
    assert jnp.allclose(out, ref, atol=1e-5, rtol=1e-5), "mismatch vs pure-JAX reference"

    print("KERNEL_OK")
</pallas_src>

<mosaic_0001>
module attributes {stable_mosaic.version = 11 : i64} {
  func.func @_lstm_last_kernel(%arg0: i32, %arg1: memref<8x8x32xf32, #tpu.memory_space<vmem>>, %arg2: memref<32x64xf32, #tpu.memory_space<vmem>>, %arg3: memref<16x64xf32, #tpu.memory_space<vmem>>, %arg4: memref<1x64xf32, #tpu.memory_space<vmem>>, %arg5: memref<32x64xf32, #tpu.memory_space<vmem>>, %arg6: memref<1x64xf32, #tpu.memory_space<vmem>>, %arg7: memref<8x32xf32, #tpu.memory_space<vmem>>) attributes {dimension_semantics = [#tpu.dimension_semantics<parallel>], iteration_bounds = array<i64: 1>, scalar_prefetch = 0 : i64, scratch_operands = 0 : i64, tpu.core_type = #tpu.core_type<tc>, window_params = [{transform_indices = @transform_0, window_bounds = array<i64: 8, 8, 32>}, {pipeline_mode = #tpu.pipeline_mode<synchronous>, transform_indices = @transform_1, window_bounds = array<i64: 32, 64>}, {pipeline_mode = #tpu.pipeline_mode<synchronous>, transform_indices = @transform_2, window_bounds = array<i64: 16, 64>}, {pipeline_mode = #tpu.pipeline_mode<synchronous>, transform_indices = @transform_3, window_bounds = array<i64: 1, 64>}, {pipeline_mode = #tpu.pipeline_mode<synchronous>, transform_indices = @transform_4, window_bounds = array<i64: 32, 64>}, {pipeline_mode = #tpu.pipeline_mode<synchronous>, transform_indices = @transform_5, window_bounds = array<i64: 1, 64>}, {transform_indices = @transform_6, window_bounds = array<i64: 8, 32>}]} {
    %c0 = arith.constant 0 : index
    %c0_0 = arith.constant 0 : index
    %c0_1 = arith.constant 0 : index
    %0 = vector.load %arg1[%c0, %c0_0, %c0_1] : memref<8x8x32xf32, #tpu.memory_space<vmem>>, vector<8x8x32xf32>
    %1 = vector.shape_cast %0 : vector<8x8x32xf32> to vector<64x32xf32>
    %c0_2 = arith.constant 0 : index
    %c0_3 = arith.constant 0 : index
    %2 = vector.load %arg2[%c0_2, %c0_3] : memref<32x64xf32, #tpu.memory_space<vmem>>, vector<32x64xf32>
    %cst = arith.constant dense<0.000000e+00> : vector<64x64xf32>
    %3 = tpu.matmul %1, %2, %cst {dimension_numbers = #tpu.dot_dimension_numbers<[1], [0], [0], [1], [0, 0, 1, 1], [], []>} : vector<64x32xf32>, vector<32x64xf32>, vector<64x64xf32> -> vector<64x64xf32>
    %c0_4 = arith.constant 0 : index
    %c0_5 = arith.constant 0 : index
    %4 = vector.load %arg4[%c0_4, %c0_5] : memref<1x64xf32, #tpu.memory_space<vmem>>, vector<1x64xf32>
    %5 = vector.broadcast %4 : vector<1x64xf32> to vector<64x64xf32>
    %6 = arith.addf %3, %5 : vector<64x64xf32>
    %7 = vector.shape_cast %6 : vector<64x64xf32> to vector<8x8x64xf32>
    %c0_6 = arith.constant 0 : index
    %c0_7 = arith.constant 0 : index
    %8 = vector.load %arg3[%c0_6, %c0_7] : memref<16x64xf32, #tpu.memory_space<vmem>>, vector<16x64xf32>
    %cst_8 = arith.constant 0.000000e+00 : f32
    %9 = vector.broadcast %cst_8 : f32 to vector<8x16xf32>
    %cst_9 = arith.constant 0.000000e+00 : f32
    %10 = vector.broadcast %cst_9 : f32 to vector<8x16xf32>
    %11 = vector.extract_strided_slice %7 {offsets = [0, 0, 0], sizes = [8, 1, 64], strides = [1, 1, 1]} : vector<8x8x64xf32> to vector<8x1x64xf32>
    %12 = vector.shape_cast %11 : vector<8x1x64xf32> to vector<8x64xf32>
    %cst_10 = arith.constant dense<0.000000e+00> : vector<8x64xf32>
    %13 = tpu.matmul %9, %8, %cst_10 {dimension_numbers = #tpu.dot_dimension_numbers<[1], [0], [0], [1], [0, 0, 1, 1], [], []>} : vector<8x16xf32>, vector<16x64xf32>, vector<8x64xf32> -> vector<8x64xf32>
    %14 = arith.addf %12, %13 : vector<8x64xf32>
    %15 = vector.extract_strided_slice %14 {offsets = [0, 0], sizes = [8, 16], strides = [1, 1]} : vector<8x64xf32> to vector<8x16xf32>
    %16 = arith.negf %15 : vector<8x16xf32>
    %17 = math.exp %16 : vector<8x16xf32>
    %cst_11 = arith.constant 1.000000e+00 : f32
    %18 = vector.broadcast %cst_11 : f32 to vector<8x16xf32>
    %19 = arith.addf %18, %17 : vector<8x16xf32>
    %20 = arith.divf %18, %19 : vector<8x16xf32>
    %21 = vector.extract_strided_slice %14 {offsets = [0, 16], sizes = [8, 16], strides = [1, 1]} : vector<8x64xf32> to vector<8x16xf32>
    %22 = arith.negf %21 : vector<8x16xf32>
    %23 = math.exp %22 : vector<8x16xf32>
    %cst_12 = arith.constant 1.000000e+00 : f32
    %24 = vector.broadcast %cst_12 : f32 to vector<8x16xf32>
    %25 = arith.addf %24, %23 : vector<8x16xf32>
    %26 = arith.divf %24, %25 : vector<8x16xf32>
    %27 = vector.extract_strided_slice %14 {offsets = [0, 32], sizes = [8, 16], strides = [1, 1]} : vector<8x64xf32> to vector<8x16xf32>
    %28 = math.tanh %27 : vector<8x16xf32>
    %29 = vector.extract_strided_slice %14 {offsets = [0, 48], sizes = [8, 16], strides = [1, 1]} : vector<8x64xf32> to vector<8x16xf32>
    %30 = arith.negf %29 : vector<8x16xf32>
    %31 = math.exp %30 : vector<8x16xf32>
    %cst_13 = arith.constant 1.000000e+00 : f32
    %32 = vector.broadcast %cst_13 : f32 to vector<8x16xf32>
    %33 = arith.addf %32, %31 : vector<8x16xf32>
    %34 = arith.divf %32, %33 : vector<8x16xf32>
    %35 = arith.mulf %26, %10 : vector<8x16xf32>
    %36 = arith.mulf %20, %28 : vector<8x16xf32>
    %37 = arith.addf %35, %36 : vector<8x16xf32>
    %38 = math.tanh %37 : vector<8x16xf32>
    %39 = arith.mulf %34, %38 : vector<8x16xf32>
    %40 = vector.extract_strided_slice %7 {offsets = [0, 1, 0], sizes = [8, 1, 64], strides = [1, 1, 1]} : vector<8x8x64xf32> to vector<8x1x64xf32>
    %41 = vector.shape_cast %40 : vector<8x1x64xf32> to vector<8x64xf32>
    %cst_14 = arith.constant dense<0.000000e+00> : vector<8x64xf32>
    %42 = tpu.matmul %39, %8, %cst_14 {dimension_numbers = #tpu.dot_dimension_numbers<[1], [0], [0], [1], [0, 0, 1, 1], [], []>} : vector<8x16xf32>, vector<16x64xf32>, vector<8x64xf32> -> vector<8x64xf32>
    %43 = arith.addf %41, %42 : vector<8x64xf32>
    %44 = vector.extract_strided_slice %43 {offsets = [0, 0], sizes = [8, 16], strides = [1, 1]} : vector<8x64xf32> to vector<8x16xf32>
    %45 = arith.negf %44 : vector<8x16xf32>
    %46 = math.exp %45 : vector<8x16xf32>
    %cst_15 = arith.constant 1.000000e+00 : f32
    %47 = vector.broadcast %cst_15 : f32 to vector<8x16xf32>
    %48 = arith.addf %47, %46 : vector<8x16xf32>
    %49 = arith.divf %47, %48 : vector<8x16xf32>
    %50 = vector.extract_strided_slice %43 {offsets = [0, 16], sizes = [8, 16], strides = [1, 1]} : vector<8x64xf32> to vector<8x16xf32>
    %51 = arith.negf %50 : vector<8x16xf32>
    %52 = math.exp %51 : vector<8x16xf32>
    %cst_16 = arith.constant 1.000000e+00 : f32
    %53 = vector.broadcast %cst_16 : f32 to vector<8x16xf32>
    %54 = arith.addf %53, %52 : vector<8x16xf32>
    %55 = arith.divf %53, %54 : vector<8x16xf32>
    %56 = vector.extract_strided_slice %43 {offsets = [0, 32], sizes = [8, 16], strides = [1, 1]} : vector<8x64xf32> to vector<8x16xf32>
    %57 = math.tanh %56 : vector<8x16xf32>
    %58 = vector.extract_strided_slice %43 {offsets = [0, 48], sizes = [8, 16], strides = [1, 1]} : vector<8x64xf32> to vector<8x16xf32>
    %59 = arith.negf %58 : vector<8x16xf32>
    %60 = math.exp %59 : vector<8x16xf32>
    %cst_17 = arith.constant 1.000000e+00 : f32
    %61 = vector.broadcast %cst_17 : f32 to vector<8x16xf32>
    %62 = arith.addf %61, %60 : vector<8x16xf32>
    %63 = arith.divf %61, %62 : vector<8x16xf32>
    %64 = arith.mulf %55, %37 : vector<8x16xf32>
    %65 = arith.mulf %49, %57 : vector<8x16xf32>
    %66 = arith.addf %64, %65 : vector<8x16xf32>
    %67 = math.tanh %66 : vector<8x16xf32>
    %68 = arith.mulf %63, %67 : vector<8x16xf32>
    %69 = vector.extract_strided_slice %7 {offsets = [0, 2, 0], sizes = [8, 1, 64], strides = [1, 1, 1]} : vector<8x8x64xf32> to vector<8x1x64xf32>
    %70 = vector.shape_cast %69 : vector<8x1x64xf32> to vector<8x64xf32>
    %cst_18 = arith.constant dense<0.000000e+00> : vector<8x64xf32>
    %71 = tpu.matmul %68, %8, %cst_18 {dimension_numbers = #tpu.dot_dimension_numbers<[1], [0], [0], [1], [0, 0, 1, 1], [], []>} : vector<8x16xf32>, vector<16x64xf32>, vector<8x64xf32> -> vector<8x64xf32>
    %72 = arith.addf %70, %71 : vector<8x64xf32>
    %73 = vector.extract_strided_slice %72 {offsets = [0, 0], sizes = [8, 16], strides = [1, 1]} : vector<8x64xf32> to vector<8x16xf32>
    %74 = arith.negf %73 : vector<8x16xf32>
    %75 = math.exp %74 : vector<8x16xf32>
    %cst_19 = arith.constant 1.000000e+00 : f32
    %76 = vector.broadcast %cst_19 : f32 to vector<8x16xf32>
    %77 = arith.addf %76, %75 : vector<8x16xf32>
    %78 = arith.divf %76, %77 : vector<8x16xf32>
    %79 = vector.extract_strided_slice %72 {offsets = [0, 16], sizes = [8, 16], strides = [1, 1]} : vector<8x64xf32> to vector<8x16xf32>
    %80 = arith.negf %79 : vector<8x16xf32>
    %81 = math.exp %80 : vector<8x16xf32>
    %cst_20 = arith.constant 1.000000e+00 : f32
    %82 = vector.broadcast %cst_20 : f32 to vector<8x16xf32>
    %83 = arith.addf %82, %81 : vector<8x16xf32>
    %84 = arith.divf %82, %83 : vector<8x16xf32>
    %85 = vector.extract_strided_slice %72 {offsets = [0, 32], sizes = [8, 16], strides = [1, 1]} : vector<8x64xf32> to vector<8x16xf32>
    %86 = math.tanh %85 : vector<8x16xf32>
    %87 = vector.extract_strided_slice %72 {offsets = [0, 48], sizes = [8, 16], strides = [1, 1]} : vector<8x64xf32> to vector<8x16xf32>
    %88 = arith.negf %87 : vector<8x16xf32>
    %89 = math.exp %88 : vector<8x16xf32>
    %cst_21 = arith.constant 1.000000e+00 : f32
    %90 = vector.broadcast %cst_21 : f32 to vector<8x16xf32>
    %91 = arith.addf %90, %89 : vector<8x16xf32>
    %92 = arith.divf %90, %91 : vector<8x16xf32>
    %93 = arith.mulf %84, %66 : vector<8x16xf32>
    %94 = arith.mulf %78, %86 : vector<8x16xf32>
    %95 = arith.addf %93, %94 : vector<8x16xf32>
    %96 = math.tanh %95 : vector<8x16xf32>
    %97 = arith.mulf %92, %96 : vector<8x16xf32>
    %98 = vector.extract_strided_slice %7 {offsets = [0, 3, 0], sizes = [8, 1, 64], strides = [1, 1, 1]} : vector<8x8x64xf32> to vector<8x1x64xf32>
    %99 = vector.shape_cast %98 : vector<8x1x64xf32> to vector<8x64xf32>
    %cst_22 = arith.constant dense<0.000000e+00> : vector<8x64xf32>
    %100 = tpu.matmul %97, %8, %cst_22 {dimension_numbers = #tpu.dot_dimension_numbers<[1], [0], [0], [1], [0, 0, 1, 1], [], []>} : vector<8x16xf32>, vector<16x64xf32>, vector<8x64xf32> -> vector<8x64xf32>
    %101 = arith.addf %99, %100 : vector<8x64xf32>
    %102 = vector.extract_strided_slice %101 {offsets = [0, 0], sizes = [8, 16], strides = [1, 1]} : vector<8x64xf32> to vector<8x16xf32>
    %103 = arith.negf %102 : vector<8x16xf32>
    %104 = math.exp %103 : vector<8x16xf32>
    %cst_23 = arith.constant 1.000000e+00 : f32
    %105 = vector.broadcast %cst_23 : f32 to vector<8x16xf32>
    %106 = arith.addf %105, %104 : vector<8x16xf32>
    %107 = arith.divf %105, %106 : vector<8x16xf32>
    %108 = vector.extract_strided_slice %101 {offsets = [0, 16], sizes = [8, 16], strides = [1, 1]} : vector<8x64xf32> to vector<8x16xf32>
    %109 = arith.negf %108 : vector<8x16xf32>
    %110 = math.exp %109 : vector<8x16xf32>
    %cst_24 = arith.constant 1.000000e+00 : f32
    %111 = vector.broadcast %cst_24 : f32 to vector<8x16xf32>
    %112 = arith.addf %111, %110 : vector<8x16xf32>
    %113 = arith.divf %111, %112 : vector<8x16xf32>
    %114 = vector.extract_strided_slice %101 {offsets = [0, 32], sizes = [8, 16], strides = [1, 1]} : vector<8x64xf32> to vector<8x16xf32>
    %115 = math.tanh %114 : vector<8x16xf32>
    %116 = vector.extract_strided_slice %101 {offsets = [0, 48], sizes = [8, 16], strides = [1, 1]} : vector<8x64xf32> to vector<8x16xf32>
    %117 = arith.negf %116 : vector<8x16xf32>
    %118 = math.exp %117 : vector<8x16xf32>
    %cst_25 = arith.constant 1.000000e+00 : f32
    %119 = vector.broadcast %cst_25 : f32 to vector<8x16xf32>
    %120 = arith.addf %119, %118 : vector<8x16xf32>
    %121 = arith.divf %119, %120 : vector<8x16xf32>
    %122 = arith.mulf %113, %95 : vector<8x16xf32>
    %123 = arith.mulf %107, %115 : vector<8x16xf32>
    %124 = arith.addf %122, %123 : vector<8x16xf32>
    %125 = math.tanh %124 : vector<8x16xf32>
    %126 = arith.mulf %121, %125 : vector<8x16xf32>
    %127 = vector.extract_strided_slice %7 {offsets = [0, 4, 0], sizes = [8, 1, 64], strides = [1, 1, 1]} : vector<8x8x64xf32> to vector<8x1x64xf32>
    %128 = vector.shape_cast %127 : vector<8x1x64xf32> to vector<8x64xf32>
    %cst_26 = arith.constant dense<0.000000e+00> : vector<8x64xf32>
    %129 = tpu.matmul %126, %8, %cst_26 {dimension_numbers = #tpu.dot_dimension_numbers<[1], [0], [0], [1], [0, 0, 1, 1], [], []>} : vector<8x16xf32>, vector<16x64xf32>, vector<8x64xf32> -> vector<8x64xf32>
    %130 = arith.addf %128, %129 : vector<8x64xf32>
    %131 = vector.extract_strided_slice %130 {offsets = [0, 0], sizes = [8, 16], strides = [1, 1]} : vector<8x64xf32> to vector<8x16xf32>
    %132 = arith.negf %131 : vector<8x16xf32>
    %133 = math.exp %132 : vector<8x16xf32>
    %cst_27 = arith.constant 1.000000e+00 : f32
    %134 = vector.broadcast %cst_27 : f32 to vector<8x16xf32>
    %135 = arith.addf %134, %133 : vector<8x16xf32>
    %136 = arith.divf %134, %135 : vector<8x16xf32>
    %137 = vector.extract_strided_slice %130 {offsets = [0, 16], sizes = [8, 16], strides = [1, 1]} : vector<8x64xf32> to vector<8x16xf32>
    %138 = arith.negf %137 : vector<8x16xf32>
    %139 = math.exp %138 : vector<8x16xf32>
    %cst_28 = arith.constant 1.000000e+00 : f32
    %140 = vector.broadcast %cst_28 : f32 to vector<8x16xf32>
    %141 = arith.addf %140, %139 : vector<8x16xf32>
    %142 = arith.divf %140, %141 : vector<8x16xf32>
    %143 = vector.extract_strided_slice %130 {offsets = [0, 32], sizes = [8, 16], strides = [1, 1]} : vector<8x64xf32> to vector<8x16xf32>
    %144 = math.tanh %143 : vector<8x16xf32>
    %145 = vector.extract_strided_slice %130 {offsets = [0, 48], sizes = [8, 16], strides = [1, 1]} : vector<8x64xf32> to vector<8x16xf32>
    %146 = arith.negf %145 : vector<8x16xf32>
    %147 = math.exp %146 : vector<8x16xf32>
    %cst_29 = arith.constant 1.000000e+00 : f32
    %148 = vector.broadcast %cst_29 : f32 to vector<8x16xf32>
    %149 = arith.addf %148, %147 : vector<8x16xf32>
    %150 = arith.divf %148, %149 : vector<8x16xf32>
    %151 = arith.mulf %142, %124 : vector<8x16xf32>
    %152 = arith.mulf %136, %144 : vector<8x16xf32>
    %153 = arith.addf %151, %152 : vector<8x16xf32>
    %154 = math.tanh %153 : vector<8x16xf32>
    %155 = arith.mulf %150, %154 : vector<8x16xf32>
    %156 = vector.extract_strided_slice %7 {offsets = [0, 5, 0], sizes = [8, 1, 64], strides = [1, 1, 1]} : vector<8x8x64xf32> to vector<8x1x64xf32>
    %157 = vector.shape_cast %156 : vector<8x1x64xf32> to vector<8x64xf32>
    %cst_30 = arith.constant dense<0.000000e+00> : vector<8x64xf32>
    %158 = tpu.matmul %155, %8, %cst_30 {dimension_numbers = #tpu.dot_dimension_numbers<[1], [0], [0], [1], [0, 0, 1, 1], [], []>} : vector<8x16xf32>, vector<16x64xf32>, vector<8x64xf32> -> vector<8x64xf32>
    %159 = arith.addf %157, %158 : vector<8x64xf32>
    %160 = vector.extract_strided_slice %159 {offsets = [0, 0], sizes = [8, 16], strides = [1, 1]} : vector<8x64xf32> to vector<8x16xf32>
    %161 = arith.negf %160 : vector<8x16xf32>
    %162 = math.exp %161 : vector<8x16xf32>
    %cst_31 = arith.constant 1.000000e+00 : f32
    %163 = vector.broadcast %cst_31 : f32 to vector<8x16xf32>
    %164 = arith.addf %163, %162 : vector<8x16xf32>
    %165 = arith.divf %163, %164 : vector<8x16xf32>
    %166 = vector.extract_strided_slice %159 {offsets = [0, 16], sizes = [8, 16], strides = [1, 1]} : vector<8x64xf32> to vector<8x16xf32>
    %167 = arith.negf %166 : vector<8x16xf32>
    %168 = math.exp %167 : vector<8x16xf32>
    %cst_32 = arith.constant 1.000000e+00 : f32
    %169 = vector.broadcast %cst_32 : f32 to vector<8x16xf32>
    %170 = arith.addf %169, %168 : vector<8x16xf32>
    %171 = arith.divf %169, %170 : vector<8x16xf32>
    %172 = vector.extract_strided_slice %159 {offsets = [0, 32], sizes = [8, 16], strides = [1, 1]} : vector<8x64xf32> to vector<8x16xf32>
    %173 = math.tanh %172 : vector<8x16xf32>
    %174 = vector.extract_strided_slice %159 {offsets = [0, 48], sizes = [8, 16], strides = [1, 1]} : vector<8x64xf32> to vector<8x16xf32>
    %175 = arith.negf %174 : vector<8x16xf32>
    %176 = math.exp %175 : vector<8x16xf32>
    %cst_33 = arith.constant 1.000000e+00 : f32
    %177 = vector.broadcast %cst_33 : f32 to vector<8x16xf32>
    %178 = arith.addf %177, %176 : vector<8x16xf32>
    %179 = arith.divf %177, %178 : vector<8x16xf32>
    %180 = arith.mulf %171, %153 : vector<8x16xf32>
    %181 = arith.mulf %165, %173 : vector<8x16xf32>
    %182 = arith.addf %180, %181 : vector<8x16xf32>
    %183 = math.tanh %182 : vector<8x16xf32>
    %184 = arith.mulf %179, %183 : vector<8x16xf32>
    %185 = vector.extract_strided_slice %7 {offsets = [0, 6, 0], sizes = [8, 1, 64], strides = [1, 1, 1]} : vector<8x8x64xf32> to vector<8x1x64xf32>
    %186 = vector.shape_cast %185 : vector<8x1x64xf32> to vector<8x64xf32>
    %cst_34 = arith.constant dense<0.000000e+00> : vector<8x64xf32>
    %187 = tpu.matmul %184, %8, %cst_34 {dimension_numbers = #tpu.dot_dimension_numbers<[1], [0], [0], [1], [0, 0, 1, 1], [], []>} : vector<8x16xf32>, vector<16x64xf32>, vector<8x64xf32> -> vector<8x64xf32>
    %188 = arith.addf %186, %187 : vector<8x64xf32>
    %189 = vector.extract_strided_slice %188 {offsets = [0, 0], sizes = [8, 16], strides = [1, 1]} : vector<8x64xf32> to vector<8x16xf32>
    %190 = arith.negf %189 : vector<8x16xf32>
    %191 = math.exp %190 : vector<8x16xf32>
    %cst_35 = arith.constant 1.000000e+00 : f32
    %192 = vector.broadcast %cst_35 : f32 to vector<8x16xf32>
    %193 = arith.addf %192, %191 : vector<8x16xf32>
    %194 = arith.divf %192, %193 : vector<8x16xf32>
    %195 = vector.extract_strided_slice %188 {offsets = [0, 16], sizes = [8, 16], strides = [1, 1]} : vector<8x64xf32> to vector<8x16xf32>
    %196 = arith.negf %195 : vector<8x16xf32>
    %197 = math.exp %196 : vector<8x16xf32>
    %cst_36 = arith.constant 1.000000e+00 : f32
    %198 = vector.broadcast %cst_36 : f32 to vector<8x16xf32>
    %199 = arith.addf %198, %197 : vector<8x16xf32>
    %200 = arith.divf %198, %199 : vector<8x16xf32>
    %201 = vector.extract_strided_slice %188 {offsets = [0, 32], sizes = [8, 16], strides = [1, 1]} : vector<8x64xf32> to vector<8x16xf32>
    %202 = math.tanh %201 : vector<8x16xf32>
    %203 = vector.extract_strided_slice %188 {offsets = [0, 48], sizes = [8, 16], strides = [1, 1]} : vector<8x64xf32> to vector<8x16xf32>
    %204 = arith.negf %203 : vector<8x16xf32>
    %205 = math.exp %204 : vector<8x16xf32>
    %cst_37 = arith.constant 1.000000e+00 : f32
    %206 = vector.broadcast %cst_37 : f32 to vector<8x16xf32>
    %207 = arith.addf %206, %205 : vector<8x16xf32>
    %208 = arith.divf %206, %207 : vector<8x16xf32>
    %209 = arith.mulf %200, %182 : vector<8x16xf32>
    %210 = arith.mulf %194, %202 : vector<8x16xf32>
    %211 = arith.addf %209, %210 : vector<8x16xf32>
    %212 = math.tanh %211 : vector<8x16xf32>
    %213 = arith.mulf %208, %212 : vector<8x16xf32>
    %214 = vector.extract_strided_slice %7 {offsets = [0, 7, 0], sizes = [8, 1, 64], strides = [1, 1, 1]} : vector<8x8x64xf32> to vector<8x1x64xf32>
    %215 = vector.shape_cast %214 : vector<8x1x64xf32> to vector<8x64xf32>
    %cst_38 = arith.constant dense<0.000000e+00> : vector<8x64xf32>
    %216 = tpu.matmul %213, %8, %cst_38 {dimension_numbers = #tpu.dot_dimension_numbers<[1], [0], [0], [1], [0, 0, 1, 1], [], []>} : vector<8x16xf32>, vector<16x64xf32>, vector<8x64xf32> -> vector<8x64xf32>
    %217 = arith.addf %215, %216 : vector<8x64xf32>
    %218 = vector.extract_strided_slice %217 {offsets = [0, 0], sizes = [8, 16], strides = [1, 1]} : vector<8x64xf32> to vector<8x16xf32>
    %219 = arith.negf %218 : vector<8x16xf32>
    %220 = math.exp %219 : vector<8x16xf32>
    %cst_39 = arith.constant 1.000000e+00 : f32
    %221 = vector.broadcast %cst_39 : f32 to vector<8x16xf32>
    %222 = arith.addf %221, %220 : vector<8x16xf32>
    %223 = arith.divf %221, %222 : vector<8x16xf32>
    %224 = vector.extract_strided_slice %217 {offsets = [0, 16], sizes = [8, 16], strides = [1, 1]} : vector<8x64xf32> to vector<8x16xf32>
    %225 = arith.negf %224 : vector<8x16xf32>
    %226 = math.exp %225 : vector<8x16xf32>
    %cst_40 = arith.constant 1.000000e+00 : f32
    %227 = vector.broadcast %cst_40 : f32 to vector<8x16xf32>
    %228 = arith.addf %227, %226 : vector<8x16xf32>
    %229 = arith.divf %227, %228 : vector<8x16xf32>
    %230 = vector.extract_strided_slice %217 {offsets = [0, 32], sizes = [8, 16], strides = [1, 1]} : vector<8x64xf32> to vector<8x16xf32>
    %231 = math.tanh %230 : vector<8x16xf32>
    %232 = vector.extract_strided_slice %217 {offsets = [0, 48], sizes = [8, 16], strides = [1, 1]} : vector<8x64xf32> to vector<8x16xf32>
    %233 = arith.negf %232 : vector<8x16xf32>
    %234 = math.exp %233 : vector<8x16xf32>
    %cst_41 = arith.constant 1.000000e+00 : f32
    %235 = vector.broadcast %cst_41 : f32 to vector<8x16xf32>
    %236 = arith.addf %235, %234 : vector<8x16xf32>
    %237 = arith.divf %235, %236 : vector<8x16xf32>
    %238 = arith.mulf %229, %211 : vector<8x16xf32>
    %239 = arith.mulf %223, %231 : vector<8x16xf32>
    %240 = arith.addf %238, %239 : vector<8x16xf32>
    %241 = math.tanh %240 : vector<8x16xf32>
    %242 = arith.mulf %237, %241 : vector<8x16xf32>
    %c0_42 = arith.constant 0 : index
    %c7 = arith.constant 7 : index
    %c0_43 = arith.constant 0 : index
    %243 = vector.load %arg1[%c0_42, %c7, %c0_43] : memref<8x8x32xf32, #tpu.memory_space<vmem>>, vector<8x1x32xf32>
    %244 = vector.shape_cast %243 : vector<8x1x32xf32> to vector<8x32xf32>
    %c0_44 = arith.constant 0 : index
    %c0_45 = arith.constant 0 : index
    %245 = vector.load %arg5[%c0_44, %c0_45] : memref<32x64xf32, #tpu.memory_space<vmem>>, vector<32x64xf32>
    %cst_46 = arith.constant dense<0.000000e+00> : vector<8x64xf32>
    %246 = tpu.matmul %244, %245, %cst_46 {dimension_numbers = #tpu.dot_dimension_numbers<[1], [0], [0], [1], [0, 0, 1, 1], [], []>} : vector<8x32xf32>, vector<32x64xf32>, vector<8x64xf32> -> vector<8x64xf32>
    %c0_47 = arith.constant 0 : index
    %c0_48 = arith.constant 0 : index
    %247 = vector.load %arg6[%c0_47, %c0_48] : memref<1x64xf32, #tpu.memory_space<vmem>>, vector<1x64xf32>
    %248 = vector.broadcast %247 : vector<1x64xf32> to vector<8x64xf32>
    %249 = arith.addf %246, %248 : vector<8x64xf32>
    %250 = vector.extract_strided_slice %249 {offsets = [0, 0], sizes = [8, 16], strides = [1, 1]} : vector<8x64xf32> to vector<8x16xf32>
    %251 = arith.negf %250 : vector<8x16xf32>
    %252 = math.exp %251 : vector<8x16xf32>
    %cst_49 = arith.constant 1.000000e+00 : f32
    %253 = vector.broadcast %cst_49 : f32 to vector<8x16xf32>
    %254 = arith.addf %253, %252 : vector<8x16xf32>
    %255 = arith.divf %253, %254 : vector<8x16xf32>
    %256 = vector.extract_strided_slice %249 {offsets = [0, 32], sizes = [8, 16], strides = [1, 1]} : vector<8x64xf32> to vector<8x16xf32>
    %257 = math.tanh %256 : vector<8x16xf32>
    %258 = vector.extract_strided_slice %249 {offsets = [0, 48], sizes = [8, 16], strides = [1, 1]} : vector<8x64xf32> to vector<8x16xf32>
    %259 = arith.negf %258 : vector<8x16xf32>
    %260 = math.exp %259 : vector<8x16xf32>
    %cst_50 = arith.constant 1.000000e+00 : f32
    %261 = vector.broadcast %cst_50 : f32 to vector<8x16xf32>
    %262 = arith.addf %261, %260 : vector<8x16xf32>
    %263 = arith.divf %261, %262 : vector<8x16xf32>
    %264 = arith.mulf %255, %257 : vector<8x16xf32>
    %265 = math.tanh %264 : vector<8x16xf32>
    %266 = arith.mulf %263, %265 : vector<8x16xf32>
    %267 = tpu.concatenate %242, %266 in 1 : vector<8x16xf32>, vector<8x16xf32> -> vector<8x32xf32>
    %c0_51 = arith.constant 0 : index
    %c0_52 = arith.constant 0 : index
    %268 = vector.load %arg7[%c0_51, %c0_52] : memref<8x32xf32, #tpu.memory_space<vmem>>, vector<8x32xf32>
    tpu.vector_store %arg7[%c0_51, %c0_52], %267 {strides = array<i32>} : memref<8x32xf32, #tpu.memory_space<vmem>>, vector<8x32xf32>,
    return
  }
  func.func @transform_0(%arg0: i32) -> (i32, i32, i32) {
    %c0_i32 = arith.constant 0 : i32
    %c0_i32_0 = arith.constant 0 : i32
    %c0_i32_1 = arith.constant 0 : i32
    return %arg0, %c0_i32, %c0_i32_0 : i32, i32, i32
  }
  func.func @transform_1(%arg0: i32) -> (i32, i32) {
    %c0_i32 = arith.constant 0 : i32
    %c0_i32_0 = arith.constant 0 : i32
    %c0_i32_1 = arith.constant 0 : i32
    return %c0_i32, %c0_i32_0 : i32, i32
  }
  func.func @transform_2(%arg0: i32) -> (i32, i32) {
    %c0_i32 = arith.constant 0 : i32
    %c0_i32_0 = arith.constant 0 : i32
    %c0_i32_1 = arith.constant 0 : i32
    return %c0_i32, %c0_i32_0 : i32, i32
  }
  func.func @transform_3(%arg0: i32) -> (i32, i32) {
    %c0_i32 = arith.constant 0 : i32
    %c0_i32_0 = arith.constant 0 : i32
    %c0_i32_1 = arith.constant 0 : i32
    return %c0_i32, %c0_i32_0 : i32, i32
  }
  func.func @transform_4(%arg0: i32) -> (i32, i32) {
    %c0_i32 = arith.constant 0 : i32
    %c0_i32_0 = arith.constant 0 : i32
    %c0_i32_1 = arith.constant 0 : i32
    return %c0_i32, %c0_i32_0 : i32, i32
  }
  func.func @transform_5(%arg0: i32) -> (i32, i32) {
    %c0_i32 = arith.constant 0 : i32
    %c0_i32_0 = arith.constant 0 : i32
    %c0_i32_1 = arith.constant 0 : i32
    return %c0_i32, %c0_i32_0 : i32, i32
  }
  func.func @transform_6(%arg0: i32) -> (i32, i32) {
    %c0_i32 = arith.constant 0 : i32
    %c0_i32_0 = arith.constant 0 : i32
    return %arg0, %c0_i32 : i32, i32
  }
}

</mosaic_0001>

<bundles_post_ra>
// kernel: tpu_custom_call.1
= control target key start
LH: loop header
LB: loop body
LE: loop exit
PB: predicated region body
PF: predicated region fallthrough
CT: control target
= control target key end

     0   :  { %11 = vsyncpa [#allocation3], 0  ;;  %s5886_s0 = inlined_call_operand.hbm [shape: f32[8,8,32], index: 0, kind: input, shape index: {}]   ;;  %s5887_s1 = inlined_call_operand.hbm [shape: f32[32,64], index: 1, kind: input, shape index: {}]   ;;  %s5888_s2 = inlined_call_operand.hbm [shape: f32[16,64], index: 2, kind: input, shape index: {}]   ;;  %s5889_s3 = inlined_call_operand.vmem [shape: f32[1,64], index: 3, kind: input, shape index: {}]   ;;  %s5890_s4 = inlined_call_operand.hbm [shape: f32[32,64], index: 4, kind: input, shape index: {}]   ;;  %s5891_s5 = inlined_call_operand.vmem [shape: f32[1,64], index: 5, kind: input, shape index: {}]   ;;  %s5892_s6 = inlined_call_operand.hbm [shape: f32[8,32], index: 6, kind: output, shape index: {}]  }
   0x1   :  { %12 = vsyncpa [#allocation6], 0 }
   0x2   :  { %13 = vsyncpa [#allocation9], 0 }
   0x3   :  { %14 = vsyncpa [#allocation4], 0  ;;  %s32_s23 = sshll.u32 %s5887_s1, 4  ;;  %s4156_s24 = smov [#allocation5]   ;;  %s33_s23 = int_to_ptr.hbm [resolvable:$true] %s32_s23 }
   0x4   :  { %s34_s25 = sshll.u32 %s4156_s24, 4  ;;  %s19_s28 = sshll.u32 %s5886_s0, 4  ;;  %s35_s25 = int_to_ptr.vmem [resolvable:$true] %s34_s25  ;;  %s20_s28 = int_to_ptr.hbm [resolvable:$true] %s19_s28 }
   0x5   :  { %s4157_s29 = smov 128   ;;  %s4158_s30 = smov 8  }
   0x6   :  { %40 = dma.hbm_to_vmem [thread:$0]  %s33_s23, 512, %s35_s25, [#allocation6], %s4157_s29, %s4157_s29, %s4158_s30  }
   0x7   :  { %s4159_s7 = smov [#allocation2]   ;;  %s45_s11 = sshll.u32 %s5888_s2, 4  ;;  %s46_s11 = int_to_ptr.hbm [resolvable:$true] %s45_s11 }
   0x8   :  { %s21_s8 = sshll.u32 %s4159_s7, 4  ;;  %s60_s13 = sshll.u32 %s5890_s4, 4  ;;  %s22_s8 = int_to_ptr.vmem [resolvable:$true] %s21_s8  ;;  %s61_s13 = int_to_ptr.hbm [resolvable:$true] %s60_s13 }
   0x9   :  { %27 = dma.hbm_to_vmem [thread:$0]  %s20_s28, 1024, %s22_s8, [#allocation3], %s4157_s29, %s4157_s29, %s4158_s30  }
   0xa   :  { %s4160_s14 = smov [#allocation7]   ;;  %s4161_s0 = smov [#allocation8]  }
   0xb   :  { %s47_s15 = sshll.u32 %s4160_s14, 4  ;;  %s62_s16 = sshll.u32 %s4161_s0, 4  ;;  %s48_s15 = int_to_ptr.vmem [resolvable:$true] %s47_s15  ;;  %s63_s16 = int_to_ptr.vmem [resolvable:$true] %s62_s16 }
   0xc   :  { %53 = dma.hbm_to_vmem [thread:$0]  %s46_s11, 256, %s48_s15, [#allocation6], %s4157_s29, %s4157_s29, %s4158_s30  }
   0xd   :  { %68 = dma.hbm_to_vmem [thread:$0]  %s61_s13, 512, %s63_s16, [#allocation9], %s4157_s29, %s4157_s29, %s4158_s30  }
   0xe   :  { %4148 = dma.done.wait [#allocation3], 1024  }
   0xf   :  { %4149 = vsyncadd [#allocation3], 4294966272 }
  0x10   :  { %4150 = dma.done.wait [#allocation6], 768  }
  0x11   :  { %4151 = vsyncadd [#allocation6], 4294966528 }
  0x12   :  { %4152 = dma.done.wait [#allocation9], 512  }
  0x13   :  { %4153 = vsyncadd [#allocation9], 4294966784  ;;  %v98_v0 = vld [vmem:[#allocation5 + $0x18] sm:$0xff]  ;;  %v97_v1 = vld [vmem:[#allocation5 + $0x10] sm:$0xff]  ;;  %vm5893_vm0 = vcmask 261120   ;;  %v4162_v12 = vmov 0.0  }
  0x14   :  { %140 = vmatpush.msra.mxu0 %v98_v0  ;;  %3481 = vmatpush.msra.mxu1 %v98_v0  ;;  %v96_v2 = vld [vmem:[#allocation5 + $0x8] sm:$0xff]  ;;  %v95_v3 = vld [vmem:[#allocation5] sm:$0xff]  ;;  %v94_v8 = vld [vmem:[#allocation2 + $0x38] sm:$0xff]  ;;  %s4164_s17 = smov 16   ;;  %s4165_s18 = smov 32  }
  0x15   :  { %3482 = vmatpush.msra.mxu2 %v98_v0  ;;  %3483 = vmatpush.msra.mxu3 %v98_v0  ;;  %v87_v4 = vld [vmem:[#allocation2] sm:$0xff]  ;;  %v92_v6 = vld [vmem:[#allocation2 + $0x28] sm:$0xff]  ;;  %v93_v11 = vld [vmem:[#allocation2 + $0x30] sm:$0xff]  ;;  %s4166_s19 = smov 80   ;;  %s4168_s22 = smov [#allocation10]  }
  0x16   :  { %141 = vmatpush.msra.mxu0 %v97_v1  ;;  %3484 = vmatpush.msra.mxu1 %v97_v1  ;;  %v91_v5 = vld [vmem:[#allocation2 + $0x20] sm:$0xff]  ;;  %v4216_v7 = vld [vmem:[#allocation7 + $0x8] sm:$0xff]  ;;  %v89_v13 = vld [vmem:[#allocation2 + $0x10] sm:$0xff]  ;;  %s3386_s23 = sshll.u32 %s4168_s22, 4  ;;  %s3388_s26 = sshll.u32 %s5892_s6, 4  ;;  %s3387_s23 = int_to_ptr.vmem [resolvable:$true] %s3386_s23  ;;  %s3389_s26 = int_to_ptr.hbm [resolvable:$true] %s3388_s26 }
  0x17   :  { %3485 = vmatpush.msra.mxu2 %v97_v1  ;;  %3486 = vmatpush.msra.mxu3 %v97_v1  ;;  %v4221_v9 = vld [vmem:[#allocation7] sm:$0xff]  ;;  %v88_v10 = vld [vmem:[#allocation2 + $0x8] sm:$0xff]  ;;  %v90_v14 = vld [vmem:[#allocation2 + $0x18] sm:$0xff] }
  0x18   :  { %142 = vmatpush.msra.mxu0 %v96_v2  ;;  %3487 = vmatpush.msra.mxu1 %v96_v2  ;;  %v3506_v17 = vld [vmem:[%s5889_s3] ss:$0 sm:$0xff]  ;;  %s4163_s3 = smov 96  }
  0x19   :  { %3488 = vmatpush.msra.mxu2 %v96_v2  ;;  %3489 = vmatpush.msra.mxu3 %v96_v2 }
  0x1a   :  { %143 = vmatpush.msra.mxu0 %v95_v3  ;;  %3490 = vmatpush.msra.mxu1 %v95_v3 }
  0x1b   :  { %3491 = vmatpush.msra.mxu2 %v95_v3  ;;  %3400 = vmatmul.msk.f32.vlgmr.msra.gmra.mxu0 %vm5893_vm0, %v87_v4 }
  0x1c   :  { %3404 = vmatmul.msk.f32.vlgmr.msra.gmra.mxu1 %vm5893_vm0, %v91_v5  ;;  %3405 = vmatmul.msk.f32.vlgmr.msra.gmra.mxu2 %vm5893_vm0, %v92_v6 }
  0x1d   :  { %189 = vmatpush.msrb.mxu1 %v4216_v7  ;;  %3492 = vmatpush.msra.mxu3 %v95_v3 }
  0x1e   :  { %3407 = vmatmul.msk.f32.vlgmr.msra.gmra.mxu3 %vm5893_vm0, %v94_v8  ;;  %562 = vmatpush.msrb.mxu2 %v4216_v7 }
  0x1f   :  { %190 = vmatpush.msrb.mxu1 %v4221_v9  ;;  %952 = vmatpush.msrb.mxu3 %v4216_v7 }
  0x20   :  { %563 = vmatpush.msrb.mxu2 %v4221_v9 }
  0x21   :  { %1342 = vmatpush.msra.mxu1 %v4216_v7  ;;  %953 = vmatpush.msrb.mxu3 %v4221_v9 }
  0x22   :  { %1732 = vmatpush.msra.mxu2 %v4216_v7 }
  0x23   :  { %1343 = vmatpush.msra.mxu1 %v4221_v9  ;;  %2122 = vmatpush.msra.mxu3 %v4216_v7 }
  0x24   :  { %3401 = vmatmul.msk.f32.gmra.mxu0 %vm5893_vm0, %v88_v10  ;;  %1733 = vmatpush.msra.mxu2 %v4221_v9 }
  0x25   :  { %3406 = vmatmul.msk.f32.gmra.mxu2 %vm5893_vm0, %v93_v11  ;;  %191 = vmatmul.f32.vlgmr.msrb.gmra.mxu1 %v4162_v12 }
  0x26   :  { %2123 = vmatpush.msra.mxu3 %v4221_v9  ;;  %2512 = vmatpush.msrb.mxu1 %v4216_v7 }
  0x28   :  { %2513 = vmatpush.msrb.mxu1 %v4221_v9 }
  0x2c   :  { %3402 = vmatmul.msk.f32.gmra.mxu0 %vm5893_vm0, %v89_v13 }
  0x34   :  { %3403 = vmatmul.msk.f32.gmra.mxu0 %vm5893_vm0, %v90_v14 }
  0x98   :  { %v145_v15 = vpop.f32.mrf.mxu0 }
  0x99   :  { %v157_v16 = vpop.f32.mrf.mxu1  ;;  %v4245_v18 = vadd.f32 %v3506_v17, %v145_v15 }
  0x9a   :  { %v4249_v22 = vadd.f32 %v3506_v17, %v157_v16 }
  0x9f   :  { %v160_v26 = vpop.f32.mrf.mxu2 }
  0xa0   :  { %v4254_v29 = vadd.f32 %v3506_v17, %v160_v26 }
  0xa1   :  { %v148_v19 = vpop.f32.mrf.mxu0  ;;  %v166_v44 = vpop.f32.mrf.mxu3 }
  0xa2   :  { %v4247_v20 = vadd.f32 %v3506_v17, %v148_v19  ;;  %v192_v21 = vpop.f32.mrf.mxu1  ;;  %v4268_v49 = vadd.f32 %v3506_v17, %v166_v44 }
  0xa3   :  { %v211_v23 = vadd.f32 %v192_v21, %v4245_v18  ;;  %v199_v24 = vrot.slane %v192_v21, 4  ;;  %v196_v25 = vrot.slane %v192_v21, 1  ;;  %v200_v30 = vrot.slane %v192_v21, 5 }
  0xa4   :  { %v197_v33 = vrot.slane %v192_v21, 2  ;;  %v198_v43 = vrot.slane %v192_v21, 3  ;;  %v201_v45 = vrot.slane %v192_v21, 6  ;;  %v202_v51 = vrot.slane %v192_v21, 7 }
  0xa5   :  { %3508 = vtanh.f32 %v211_v23  ;;  %v215_v27 = vadd.f32 %v199_v24, %v4249_v22  ;;  %v212_v28 = vadd.f32 %v196_v25, %v4247_v20  ;;  %v216_v35 = vadd.f32 %v200_v30, %v4254_v29 }
  0xa6   :  { %v218_v52 = vadd.f32 %v202_v51, %v4268_v49  ;;  %v3408_v59 = vmul.f32 -1.442695, %v211_v23 }
  0xa7   :  { %3510 = vtanh.f32 %v215_v27  ;;  %v3412_v56 = vmul.f32 -1.442695, %v215_v27  ;;  %v3409_v61 = vmul.f32 -1.442695, %v212_v28  ;;  %v3413_v63 = vmul.f32 -1.442695, %v216_v35 }
  0xa8   :  { %3512 = vtanh.f32 %v212_v28  ;;  %v163_v38 = vpop.f32.mrf.mxu2  ;;  %v3415_v25 = vmul.f32 -1.442695, %v218_v52 }
  0xa9   :  { %v151_v31 = vpop.f32.mrf.mxu0  ;;  %3514 = vtanh.f32 %v216_v35  ;;  %v4263_v41 = vadd.f32 %v3506_v17, %v163_v38 }
  0xaa   :  { %v4256_v32 = vadd.f32 %v3506_v17, %v151_v31 }
  0xab   :  { %v3509_v34 = vpop.eup %3508  ;;  %v217_v50 = vadd.f32 %v201_v45, %v4263_v41 }
  0xac   :  { %395 = vrot.lane.b32.xlu1 %v3509_v34, %s4163_s3  ;;  %v213_v36 = vadd.f32 %v197_v33, %v4256_v32 }
  0xad   :  { %v3511_v37 = vpop.eup %3510  ;;  %v3414_v21 = vmul.f32 -1.442695, %v217_v50 }
  0xae   :  { %403 = vrot.lane.b32.xlu2 %v3511_v37, %s4163_s3  ;;  %v3513_v39 = vpop.eup %3512  ;;  %3516 = vtanh.f32 %v213_v36  ;;  %v3410_v3 = vmul.f32 -1.442695, %v213_v36 }
  0xaf   :  { %397 = vrot.lane.b32.xlu0 %v3513_v39, %s4163_s3  ;;  %v3515_v47 = vpop.eup %3514 }
  0xb1   :  { %v154_v40 = vpop.f32.mrf.mxu0 }
  0xb2   :  { %v4265_v42 = vadd.f32 %v3506_v17, %v154_v40 }
  0xb4   :  { %v214_v46 = vadd.f32 %v198_v43, %v4265_v42  ;;  %v3517_v48 = vpop.eup %3516 }
  0xb6   :  { %3518 = vtanh.f32 %v214_v46  ;;  %405 = vrot.lane.b32.xlu2 %v3515_v47, %s4163_s3  ;;  %v3411_v6 = vmul.f32 -1.442695, %v214_v46 }
  0xb7   :  { %399 = vrot.lane.b32.xlu0 %v3517_v48, %s4163_s3  ;;  %3520 = vtanh.f32 %v217_v50 }
  0xb8   :  { %3522 = vtanh.f32 %v218_v52 }
  0xb9   :  { %3524 = vpow2.f32 %v3412_v56 }
  0xbc   :  { %v3519_v53 = vpop.eup %3518 }
  0xbd   :  { %401 = vrot.lane.b32.xlu1 %v3519_v53, %s4163_s3  ;;  %v3521_v54 = vpop.eup %3520 }
  0xbe   :  { %v3523_v55 = vpop.eup %3522 }
  0xbf   :  { %407 = vrot.lane.b32.xlu0 %v3521_v54, %s4163_s3  ;;  %v3525_v57 = vpop.eup %3524 }
  0xc0   :  { %v247_v58 = vadd.f32 1.0, %v3525_v57 }
  0xc2   :  { %3526 = vrcp.f32 %v247_v58  ;;  %v322_v12 = vand.u32 2147483648, %v247_v58  ;;  %vm316_vm2 = vweird.f32 %v247_v58  ;;  %v320_v13 = vand.u32 2147483647, %v247_v58 }
  0xc3   :  { %3528 = vpow2.f32 %v3408_v59 }
  0xc4   :  { %3530 = vpow2.f32 %v3409_v61  ;;  %v323_v17 = vor.u32 1.1754944e-38, %v322_v12  ;;  %vm321_vm4 = vcmp.eq.f32.partialorder %v320_v13, 8.507059e+37 }
  0xc5   :  { %409 = vrot.lane.b32.xlu1 %v3523_v55, %s4163_s3  ;;  %3532 = vpow2.f32 %v3413_v63 }
  0xc8   :  { %v3527_v60 = vpop.eup %3526 }
  0xc9   :  { %v312_v62 = vmul.f32 %v3527_v60, %v247_v58  ;;  %v3529_v0 = vpop.eup %3528  ;;  %vm317_vm1 = vweird.f32 %v3527_v60 }
  0xca   :  { %v4277_v2 = vadd.f32 1.0, %v3529_v0  ;;  %v3531_v5 = vpop.eup %3530  ;;  %vm318_vm3 = vmor %vm316_vm2, %vm317_vm1 }
  0xcb   :  { %v313_v1 = vsub.f32 1.0, %v312_v62  ;;  %v3533_v10 = vpop.eup %3532  ;;  %v4280_v11 = vadd.f32 1.0, %v3531_v5 }
  0xcc   :  { %3534 = vrcp.f32 %v4277_v2  ;;  %v4282_v15 = vadd.f32 1.0, %v3533_v10  ;;  %v262_v45 = vand.u32 2147483648, %v4277_v2  ;;  %vm256_vm6 = vweird.f32 %v4277_v2 }
  0xcd   :  { %v314_v4 = vmul.f32 %v3527_v60, %v313_v1  ;;  %3536 = vpow2.f32 %v3410_v3  ;;  %v260_v54 = vand.u32 2147483647, %v4277_v2  ;;  %v277_v61 = vand.u32 2147483648, %v4280_v11 }
  0xce   :  { %3538 = vpow2.f32 %v3411_v6  ;;  %v263_v57 = vor.u32 1.1754944e-38, %v262_v45  ;;  %v337_v62 = vand.u32 2147483648, %v4282_v15  ;;  %vm271_vm10 = vweird.f32 %v4280_v11 }
  0xcf   :  { %v315_v8 = vadd.f32 %v3527_v60, %v314_v4  ;;  %3540 = vrcp.f32 %v4280_v11  ;;  %vm261_vm9 = vcmp.eq.f32.partialorder %v260_v54, 8.507059e+37  ;;  %v275_v1 = vand.u32 2147483647, %v4280_v11 }
  0xd0   :  { %3542 = vrcp.f32 %v4282_v15  ;;  %vm331_vm13 = vweird.f32 %v4282_v15  ;;  %v335_v12 = vand.u32 2147483647, %v4282_v15  ;;  %v278_v13 = vor.u32 1.1754944e-38, %v277_v61 }
  0xd1   :  { %v319_v14 = vsel %vm318_vm3, %v3527_v60, %v315_v8  ;;  %3544 = vpow2.f32 %v3414_v21  ;;  %vm276_vm15 = vcmp.eq.f32.partialorder %v275_v1, 8.507059e+37 }
  0xd2   :  { %v3535_v16 = vpop.eup %3534  ;;  %v4285_v24 = vsel %vm321_vm4, %v323_v17, %v319_v14  ;;  %3546 = vpow2.f32 %v3415_v25  ;;  %vm336_vm2 = vcmp.eq.f32.partialorder %v335_v12, 8.507059e+37 }
  0xd3   :  { %v3537_v19 = vpop.eup %3536  ;;  %v252_v27 = vmul.f32 %v3535_v16, %v4277_v2  ;;  %vm257_vm5 = vweird.f32 %v3535_v16 }
  0xd4   :  { %v4290_v28 = vadd.f32 1.0, %v3537_v19  ;;  %v3539_v30 = vpop.eup %3538  ;;  %vm258_vm7 = vmor %vm256_vm6, %vm257_vm5 }
  0xd5   :  { %v4293_v31 = vpop.eup %3540  ;;  %v253_v33 = vsub.f32 1.0, %v252_v27  ;;  %v4296_v34 = vadd.f32 1.0, %v3539_v30 }
  0xd6   :  { %3548 = vrcp.f32 %v4290_v28  ;;  %v4298_v35 = vpop.eup %3542  ;;  %v267_v36 = vmul.f32 %v4293_v31, %v4280_v11  ;;  %vm272_vm8 = vweird.f32 %v4293_v31  ;;  %vm286_vm3 = vweird.f32 %v4290_v28 }
  0xd7   :  { %v3545_v37 = vpop.eup %3544  ;;  %v327_v38 = vmul.f32 %v4298_v35, %v4282_v15  ;;  %v254_v39 = vmul.f32 %v3535_v16, %v253_v33  ;;  %3550 = vrcp.f32 %v4296_v34  ;;  %vm332_vm11 = vweird.f32 %v4298_v35  ;;  %vm4335_vm12 = vmor %vm271_vm10, %vm272_vm8 }
  0xd8   :  { %v3547_v40 = vpop.eup %3546  ;;  %v268_v43 = vsub.f32 1.0, %v267_v36  ;;  %v4308_v46 = vadd.f32 1.0, %v3545_v37  ;;  %vm4350_vm14 = vmor %vm331_vm13, %vm332_vm11  ;;  %v307_v45 = vand.u32 2147483648, %v4296_v34 }
  0xd9   :  { %v328_v47 = vsub.f32 1.0, %v327_v38  ;;  %v255_v48 = vadd.f32 %v3535_v16, %v254_v39  ;;  %v4310_v50 = vadd.f32 1.0, %v3547_v40 }
  0xda   :  { %v269_v51 = vmul.f32 %v4293_v31, %v268_v43  ;;  %3552 = vrcp.f32 %v4308_v46  ;;  %v350_v61 = vand.u32 2147483647, %v4308_v46 }
  0xdb   :  { %v329_v55 = vmul.f32 %v4298_v35, %v328_v47  ;;  %v259_v56 = vsel %vm258_vm7, %v3535_v16, %v255_v48  ;;  %3554 = vrcp.f32 %v4310_v50  ;;  %v338_v16 = vor.u32 1.1754944e-38, %v337_v62 }
  0xdc   :  { %v4305_v44 = vpop.eup %3548  ;;  %v270_v58 = vadd.f32 %v4293_v31, %v269_v51  ;;  %v4328_v0 = vsel %vm261_vm9, %v263_v57, %v259_v56  ;;  %vm301_vm7 = vweird.f32 %v4296_v34  ;;  %v365_v62 = vand.u32 2147483647, %v4310_v50 }
  0xdd   :  { %v282_v52 = vmul.f32 %v4305_v44, %v4290_v28  ;;  %v4315_v53 = vpop.eup %3550  ;;  %v330_v2 = vadd.f32 %v4298_v35, %v329_v55  ;;  %vm287_vm1 = vweird.f32 %v4305_v44  ;;  %v308_v55 = vor.u32 1.1754944e-38, %v307_v45 }
  0xde   :  { %v297_v60 = vmul.f32 %v4315_v53, %v4296_v34  ;;  %v274_v6 = vsel %vm4335_vm12, %v4293_v31, %v270_v58  ;;  %v292_v31 = vand.u32 2147483648, %v4290_v28  ;;  %vm288_vm4 = vmor %vm286_vm3, %vm287_vm1  ;;  %vm302_vm5 = vweird.f32 %v4315_v53 }
  0xdf   :  { %v283_v59 = vsub.f32 1.0, %v282_v52  ;;  %v334_v17 = vsel %vm4350_vm14, %v4298_v35, %v330_v2  ;;  %v4357_v21 = vsel %vm276_vm15, %v278_v13, %v274_v6  ;;  %v290_v35 = vand.u32 2147483647, %v4290_v28  ;;  %vm303_vm8 = vmor %vm301_vm7, %vm302_vm5 }
  0xe0   :  { %v4339_v5 = vpop.eup %3552  ;;  %v298_v10 = vsub.f32 1.0, %v297_v60  ;;  %v4368_v33 = vsel %vm336_vm2, %v338_v16, %v334_v17  ;;  %v293_v43 = vor.u32 1.1754944e-38, %v292_v31  ;;  %v305_v28 = vand.u32 2147483647, %v4296_v34 }
  0xe1   :  { %v284_v8 = vmul.f32 %v4305_v44, %v283_v59  ;;  %v4345_v11 = vpop.eup %3554  ;;  %v342_v15 = vmul.f32 %v4339_v5, %v4308_v46  ;;  %vm291_vm6 = vcmp.eq.f32.partialorder %v290_v35, 8.507059e+37  ;;  %vm347_vm10 = vweird.f32 %v4339_v5 }
  0xe2   :  { %v299_v27 = vmul.f32 %v4315_v53, %v298_v10  ;;  %v357_v30 = vmul.f32 %v4345_v11, %v4310_v50  ;;  %vm306_vm9 = vcmp.eq.f32.partialorder %v305_v28, 8.507059e+37  ;;  %vm362_vm11 = vweird.f32 %v4345_v11 }
  0xe3   :  { %v343_v37 = vsub.f32 1.0, %v342_v15  ;;  %vm346_vm12 = vweird.f32 %v4308_v46  ;;  %v367_v60 = vand.u32 2147483648, %v4310_v50  ;;  %vm361_vm14 = vweird.f32 %v4310_v50 }
  0xe4   :  { %v300_v39 = vadd.f32 %v4315_v53, %v299_v27  ;;  %v358_v40 = vsub.f32 1.0, %v357_v30  ;;  %vm348_vm13 = vmor %vm346_vm12, %vm347_vm10  ;;  %vm351_vm1 = vcmp.eq.f32.partialorder %v350_v61, 8.507059e+37  ;;  %vm366_vm2 = vcmp.eq.f32.partialorder %v365_v62, 8.507059e+37 }
  0xe5   :  { %v344_v51 = vmul.f32 %v4339_v5, %v343_v37  ;;  %vm363_vm15 = vmor %vm361_vm14, %vm362_vm11  ;;  %v368_v4 = vor.u32 1.1754944e-38, %v367_v60  ;;  %v383_v50 = vmul.f32 0.0, %v4285_v24  ;;  %v380_v13 = vmul.f32 0.0, %v4357_v21 }
  0xe6   :  { %v304_v52 = vsel %vm303_vm8, %v4315_v53, %v300_v39  ;;  %v359_v54 = vmul.f32 %v4345_v11, %v358_v40  ;;  %v352_v53 = vand.u32 2147483648, %v4308_v46  ;;  %vm524_vm3 = vcmask 1041409  }
  0xe7   :  { %v4389_v56 = vsel %vm306_vm9, %v308_v55, %v304_v52  ;;  %v345_v57 = vadd.f32 %v4339_v5, %v344_v51  ;;  %vm530_vm5 = vcmask 1043459   ;;  %vm536_vm7 = vcmask 1045509  }
  0xe8   :  { %v360_v59 = vadd.f32 %v4345_v11, %v359_v54  ;;  %v353_v2 = vor.u32 1.1754944e-38, %v352_v53  ;;  %v382_v15 = vmul.f32 0.0, %v4389_v56  ;;  %vm539_vm8 = vcmask 1046534  }
  0xe9   :  { %vm542_vm9 = vcmask 1047559   ;;  %vm171_vm10 = vcmask 130048  }
  0xea   :  { %v364_v1 = vsel %vm363_vm15, %v4345_v11, %v360_v59 }
 0x108   :  { %v404_v23 = vpop.permute.xlu2 %403 }
 0x109   :  { %v423_v26 = vmul.f32 %v404_v23, %v4285_v24 }
 0x10b   :  { %443 = vrot.lane.b32.xlu0 %v423_v26, %s4164_s17  ;;  %v285_v26 = vadd.f32 %v4305_v44, %v284_v8  ;;  %v4406_v8 = vsel %vm366_vm2, %v368_v4, %v364_v1 }
 0x10c   :  { %v386_v54 = vmul.f32 0.0, %v4406_v8 }
 0x10d   :  { %v289_v38 = vsel %vm288_vm4, %v4305_v44, %v285_v26  ;;  %v379_v26 = vmul.f32 0.0, %v4328_v0  ;;  %vm527_vm4 = vcmask 1042434  }
 0x10e   :  { %v4381_v47 = vsel %vm291_vm6, %v293_v43, %v289_v38  ;;  %v384_v38 = vmul.f32 0.0, %v4368_v33  ;;  %vm533_vm6 = vcmask 1044484  }
 0x10f   :  { %v381_v28 = vmul.f32 0.0, %v4381_v47 }
 0x110   :  { %v406_v23 = vpop.permute.xlu2 %405 }
 0x111   :  { %v424_v36 = vmul.f32 %v406_v23, %v4368_v33 }
 0x11e   :  { %v396_v63 = vpop.permute.xlu1 %395 }
 0x11f   :  { %v419_v3 = vmul.f32 %v396_v63, %v4328_v0  ;;  %v349_v63 = vsel %vm348_vm13, %v4339_v5, %v345_v57 }
 0x120   :  { %v4404_v6 = vsel %vm351_vm1, %v353_v2, %v349_v63 }
 0x121   :  { %435 = vrot.lane.b32.xlu1 %v419_v3, %s4164_s17  ;;  %v398_v19 = vpop.permute.xlu0 %397  ;;  %v385_v30 = vmul.f32 0.0, %v4404_v6 }
 0x122   :  { %v420_v25 = vmul.f32 %v398_v19, %v4357_v21 }
 0x124   :  { %437 = vrot.lane.b32.xlu2 %v420_v25, %s4164_s17 }
 0x129   :  { %445 = vrot.lane.b32.xlu1 %v424_v36, %s4164_s17  ;;  %v400_v48 = vpop.permute.xlu0 %399 }
 0x12a   :  { %v421_v44 = vmul.f32 %v400_v48, %v4381_v47 }
 0x12c   :  { %439 = vrot.lane.b32.xlu0 %v421_v44, %s4164_s17 }
 0x12f   :  { %v402_v34 = vpop.permute.xlu1 %401 }
 0x130   :  { %v422_v58 = vmul.f32 %v402_v34, %v4389_v56 }
 0x131   :  { %v408_v3 = vpop.permute.xlu0 %407 }
 0x132   :  { %441 = vrot.lane.b32.xlu2 %v422_v58, %s4164_s17  ;;  %v425_v10 = vmul.f32 %v408_v3, %v4404_v6 }
 0x137   :  { %v410_v46 = vpop.permute.xlu1 %409 }
 0x138   :  { %v426_v12 = vmul.f32 %v410_v46, %v4406_v8 }
 0x13a   :  { %447 = vrot.lane.b32.xlu2 %v425_v10, %s4164_s17  ;;  %449 = vrot.lane.b32.xlu0 %v426_v12, %s4164_s17 }
 0x17d   :  { %v444_v5 = vpop.permute.xlu0 %443 }
 0x17e   :  { %v4413_v11 = vadd.f32 %v444_v5, %v383_v50  ;;  %v438_v14 = vpop.permute.xlu2 %437 }
 0x17f   :  { %v4417_v16 = vadd.f32 %v438_v14, %v380_v13 }
 0x180   :  { %3556 = vtanh.f32 %v4413_v11 }
 0x181   :  { %3558 = vtanh.f32 %v4417_v16 }
 0x186   :  { %v3557_v17 = vpop.eup %3556 }
 0x187   :  { %491 = vrot.lane.b32.xlu2 %v3557_v17, %s4165_s18  ;;  %v3559_v19 = vpop.eup %3558 }
 0x188   :  { %485 = vrot.lane.b32.xlu1 %v3559_v19, %s4165_s18 }
 0x18c   :  { %v442_v23 = vpop.permute.xlu2 %441 }
 0x18d   :  { %v4423_v25 = vadd.f32 %v442_v23, %v382_v15 }
 0x18f   :  { %3560 = vtanh.f32 %v4423_v25 }
 0x193   :  { %v436_v27 = vpop.permute.xlu1 %435 }
 0x194   :  { %v4428_v31 = vadd.f32 %v436_v27, %v379_v26  ;;  %v448_v35 = vpop.permute.xlu2 %447 }
 0x195   :  { %v3561_v36 = vpop.eup %3560  ;;  %v4430_v37 = vadd.f32 %v448_v35, %v385_v30 }
 0x196   :  { %3562 = vtanh.f32 %v4428_v31  ;;  %489 = vrot.lane.b32.xlu1 %v3561_v36, %s4165_s18 }
 0x197   :  { %3564 = vtanh.f32 %v4430_v37 }
 0x19b   :  { %v446_v39 = vpop.permute.xlu1 %445 }
 0x19c   :  { %v3563_v40 = vpop.eup %3562  ;;  %v4436_v43 = vadd.f32 %v446_v39, %v384_v38 }
 0x19d   :  { %v3565_v45 = vpop.eup %3564  ;;  %483 = vrot.lane.b32.xlu0 %v3563_v40, %s4165_s18 }
 0x19e   :  { %3566 = vtanh.f32 %v4436_v43  ;;  %495 = vrot.lane.b32.xlu1 %v3565_v45, %s4165_s18  ;;  %v440_v48 = vpop.permute.xlu0 %439 }
 0x19f   :  { %v4442_v44 = vadd.f32 %v440_v48, %v381_v28 }
 0x1a1   :  { %3568 = vtanh.f32 %v4442_v44 }
 0x1a4   :  { %v3567_v51 = vpop.eup %3566 }
 0x1a5   :  { %493 = vrot.lane.b32.xlu0 %v3567_v51, %s4165_s18 }
 0x1a7   :  { %v3569_v52 = vpop.eup %3568 }
 0x1a8   :  { %487 = vrot.lane.b32.xlu2 %v3569_v52, %s4165_s18 }
 0x1ac   :  { %v450_v55 = vpop.permute.xlu0 %449 }
 0x1ad   :  { %v4448_v34 = vadd.f32 %v450_v55, %v386_v54 }
 0x1af   :  { %3570 = vtanh.f32 %v4448_v34 }
 0x1b5   :  { %v3571_v57 = vpop.eup %3570 }
 0x1b6   :  { %497 = vrot.lane.b32.xlu2 %v3571_v57, %s4165_s18 }
 0x1e1   :  { %v492_v59 = vpop.permute.xlu2 %491 }
 0x1e2   :  { %v511_v12 = vmul.f32 %v492_v59, %v4285_v24 }
 0x1e4   :  { %v532_v17 = vrot.slane %v511_v12, 4 }
 0x1fa   :  { %v486_v58 = vpop.permute.xlu1 %485 }
 0x1fb   :  { %v508_v60 = vmul.f32 %v486_v58, %v4357_v21 }
 0x1fd   :  { %v523_v1 = vrot.slane %v508_v60, 7 }
 0x202   :  { %v488_v61 = vpop.permute.xlu2 %487 }
 0x203   :  { %v509_v62 = vmul.f32 %v488_v61, %v4381_v47 }
 0x205   :  { %v526_v46 = vrot.slane %v509_v62, 6 }
 0x208   :  { %v490_v53 = vpop.permute.xlu1 %489 }
 0x209   :  { %v510_v3 = vmul.f32 %v490_v53, %v4389_v56 }
 0x20b   :  { %v529_v5 = vrot.slane %v510_v3, 5 }
 0x20f   :  { %v484_v63 = vpop.permute.xlu0 %483 }
 0x210   :  { %v507_v2 = vmul.f32 %v484_v63, %v4328_v0  ;;  %v496_v10 = vpop.permute.xlu1 %495  ;;  %v498_v21 = vpop.permute.xlu2 %497 }
 0x211   :  { %v513_v47 = vmul.f32 %v496_v10, %v4404_v6  ;;  %v514_v14 = vmul.f32 %v498_v21, %v4406_v8 }
 0x212   :  { %v525_v4 = vsel %vm524_vm3, %v523_v1, %v507_v2 }
 0x213   :  { %v528_v50 = vsel %vm527_vm4, %v526_v46, %v525_v4  ;;  %v538_v24 = vrot.slane %v513_v47, 2  ;;  %v541_v23 = vrot.slane %v514_v14, 1 }
 0x214   :  { %v531_v56 = vsel %vm530_vm5, %v529_v5, %v528_v50 }
 0x215   :  { %v534_v15 = vsel %vm533_vm6, %v532_v17, %v531_v56 }
 0x217   :  { %v494_v13 = vpop.permute.xlu0 %493 }
 0x218   :  { %v512_v0 = vmul.f32 %v494_v13, %v4368_v33 }
 0x21a   :  { %v535_v19 = vrot.slane %v512_v0, 3 }
 0x21c   :  { %v537_v26 = vsel %vm536_vm7, %v535_v19, %v534_v15 }
 0x21d   :  { %v540_v6 = vsel %vm539_vm8, %v538_v24, %v537_v26 }
 0x21e   :  { %v543_v8 = vsel %vm542_vm9, %v541_v23, %v540_v6 }
 0x21f   :  { %544 = vrot.lane.b32.xlu0 %v543_v8, %s4166_s19 }
 0x291   :  { %v545_v33 = vpop.permute.xlu0 %544 }
 0x292   :  { %3416 = vmatmul.msk.f32.vlgmr.msrb.gmra.mxu2 %vm171_vm10, %v545_v33 }
 0x293   :  { %2902 = vmatpush.msrb.mxu2 %v4216_v7 }
 0x295   :  { %2903 = vmatpush.msrb.mxu2 %v4221_v9 }
 0x315   :  { %v565_v27 = vpop.f32.mrf.mxu2 }
 0x316   :  { %v585_v30 = vadd.f32 %v565_v27, %v4247_v20  ;;  %v570_v35 = vrot.slane %v565_v27, 1  ;;  %v569_v36 = vrot.slane %v565_v27, 7  ;;  %v573_v39 = vrot.slane %v565_v27, 4 }
 0x317   :  { %v572_v45 = vrot.slane %v565_v27, 3  ;;  %v571_v48 = vrot.slane %v565_v27, 2  ;;  %v575_v55 = vrot.slane %v565_v27, 6  ;;  %v574_v57 = vrot.slane %v565_v27, 5 }
 0x318   :  { %3572 = vtanh.f32 %v585_v30  ;;  %v586_v38 = vadd.f32 %v570_v35, %v4256_v32  ;;  %v584_v40 = vadd.f32 %v569_v36, %v4245_v18  ;;  %v589_v28 = vadd.f32 %v573_v39, %v4254_v29 }
 0x319   :  { %v588_v9 = vadd.f32 %v572_v45, %v4249_v22  ;;  %v587_v52 = vadd.f32 %v571_v48, %v4265_v42  ;;  %v591_v59 = vadd.f32 %v575_v55, %v4268_v49  ;;  %v590_v60 = vadd.f32 %v574_v57, %v4263_v41 }
 0x31a   :  { %3574 = vtanh.f32 %v586_v38  ;;  %v3419_v1 = vmul.f32 -1.442695, %v586_v38  ;;  %v3418_v12 = vmul.f32 -1.442695, %v585_v30  ;;  %v3417_v47 = vmul.f32 -1.442695, %v584_v40 }
 0x31b   :  { %3576 = vtanh.f32 %v584_v40  ;;  %v3421_v2 = vmul.f32 -1.442695, %v588_v9  ;;  %v3424_v46 = vmul.f32 -1.442695, %v591_v59  ;;  %v3422_v14 = vmul.f32 -1.442695, %v589_v28 }
 0x31c   :  { %3578 = vtanh.f32 %v589_v28  ;;  %v3420_v24 = vmul.f32 -1.442695, %v587_v52  ;;  %v3423_v38 = vmul.f32 -1.442695, %v590_v60 }
 0x31d   :  { %3580 = vtanh.f32 %v588_v9 }
 0x31e   :  { %v3573_v7 = vpop.eup %3572  ;;  %3582 = vtanh.f32 %v587_v52 }
 0x31f   :  { %794 = vrot.lane.b32.xlu0 %v3573_v7, %s4163_s3  ;;  %3584 = vtanh.f32 %v591_v59 }
 0x320   :  { %v3575_v51 = vpop.eup %3574  ;;  %3586 = vtanh.f32 %v590_v60 }
 0x321   :  { %796 = vrot.lane.b32.xlu2 %v3575_v51, %s4163_s3  ;;  %v3577_v54 = vpop.eup %3576  ;;  %3588 = vpow2.f32 %v3419_v1 }
 0x322   :  { %792 = vrot.lane.b32.xlu1 %v3577_v54, %s4163_s3  ;;  %v3579_v58 = vpop.eup %3578  ;;  %3590 = vpow2.f32 %v3421_v2 }
 0x323   :  { %v3581_v53 = vpop.eup %3580 }
 0x324   :  { %v3583_v61 = vpop.eup %3582 }
 0x325   :  { %v3585_v62 = vpop.eup %3584 }
 0x326   :  { %v3587_v63 = vpop.eup %3586 }
 0x327   :  { %802 = vrot.lane.b32.xlu0 %v3579_v58, %s4163_s3  ;;  %v3589_v3 = vpop.eup %3588 }
 0x328   :  { %v618_v4 = vadd.f32 1.0, %v3589_v3  ;;  %v3591_v10 = vpop.eup %3590 }
 0x329   :  { %800 = vrot.lane.b32.xlu2 %v3581_v53, %s4163_s3  ;;  %v4487_v50 = vadd.f32 1.0, %v3591_v10 }
 0x32a   :  { %798 = vrot.lane.b32.xlu1 %v3583_v61, %s4163_s3  ;;  %3592 = vrcp.f32 %v618_v4  ;;  %v665_v35 = vand.u32 2147483648, %v618_v4  ;;  %vm659_vm12 = vweird.f32 %v618_v4  ;;  %v663_v39 = vand.u32 2147483647, %v618_v4 }
 0x32b   :  { %3594 = vpow2.f32 %v3424_v46  ;;  %v695_v59 = vand.u32 2147483648, %v4487_v50  ;;  %vm689_vm1 = vweird.f32 %v4487_v50  ;;  %v693_v61 = vand.u32 2147483647, %v4487_v50 }
 0x32c   :  { %3596 = vpow2.f32 %v3418_v12  ;;  %v666_v9 = vor.u32 1.1754944e-38, %v665_v35  ;;  %vm664_vm14 = vcmp.eq.f32.partialorder %v663_v39, 8.507059e+37 }
 0x32d   :  { %3598 = vrcp.f32 %v4487_v50 }
 0x32e   :  { %3600 = vpow2.f32 %v3417_v47 }
 0x32f   :  { %3602 = vpow2.f32 %v3422_v14 }
 0x330   :  { %v3593_v21 = vpop.eup %3592 }
 0x331   :  { %806 = vrot.lane.b32.xlu2 %v3585_v62, %s4163_s3  ;;  %v3595_v5 = vpop.eup %3594  ;;  %v655_v13 = vmul.f32 %v3593_v21, %v618_v4  ;;  %vm660_vm11 = vweird.f32 %v3593_v21  ;;  %v696_v4 = vor.u32 1.1754944e-38, %v695_v59 }
 0x332   :  { %804 = vrot.lane.b32.xlu1 %v3587_v63, %s4163_s3  ;;  %v4490_v0 = vadd.f32 1.0, %v3595_v5  ;;  %v3597_v56 = vpop.eup %3596  ;;  %vm661_vm13 = vmor %vm659_vm12, %vm660_vm11  ;;  %vm694_vm11 = vcmp.eq.f32.partialorder %v693_v61, 8.507059e+37 }
 0x333   :  { %v656_v17 = vsub.f32 1.0, %v655_v13  ;;  %v3599_v19 = vpop.eup %3598  ;;  %v4494_v26 = vadd.f32 1.0, %v3597_v56 }
 0x334   :  { %3604 = vrcp.f32 %v4490_v0  ;;  %v685_v23 = vmul.f32 %v3599_v19, %v4487_v50  ;;  %v3601_v6 = vpop.eup %3600  ;;  %vm690_vm15 = vweird.f32 %v3599_v19  ;;  %v740_v47 = vand.u32 2147483648, %v4490_v0 }
 0x335   :  { %v657_v15 = vmul.f32 %v3593_v21, %v656_v17  ;;  %3606 = vpow2.f32 %v3420_v24  ;;  %v3603_v8 = vpop.eup %3602  ;;  %v4499_v36 = vadd.f32 1.0, %v3601_v6  ;;  %vm691_vm2 = vmor %vm689_vm1, %vm690_vm15  ;;  %v738_v17 = vand.u32 2147483647, %v4490_v0 }
 0x336   :  { %v686_v27 = vsub.f32 1.0, %v685_v23  ;;  %3608 = vrcp.f32 %v4494_v26  ;;  %v4501_v40 = vadd.f32 1.0, %v3603_v8  ;;  %v741_v23 = vor.u32 1.1754944e-38, %v740_v47 }
 0x337   :  { %v658_v33 = vadd.f32 %v3593_v21, %v657_v15  ;;  %3610 = vrcp.f32 %v4499_v36  ;;  %vm739_vm1 = vcmp.eq.f32.partialorder %v738_v17, 8.507059e+37 }
 0x338   :  { %v687_v28 = vmul.f32 %v3599_v19, %v686_v27  ;;  %3612 = vpow2.f32 %v3423_v38 }
 0x339   :  { %v662_v45 = vsel %vm661_vm13, %v3593_v21, %v658_v33  ;;  %3614 = vrcp.f32 %v4501_v40  ;;  %vm734_vm13 = vweird.f32 %v4490_v0  ;;  %v650_v33 = vand.u32 2147483648, %v4494_v26 }
 0x33a   :  { %v4497_v30 = vpop.eup %3604  ;;  %v4508_v54 = vsel %vm664_vm14, %v666_v9, %v662_v45  ;;  %v688_v57 = vadd.f32 %v3599_v19, %v687_v28 }
 0x33b   :  { %v730_v48 = vmul.f32 %v4497_v30, %v4490_v0  ;;  %v3607_v7 = vpop.eup %3606  ;;  %vm735_vm12 = vweird.f32 %v4497_v30 }
 0x33c   :  { %v4506_v51 = vpop.eup %3608  ;;  %v4515_v60 = vadd.f32 1.0, %v3607_v7  ;;  %v692_v1 = vsel %vm691_vm2, %v3599_v19, %v688_v57  ;;  %vm736_vm14 = vmor %vm734_vm13, %vm735_vm12  ;;  %vm644_vm2 = vweird.f32 %v4494_v26 }
 0x33d   :  { %v731_v58 = vsub.f32 1.0, %v730_v48  ;;  %v640_v53 = vmul.f32 %v4506_v51, %v4494_v26  ;;  %v4520_v62 = vpop.eup %3610  ;;  %v4528_v12 = vsel %vm694_vm11, %v696_v4, %v692_v1  ;;  %vm645_vm15 = vweird.f32 %v4506_v51 }
 0x33e   :  { %v3613_v63 = vpop.eup %3612  ;;  %3616 = vrcp.f32 %v4515_v60  ;;  %v625_v10 = vmul.f32 %v4520_v62, %v4499_v36  ;;  %vm646_vm11 = vmor %vm644_vm2, %vm645_vm15  ;;  %v651_v48 = vor.u32 1.1754944e-38, %v650_v33  ;;  %vm630_vm12 = vweird.f32 %v4520_v62 }
 0x33f   :  { %v732_v2 = vmul.f32 %v4497_v30, %v731_v58  ;;  %v4523_v3 = vpop.eup %3614  ;;  %v641_v46 = vsub.f32 1.0, %v640_v53  ;;  %v4537_v56 = vadd.f32 1.0, %v3613_v63  ;;  %v710_v53 = vand.u32 2147483648, %v4501_v40 }
 0x340   :  { %v700_v14 = vmul.f32 %v4523_v3, %v4501_v40  ;;  %v626_v19 = vsub.f32 1.0, %v625_v10  ;;  %vm704_vm2 = vweird.f32 %v4501_v40  ;;  %v680_v47 = vand.u32 2147483648, %v4515_v60 }
 0x341   :  { %v733_v5 = vadd.f32 %v4497_v30, %v732_v2  ;;  %v642_v13 = vmul.f32 %v4506_v51, %v641_v46  ;;  %3618 = vrcp.f32 %v4537_v56 }
 0x342   :  { %v701_v8 = vsub.f32 1.0, %v700_v14  ;;  %v627_v27 = vmul.f32 %v4520_v62, %v626_v19 }
 0x343   :  { %v737_v15 = vsel %vm736_vm14, %v4497_v30, %v733_v5  ;;  %v643_v6 = vadd.f32 %v4506_v51, %v642_v13  ;;  %v648_v30 = vand.u32 2147483647, %v4494_v26  ;;  %vm629_vm14 = vweird.f32 %v4499_v36 }
 0x344   :  { %v4542_v24 = vpop.eup %3616  ;;  %v4552_v35 = vsel %vm739_vm1, %v741_v23, %v737_v15  ;;  %v702_v28 = vmul.f32 %v4523_v3, %v701_v8  ;;  %v628_v7 = vadd.f32 %v4520_v62, %v627_v27  ;;  %vm631_vm15 = vmor %vm629_vm14, %vm630_vm12  ;;  %vm705_vm1 = vweird.f32 %v4523_v3 }
 0x345   :  { %v670_v0 = vmul.f32 %v4542_v24, %v4515_v60  ;;  %v647_v45 = vsel %vm646_vm11, %v4506_v51, %v643_v6  ;;  %vm649_vm13 = vcmp.eq.f32.partialorder %v648_v30, 8.507059e+37  ;;  %v633_v51 = vand.u32 2147483647, %v4499_v36  ;;  %vm706_vm12 = vmor %vm704_vm2, %vm705_vm1 }
 0x346   :  { %v4563_v57 = vsel %vm649_vm13, %v651_v48, %v647_v45  ;;  %v703_v59 = vadd.f32 %v4523_v3, %v702_v28  ;;  %v632_v61 = vsel %vm631_vm15, %v4520_v62, %v628_v7  ;;  %vm675_vm13 = vweird.f32 %v4542_v24 }
 0x347   :  { %v671_v9 = vsub.f32 1.0, %v670_v0  ;;  %vm634_vm11 = vcmp.eq.f32.partialorder %v633_v51, 8.507059e+37  ;;  %vm674_vm15 = vweird.f32 %v4515_v60  ;;  %v681_v15 = vor.u32 1.1754944e-38, %v680_v47 }
 0x348   :  { %v707_v10 = vsel %vm706_vm12, %v4523_v3, %v703_v59  ;;  %v678_v3 = vand.u32 2147483647, %v4515_v60  ;;  %vm676_vm1 = vmor %vm674_vm15, %vm675_vm13  ;;  %v725_v27 = vand.u32 2147483648, %v4537_v56  ;;  %vm719_vm12 = vweird.f32 %v4537_v56 }
 0x349   :  { %v672_v63 = vmul.f32 %v4542_v24, %v671_v9  ;;  %v723_v60 = vand.u32 2147483647, %v4537_v56  ;;  %v761_v45 = vrot.slane %v4417_v16, 7  ;;  %v762_v48 = vrot.slane %v4442_v44, 7 }
 0x34a   :  { %vm679_vm2 = vcmp.eq.f32.partialorder %v678_v3, 8.507059e+37  ;;  %v726_v0 = vor.u32 1.1754944e-38, %v725_v27  ;;  %v764_v51 = vrot.slane %v4413_v11, 7  ;;  %v767_v11 = vrot.slane %v4448_v34, 7 }
 0x34b   :  { %v777_v28 = vmul.f32 %v761_v45, %v4563_v57  ;;  %v763_v47 = vrot.slane %v4423_v25, 7 }
 0x37b   :  { %v797_v52 = vpop.permute.xlu2 %796 }
 0x37c   :  { %v818_v55 = vmul.f32 %v797_v52, %v4508_v54  ;;  %v3619_v52 = vpop.eup %3618 }
 0x37d   :  { %v715_v1 = vmul.f32 %v3619_v52, %v4537_v56  ;;  %v778_v56 = vmul.f32 %v762_v48, %v4508_v54 }
 0x37e   :  { %836 = vrot.lane.b32.xlu1 %v818_v55, %s4164_s17  ;;  %v635_v55 = vand.u32 2147483648, %v4499_v36  ;;  %v708_v36 = vand.u32 2147483647, %v4501_v40 }
 0x37f   :  { %v716_v5 = vsub.f32 1.0, %v715_v1 }
 0x380   :  { %v636_v2 = vor.u32 1.1754944e-38, %v635_v55  ;;  %vm709_vm14 = vcmp.eq.f32.partialorder %v708_v36, 8.507059e+37 }
 0x381   :  { %v717_v19 = vmul.f32 %v3619_v52, %v716_v5 }
 0x382   :  { %v4577_v46 = vsel %vm634_vm11, %v636_v2, %v632_v61  ;;  %vm720_vm11 = vweird.f32 %v3619_v52  ;;  %v783_v2 = vmul.f32 %v767_v11, %v4552_v35 }
 0x383   :  { %v801_v50 = vpop.permute.xlu2 %800  ;;  %v718_v33 = vadd.f32 %v3619_v52, %v717_v19  ;;  %vm721_vm13 = vmor %vm719_vm12, %vm720_vm11 }
 0x384   :  { %v820_v21 = vmul.f32 %v801_v50, %v4528_v12  ;;  %v711_v50 = vor.u32 1.1754944e-38, %v710_v53  ;;  %v780_v53 = vmul.f32 %v764_v51, %v4528_v12 }
 0x386   :  { %840 = vrot.lane.b32.xlu1 %v820_v21, %s4164_s17  ;;  %v673_v21 = vadd.f32 %v4542_v24, %v672_v63  ;;  %v4585_v13 = vsel %vm709_vm14, %v711_v50, %v707_v10  ;;  %vm724_vm14 = vcmp.eq.f32.partialorder %v723_v60, 8.507059e+37  ;;  %v760_v50 = vrot.slane %v4428_v31, 7 }
 0x387   :  { %v766_v31 = vrot.slane %v4430_v37, 7 }
 0x388   :  { %v677_v17 = vsel %vm676_vm1, %v4542_v24, %v673_v21  ;;  %v722_v24 = vsel %vm721_vm13, %v3619_v52, %v718_v33  ;;  %v776_v21 = vmul.f32 %v760_v50, %v4577_v46 }
 0x389   :  { %v4592_v23 = vsel %vm679_vm2, %v681_v15, %v677_v17 }
 0x38b   :  { %v807_v38 = vpop.permute.xlu2 %806 }
 0x38c   :  { %v823_v39 = vmul.f32 %v807_v38, %v4552_v35  ;;  %v4599_v38 = vsel %vm724_vm14, %v726_v0, %v722_v24 }
 0x38d   :  { %v782_v19 = vmul.f32 %v766_v31, %v4599_v38 }
 0x38e   :  { %846 = vrot.lane.b32.xlu1 %v823_v39, %s4164_s17 }
 0x391   :  { %v795_v26 = vpop.permute.xlu0 %794 }
 0x392   :  { %v817_v58 = vmul.f32 %v795_v26, %v4563_v57  ;;  %v765_v26 = vrot.slane %v4436_v43, 7 }
 0x394   :  { %834 = vrot.lane.b32.xlu2 %v817_v58, %s4164_s17  ;;  %v793_v4 = vpop.permute.xlu1 %792  ;;  %v781_v16 = vmul.f32 %v765_v26, %v4585_v13 }
 0x395   :  { %v816_v62 = vmul.f32 %v793_v4, %v4577_v46 }
 0x397   :  { %832 = vrot.lane.b32.xlu0 %v816_v62, %s4164_s17 }
 0x399   :  { %v803_v40 = vpop.permute.xlu0 %802 }
 0x39a   :  { %v821_v14 = vmul.f32 %v803_v40, %v4585_v13  ;;  %v779_v40 = vmul.f32 %v763_v47, %v4592_v23 }
 0x39c   :  { %842 = vrot.lane.b32.xlu2 %v821_v14, %s4164_s17  ;;  %v799_v6 = vpop.permute.xlu1 %798 }
 0x39d   :  { %v819_v8 = vmul.f32 %v799_v6, %v4592_v23 }
 0x39f   :  { %838 = vrot.lane.b32.xlu0 %v819_v8, %s4164_s17 }
 0x3a4   :  { %v805_v30 = vpop.permute.xlu1 %804 }
 0x3a5   :  { %v822_v39 = vmul.f32 %v805_v30, %v4599_v38 }
 0x3a7   :  { %844 = vrot.lane.b32.xlu0 %v822_v39, %s4164_s17 }
 0x3ee   :  { %v835_v7 = vpop.permute.xlu2 %834 }
 0x3ef   :  { %v4606_v9 = vadd.f32 %v835_v7, %v777_v28 }
 0x3f0   :  { %v837_v52 = vpop.permute.xlu1 %836 }
 0x3f1   :  { %3620 = vtanh.f32 %v4606_v9  ;;  %v4610_v55 = vadd.f32 %v837_v52, %v778_v56 }
 0x3f3   :  { %3622 = vtanh.f32 %v4610_v55 }
 0x3f6   :  { %v843_v58 = vpop.permute.xlu2 %842 }
 0x3f7   :  { %v3621_v44 = vpop.eup %3620  ;;  %v4616_v59 = vadd.f32 %v843_v58, %v781_v16 }
 0x3f8   :  { %882 = vrot.lane.b32.xlu1 %v3621_v44, %s4165_s18  ;;  %v841_v61 = vpop.permute.xlu1 %840 }
 0x3f9   :  { %3624 = vtanh.f32 %v4616_v59  ;;  %v3623_v63 = vpop.eup %3622  ;;  %v4621_v1 = vadd.f32 %v841_v61, %v780_v53 }
 0x3fa   :  { %884 = vrot.lane.b32.xlu0 %v3623_v63, %s4165_s18 }
 0x3fb   :  { %3626 = vtanh.f32 %v4621_v1 }
 0x3ff   :  { %v3625_v43 = vpop.eup %3624 }
 0x400   :  { %890 = vrot.lane.b32.xlu1 %v3625_v43, %s4165_s18  ;;  %v847_v36 = vpop.permute.xlu1 %846 }
 0x401   :  { %v3627_v4 = vpop.eup %3626  ;;  %v4628_v10 = vadd.f32 %v847_v36, %v783_v2 }
 0x402   :  { %888 = vrot.lane.b32.xlu0 %v3627_v4, %s4165_s18 }
 0x403   :  { %3628 = vtanh.f32 %v4628_v10 }
 0x409   :  { %v3629_v62 = vpop.eup %3628  ;;  %v833_v5 = vpop.permute.xlu0 %832 }
 0x40a   :  { %894 = vrot.lane.b32.xlu0 %v3629_v62, %s4165_s18  ;;  %v4635_v34 = vadd.f32 %v833_v5, %v776_v21 }
 0x40c   :  { %3630 = vtanh.f32 %v4635_v34 }
 0x411   :  { %v839_v3 = vpop.permute.xlu0 %838 }
 0x412   :  { %v3631_v14 = vpop.eup %3630  ;;  %v4640_v17 = vadd.f32 %v839_v3, %v779_v40 }
 0x413   :  { %880 = vrot.lane.b32.xlu2 %v3631_v14, %s4165_s18 }
 0x414   :  { %3632 = vtanh.f32 %v4640_v17 }
 0x419   :  { %v845_v15 = vpop.permute.xlu0 %844 }
 0x41a   :  { %v3633_v6 = vpop.eup %3632  ;;  %v4646_v8 = vadd.f32 %v845_v15, %v782_v19 }
 0x41b   :  { %886 = vrot.lane.b32.xlu2 %v3633_v6, %s4165_s18 }
 0x41c   :  { %3634 = vtanh.f32 %v4646_v8 }
 0x422   :  { %v3635_v25 = vpop.eup %3634 }
 0x423   :  { %892 = vrot.lane.b32.xlu2 %v3635_v25, %s4165_s18 }
 0x46a   :  { %v883_v60 = vpop.permute.xlu1 %882 }
 0x46b   :  { %v905_v39 = vmul.f32 %v883_v60, %v4563_v57 }
 0x46c   :  { %v885_v33 = vpop.permute.xlu0 %884 }
 0x46d   :  { %v881_v27 = vpop.permute.xlu2 %880  ;;  %v906_v37 = vmul.f32 %v885_v33, %v4508_v54 }
 0x46e   :  { %v904_v24 = vmul.f32 %v881_v27, %v4577_v46 }
 0x46f   :  { %v922_v28 = vrot.slane %v906_v37, 7 }
 0x470   :  { %v920_v0 = vrot.slane %v904_v24, 1 }
 0x472   :  { %v921_v56 = vsel %vm524_vm3, %v905_v39, %v920_v0  ;;  %v891_v52 = vpop.permute.xlu1 %890 }
 0x473   :  { %v923_v51 = vsel %vm527_vm4, %v922_v28, %v921_v56  ;;  %v909_v46 = vmul.f32 %v891_v52, %v4585_v13 }
 0x474   :  { %v889_v30 = vpop.permute.xlu0 %888 }
 0x475   :  { %v887_v45 = vpop.permute.xlu2 %886  ;;  %v908_v48 = vmul.f32 %v889_v30, %v4528_v12 }
 0x476   :  { %v907_v7 = vmul.f32 %v887_v45, %v4592_v23  ;;  %v928_v23 = vrot.slane %v909_v46, 4 }
 0x477   :  { %v926_v16 = vrot.slane %v908_v48, 5 }
 0x478   :  { %v924_v26 = vrot.slane %v907_v7, 6 }
 0x47a   :  { %v925_v54 = vsel %vm530_vm5, %v924_v26, %v923_v51 }
 0x47b   :  { %v927_v12 = vsel %vm533_vm6, %v926_v16, %v925_v54 }
 0x47c   :  { %v895_v58 = vpop.permute.xlu0 %894  ;;  %v929_v11 = vsel %vm536_vm7, %v928_v23, %v927_v12 }
 0x47d   :  { %v911_v57 = vmul.f32 %v895_v58, %v4552_v35  ;;  %v893_v44 = vpop.permute.xlu2 %892 }
 0x47e   :  { %v910_v53 = vmul.f32 %v893_v44, %v4599_v38 }
 0x47f   :  { %v932_v61 = vrot.slane %v911_v57, 2 }
 0x480   :  { %v930_v63 = vrot.slane %v910_v53, 3 }
 0x482   :  { %v931_v43 = vsel %vm539_vm8, %v930_v63, %v929_v11 }
 0x483   :  { %v933_v2 = vsel %vm542_vm9, %v932_v61, %v931_v43 }
 0x484   :  { %934 = vrot.lane.b32.xlu1 %v933_v2, %s4166_s19 }
 0x4f6   :  { %v935_v13 = vpop.permute.xlu1 %934 }
 0x4f7   :  { %3425 = vmatmul.msk.f32.vlgmr.msrb.gmra.mxu3 %vm171_vm10, %v935_v13 }
 0x57a   :  { %v955_v35 = vpop.f32.mrf.mxu3 }
 0x57b   :  { %v976_v36 = vadd.f32 %v955_v35, %v4256_v32  ;;  %v961_v38 = vrot.slane %v955_v35, 1  ;;  %v960_v4 = vrot.slane %v955_v35, 7  ;;  %v959_v62 = vrot.slane %v955_v35, 6 }
 0x57c   :  { %v963_v5 = vrot.slane %v955_v35, 3  ;;  %v962_v40 = vrot.slane %v955_v35, 2  ;;  %v964_v31 = vrot.slane %v955_v35, 4  ;;  %v965_v33 = vrot.slane %v955_v35, 5 }
 0x57d   :  { %3636 = vtanh.f32 %v976_v36  ;;  %v977_v50 = vadd.f32 %v961_v38, %v4265_v42  ;;  %v975_v21 = vadd.f32 %v960_v4, %v4247_v20  ;;  %v974_v47 = vadd.f32 %v959_v62, %v4245_v18 }
 0x57e   :  { %v979_v14 = vadd.f32 %v963_v5, %v4254_v29  ;;  %v978_v15 = vadd.f32 %v962_v40, %v4249_v22  ;;  %v980_v25 = vadd.f32 %v964_v31, %v4263_v41  ;;  %v981_v24 = vadd.f32 %v965_v33, %v4268_v49 }
 0x57f   :  { %3638 = vtanh.f32 %v977_v50  ;;  %v3428_v39 = vmul.f32 -1.442695, %v976_v36  ;;  %v3426_v45 = vmul.f32 -1.442695, %v974_v47  ;;  %v3429_v46 = vmul.f32 -1.442695, %v977_v50 }
 0x580   :  { %3640 = vtanh.f32 %v975_v21  ;;  %v3432_v7 = vmul.f32 -1.442695, %v980_v25  ;;  %v3427_v54 = vmul.f32 -1.442695, %v975_v21  ;;  %v3431_v23 = vmul.f32 -1.442695, %v979_v14 }
 0x581   :  { %3642 = vtanh.f32 %v974_v47  ;;  %v3430_v63 = vmul.f32 -1.442695, %v978_v15  ;;  %v3433_v40 = vmul.f32 -1.442695, %v981_v24 }
 0x582   :  { %3644 = vtanh.f32 %v979_v14 }
 0x583   :  { %v3637_v3 = vpop.eup %3636  ;;  %3646 = vtanh.f32 %v978_v15 }
 0x584   :  { %1186 = vrot.lane.b32.xlu2 %v3637_v3, %s4163_s3  ;;  %3648 = vtanh.f32 %v980_v25 }
 0x585   :  { %v3639_v19 = vpop.eup %3638  ;;  %3650 = vtanh.f32 %v981_v24 }
 0x586   :  { %1188 = vrot.lane.b32.xlu1 %v3639_v19, %s4163_s3  ;;  %v3641_v6 = vpop.eup %3640  ;;  %3652 = vpow2.f32 %v3428_v39 }
 0x587   :  { %1184 = vrot.lane.b32.xlu0 %v3641_v6, %s4163_s3  ;;  %v3643_v27 = vpop.eup %3642  ;;  %3654 = vpow2.f32 %v3426_v45 }
 0x588   :  { %v3645_v60 = vpop.eup %3644 }
 0x589   :  { %v3647_v37 = vpop.eup %3646 }
 0x58a   :  { %v3649_v0 = vpop.eup %3648 }
 0x58b   :  { %v3651_v30 = vpop.eup %3650 }
 0x58c   :  { %1182 = vrot.lane.b32.xlu2 %v3643_v27, %s4163_s3  ;;  %v3653_v28 = vpop.eup %3652 }
 0x58d   :  { %v1008_v48 = vadd.f32 1.0, %v3653_v28  ;;  %v3655_v56 = vpop.eup %3654 }
 0x58e   :  { %1192 = vrot.lane.b32.xlu1 %v3645_v60, %s4163_s3  ;;  %v1006_v52 = vadd.f32 1.0, %v3655_v56 }
 0x58f   :  { %1190 = vrot.lane.b32.xlu0 %v3647_v37, %s4163_s3  ;;  %3656 = vrcp.f32 %v1008_v48  ;;  %v1055_v35 = vand.u32 2147483648, %v1008_v48  ;;  %vm1049_vm1 = vweird.f32 %v1008_v48  ;;  %v1053_v36 = vand.u32 2147483647, %v1008_v48 }
 0x590   :  { %3658 = vpow2.f32 %v3432_v7  ;;  %v1025_v25 = vand.u32 2147483648, %v1006_v52  ;;  %vm1019_vm13 = vweird.f32 %v1006_v52  ;;  %v1023_v33 = vand.u32 2147483647, %v1006_v52 }
 0x591   :  { %3660 = vrcp.f32 %v1006_v52  ;;  %v1056_v5 = vor.u32 1.1754944e-38, %v1055_v35  ;;  %vm1054_vm11 = vcmp.eq.f32.partialorder %v1053_v36, 8.507059e+37 }
 0x592   :  { %3662 = vpow2.f32 %v3429_v46  ;;  %v1026_v39 = vor.u32 1.1754944e-38, %v1025_v25 }
 0x593   :  { %3664 = vpow2.f32 %v3427_v54 }
 0x594   :  { %1194 = vrot.lane.b32.xlu2 %v3649_v0, %s4163_s3 }
 0x595   :  { %v3657_v26 = vpop.eup %3656 }
 0x596   :  { %v3659_v16 = vpop.eup %3658  ;;  %v1045_v51 = vmul.f32 %v3657_v26, %v1008_v48  ;;  %vm1050_vm15 = vweird.f32 %v3657_v26 }
 0x597   :  { %1196 = vrot.lane.b32.xlu0 %v3651_v30, %s4163_s3  ;;  %v4684_v58 = vadd.f32 1.0, %v3659_v16  ;;  %v3661_v44 = vpop.eup %3660  ;;  %vm1051_vm2 = vmor %vm1049_vm1, %vm1050_vm15  ;;  %vm1024_vm15 = vcmp.eq.f32.partialorder %v1023_v33, 8.507059e+37 }
 0x598   :  { %v1046_v57 = vsub.f32 1.0, %v1045_v51  ;;  %v1015_v12 = vmul.f32 %v3661_v44, %v1006_v52  ;;  %v3663_v61 = vpop.eup %3662  ;;  %vm1020_vm12 = vweird.f32 %v3661_v44 }
 0x599   :  { %3666 = vrcp.f32 %v4684_v58  ;;  %v3665_v11 = vpop.eup %3664  ;;  %v4689_v38 = vadd.f32 1.0, %v3663_v61  ;;  %vm1021_vm14 = vmor %vm1019_vm13, %vm1020_vm12  ;;  %v1113_v51 = vand.u32 2147483647, %v4684_v58 }
 0x59a   :  { %v1047_v53 = vmul.f32 %v3657_v26, %v1046_v57  ;;  %v1016_v2 = vsub.f32 1.0, %v1015_v12  ;;  %3668 = vpow2.f32 %v3431_v23  ;;  %v4691_v4 = vadd.f32 1.0, %v3665_v11 }
 0x59b   :  { %3670 = vpow2.f32 %v3430_v63  ;;  %vm1114_vm12 = vcmp.eq.f32.partialorder %v1113_v51, 8.507059e+37 }
 0x59c   :  { %v1048_v43 = vadd.f32 %v3657_v26, %v1047_v53  ;;  %v1017_v62 = vmul.f32 %v3661_v44, %v1016_v2  ;;  %3672 = vrcp.f32 %v4689_v38 }
 0x59d   :  { %3674 = vrcp.f32 %v4691_v4 }
 0x59e   :  { %v1052_v50 = vsel %vm1051_vm2, %v3657_v26, %v1048_v43  ;;  %v1018_v19 = vadd.f32 %v3661_v44, %v1017_v62  ;;  %3676 = vpow2.f32 %v3433_v40  ;;  %v1115_v26 = vand.u32 2147483648, %v4684_v58 }
 0x59f   :  { %v4687_v13 = vpop.eup %3666  ;;  %v4696_v14 = vsel %vm1054_vm11, %v1056_v5, %v1052_v50  ;;  %vm1109_vm2 = vweird.f32 %v4684_v58  ;;  %v1070_v50 = vand.u32 2147483648, %v4689_v38  ;;  %v1068_v62 = vand.u32 2147483647, %v4689_v38 }
 0x5a0   :  { %v1105_v21 = vmul.f32 %v4687_v13, %v4684_v58  ;;  %v3669_v47 = vpop.eup %3668  ;;  %v1022_v24 = vsel %vm1021_vm14, %v3661_v44, %v1018_v19  ;;  %vm1110_vm1 = vweird.f32 %v4687_v13  ;;  %v1116_v53 = vor.u32 1.1754944e-38, %v1115_v26 }
 0x5a1   :  { %v3671_v6 = vpop.eup %3670  ;;  %v4701_v27 = vadd.f32 1.0, %v3669_v47  ;;  %v4711_v28 = vsel %vm1024_vm15, %v1026_v39, %v1022_v24  ;;  %vm1111_vm11 = vmor %vm1109_vm2, %vm1110_vm1  ;;  %vm1064_vm14 = vweird.f32 %v4689_v38  ;;  %v1040_v40 = vand.u32 2147483648, %v4691_v4 }
 0x5a2   :  { %v1106_v15 = vsub.f32 1.0, %v1105_v21  ;;  %v4703_v60 = vpop.eup %3672  ;;  %v4706_v0 = vadd.f32 1.0, %v3671_v6  ;;  %vm1034_vm2 = vweird.f32 %v4691_v4 }
 0x5a3   :  { %v4708_v30 = vpop.eup %3674  ;;  %3678 = vrcp.f32 %v4701_v27  ;;  %v1060_v48 = vmul.f32 %v4703_v60, %v4689_v38  ;;  %vm1065_vm13 = vweird.f32 %v4703_v60 }
 0x5a4   :  { %v1107_v37 = vmul.f32 %v4687_v13, %v1106_v15  ;;  %3680 = vrcp.f32 %v4706_v0  ;;  %v3677_v52 = vpop.eup %3676  ;;  %v1030_v16 = vmul.f32 %v4708_v30, %v4691_v4  ;;  %vm1035_vm15 = vweird.f32 %v4708_v30  ;;  %vm1066_vm1 = vmor %vm1064_vm14, %vm1065_vm13 }
 0x5a5   :  { %v1061_v46 = vsub.f32 1.0, %v1060_v48  ;;  %v4728_v44 = vadd.f32 1.0, %v3677_v52  ;;  %v1071_v15 = vor.u32 1.1754944e-38, %v1070_v50  ;;  %v1100_v48 = vand.u32 2147483648, %v4701_v27 }
 0x5a6   :  { %v1108_v56 = vadd.f32 %v4687_v13, %v1107_v37  ;;  %v1031_v12 = vsub.f32 1.0, %v1030_v16  ;;  %v1041_v37 = vor.u32 1.1754944e-38, %v1040_v40  ;;  %v1085_v26 = vand.u32 2147483648, %v4706_v0 }
 0x5a7   :  { %v1062_v11 = vmul.f32 %v4703_v60, %v1061_v46  ;;  %3682 = vrcp.f32 %v4728_v44  ;;  %v1101_v51 = vor.u32 1.1754944e-38, %v1100_v48 }
 0x5a8   :  { %v1112_v57 = vsel %vm1111_vm11, %v4687_v13, %v1108_v56  ;;  %v1032_v2 = vmul.f32 %v4708_v30, %v1031_v12  ;;  %vm1036_vm11 = vmor %vm1034_vm2, %vm1035_vm15  ;;  %vm1094_vm15 = vweird.f32 %v4701_v27 }
 0x5a9   :  { %v4725_v54 = vpop.eup %3678  ;;  %v4732_v61 = vsel %vm1114_vm12, %v1116_v53, %v1112_v57  ;;  %v1063_v35 = vadd.f32 %v4703_v60, %v1062_v11  ;;  %vm1069_vm12 = vcmp.eq.f32.partialorder %v1068_v62, 8.507059e+37 }
 0x5aa   :  { %v4730_v23 = vpop.eup %3680  ;;  %v1090_v58 = vmul.f32 %v4725_v54, %v4701_v27  ;;  %v1033_v21 = vadd.f32 %v4708_v30, %v1032_v2  ;;  %vm1095_vm14 = vweird.f32 %v4725_v54  ;;  %v1130_v2 = vand.u32 2147483648, %v4728_v44 }
 0x5ab   :  { %v1075_v13 = vmul.f32 %v4730_v23, %v4706_v0  ;;  %vm1096_vm2 = vmor %vm1094_vm15, %vm1095_vm14 }
 0x5ac   :  { %v1091_v36 = vsub.f32 1.0, %v1090_v58  ;;  %v1037_v38 = vsel %vm1036_vm11, %v4708_v30, %v1033_v21  ;;  %v1098_v30 = vand.u32 2147483647, %v4701_v27  ;;  %vm1079_vm11 = vweird.f32 %v4706_v0 }
 0x5ad   :  { %v1076_v5 = vsub.f32 1.0, %v1075_v13  ;;  %v3683_v47 = vpop.eup %3682  ;;  %v1083_v27 = vand.u32 2147483647, %v4706_v0  ;;  %v1152_v21 = vrot.slane %v4610_v55, 7 }
 0x5ae   :  { %v1092_v19 = vmul.f32 %v4725_v54, %v1091_v36  ;;  %v1120_v25 = vmul.f32 %v3683_v47, %v4728_v44  ;;  %vm1125_vm15 = vweird.f32 %v3683_v47 }
 0x5af   :  { %v1077_v6 = vmul.f32 %v4730_v23, %v1076_v5  ;;  %vm1084_vm14 = vcmp.eq.f32.partialorder %v1083_v27, 8.507059e+37  ;;  %v1168_v5 = vmul.f32 %v1152_v21, %v4696_v14 }
 0x5b0   :  { %v1121_v52 = vsub.f32 1.0, %v1120_v25 }
 0x5b1   :  { %v1078_v56 = vadd.f32 %v4730_v23, %v1077_v6 }
 0x5b2   :  { %v1122_v57 = vmul.f32 %v3683_v47, %v1121_v52 }
 0x5b4   :  { %v1123_v0 = vadd.f32 %v3683_v47, %v1122_v57 }
 0x5de   :  { %v1187_v3 = vpop.permute.xlu2 %1186 }
 0x5df   :  { %v1208_v31 = vmul.f32 %v1187_v3, %v4696_v14  ;;  %v1067_v3 = vsel %vm1066_vm1, %v4703_v60, %v1063_v35  ;;  %vm1080_vm1 = vweird.f32 %v4730_v23  ;;  %v1131_v35 = vor.u32 1.1754944e-38, %v1130_v2 }
 0x5e0   :  { %v4758_v24 = vsel %vm1069_vm12, %v1071_v15, %v1067_v3  ;;  %vm1081_vm12 = vmor %vm1079_vm11, %vm1080_vm1  ;;  %vm1124_vm1 = vweird.f32 %v4728_v44 }
 0x5e1   :  { %1226 = vrot.lane.b32.xlu1 %v1208_v31, %s4164_s17  ;;  %v1038_v31 = vand.u32 2147483647, %v4691_v4  ;;  %v1093_v4 = vadd.f32 %v4725_v54, %v1092_v19  ;;  %v1082_v46 = vsel %vm1081_vm12, %v4730_v23, %v1078_v56  ;;  %v1128_v23 = vand.u32 2147483647, %v4728_v44 }
 0x5e2   :  { %v1151_v44 = vrot.slane %v4606_v9, 7 }
 0x5e3   :  { %vm1039_vm13 = vcmp.eq.f32.partialorder %v1038_v31, 8.507059e+37  ;;  %v1097_v16 = vsel %vm1096_vm2, %v4725_v54, %v1093_v4  ;;  %vm1126_vm2 = vmor %vm1124_vm1, %vm1125_vm15  ;;  %vm1129_vm11 = vcmp.eq.f32.partialorder %v1128_v23, 8.507059e+37  ;;  %v1150_v31 = vrot.slane %v4635_v34, 7 }
 0x5e4   :  { %v1127_v13 = vsel %vm1126_vm2, %v3683_v47, %v1123_v0  ;;  %v1156_v34 = vrot.slane %v4646_v8, 7 }
 0x5e5   :  { %v4789_v36 = vsel %vm1129_vm11, %v1131_v35, %v1127_v13 }
 0x5e6   :  { %v1183_v45 = vpop.permute.xlu2 %1182 }
 0x5e7   :  { %v1206_v7 = vmul.f32 %v1183_v45, %v4711_v28  ;;  %v4763_v45 = vsel %vm1039_vm13, %v1041_v37, %v1037_v38  ;;  %vm1099_vm13 = vcmp.eq.f32.partialorder %v1098_v30, 8.507059e+37  ;;  %v1166_v38 = vmul.f32 %v1150_v31, %v4711_v28 }
 0x5e8   :  { %v4778_v53 = vsel %vm1099_vm13, %v1101_v51, %v1097_v16  ;;  %v1167_v47 = vmul.f32 %v1151_v44, %v4763_v45  ;;  %v1153_v16 = vrot.slane %v4640_v17, 7 }
 0x5e9   :  { %1222 = vrot.lane.b32.xlu1 %v1206_v7, %s4164_s17 }
 0x5ea   :  { %v1169_v51 = vmul.f32 %v1153_v16, %v4758_v24 }
 0x5ee   :  { %v1195_v63 = vpop.permute.xlu2 %1194 }
 0x5ef   :  { %v1212_v43 = vmul.f32 %v1195_v63, %v4732_v61  ;;  %v1086_v63 = vor.u32 1.1754944e-38, %v1085_v26 }
 0x5f1   :  { %1234 = vrot.lane.b32.xlu1 %v1212_v43, %s4164_s17  ;;  %v4781_v58 = vsel %vm1084_vm14, %v1086_v63, %v1082_v46 }
 0x5f8   :  { %v1189_v33 = vpop.permute.xlu1 %1188 }
 0x5f9   :  { %v1209_v60 = vmul.f32 %v1189_v33, %v4758_v24  ;;  %v1185_v39 = vpop.permute.xlu0 %1184  ;;  %v1154_v33 = vrot.slane %v4621_v1, 7 }
 0x5fa   :  { %v1207_v7 = vmul.f32 %v1185_v39, %v4763_v45  ;;  %v1172_v39 = vmul.f32 %v1156_v34, %v4732_v61 }
 0x5fb   :  { %1228 = vrot.lane.b32.xlu0 %v1209_v60, %s4164_s17  ;;  %v1170_v9 = vmul.f32 %v1154_v33, %v4781_v58 }
 0x5fc   :  { %1224 = vrot.lane.b32.xlu2 %v1207_v7, %s4164_s17  ;;  %v1157_v7 = vrot.slane %v4628_v10, 7 }
 0x5fe   :  { %v1173_v8 = vmul.f32 %v1157_v7, %v4789_v36 }
 0x600   :  { %v1193_v12 = vpop.permute.xlu1 %1192 }
 0x601   :  { %v1211_v11 = vmul.f32 %v1193_v12, %v4778_v53  ;;  %v1191_v54 = vpop.permute.xlu0 %1190  ;;  %v1155_v12 = vrot.slane %v4616_v59, 7 }
 0x602   :  { %v1210_v43 = vmul.f32 %v1191_v54, %v4781_v58 }
 0x603   :  { %1232 = vrot.lane.b32.xlu0 %v1211_v11, %s4164_s17  ;;  %v1171_v63 = vmul.f32 %v1155_v12, %v4778_v53 }
 0x604   :  { %1230 = vrot.lane.b32.xlu2 %v1210_v43, %s4164_s17 }
 0x609   :  { %v1197_v50 = vpop.permute.xlu0 %1196 }
 0x60a   :  { %v1213_v62 = vmul.f32 %v1197_v50, %v4789_v36 }
 0x60c   :  { %1236 = vrot.lane.b32.xlu2 %v1213_v62, %s4164_s17 }
 0x653   :  { %v1227_v40 = vpop.permute.xlu1 %1226 }
 0x654   :  { %v4795_v3 = vadd.f32 %v1227_v40, %v1168_v5 }
 0x656   :  { %3684 = vtanh.f32 %v4795_v3  ;;  %v1225_v19 = vpop.permute.xlu2 %1224 }
 0x657   :  { %v4801_v15 = vadd.f32 %v1225_v19, %v1167_v47 }
 0x659   :  { %3686 = vtanh.f32 %v4801_v15 }
 0x65b   :  { %v1223_v55 = vpop.permute.xlu1 %1222 }
 0x65c   :  { %v3685_v6 = vpop.eup %3684  ;;  %v4805_v25 = vadd.f32 %v1223_v55, %v1166_v38 }
 0x65d   :  { %1274 = vrot.lane.b32.xlu0 %v3685_v6, %s4165_s18 }
 0x65e   :  { %3688 = vtanh.f32 %v4805_v25  ;;  %v1231_v37 = vpop.permute.xlu2 %1230 }
 0x65f   :  { %v3687_v60 = vpop.eup %3686  ;;  %v4812_v4 = vadd.f32 %v1231_v37, %v1170_v9 }
 0x660   :  { %1272 = vrot.lane.b32.xlu1 %v3687_v60, %s4165_s18 }
 0x661   :  { %3690 = vtanh.f32 %v4812_v4 }
 0x663   :  { %v1235_v30 = vpop.permute.xlu1 %1234 }
 0x664   :  { %v3689_v1 = vpop.eup %3688  ;;  %v4817_v48 = vadd.f32 %v1235_v30, %v1172_v39 }
 0x665   :  { %1270 = vrot.lane.b32.xlu0 %v3689_v1, %s4165_s18 }
 0x666   :  { %3692 = vtanh.f32 %v4817_v48  ;;  %v1237_v56 = vpop.permute.xlu2 %1236 }
 0x667   :  { %v3691_v52 = vpop.eup %3690  ;;  %v4823_v26 = vadd.f32 %v1237_v56, %v1173_v8 }
 0x668   :  { %1278 = vrot.lane.b32.xlu1 %v3691_v52, %s4165_s18 }
 0x669   :  { %3694 = vtanh.f32 %v4823_v26 }
 0x66c   :  { %v3693_v27 = vpop.eup %3692 }
 0x66d   :  { %1282 = vrot.lane.b32.xlu0 %v3693_v27, %s4165_s18  ;;  %v1229_v10 = vpop.permute.xlu0 %1228 }
 0x66e   :  { %v4830_v46 = vadd.f32 %v1229_v10, %v1169_v51 }
 0x66f   :  { %v3695_v57 = vpop.eup %3694 }
 0x670   :  { %3696 = vtanh.f32 %v4830_v46  ;;  %1284 = vrot.lane.b32.xlu1 %v3695_v57, %s4165_s18 }
 0x675   :  { %v1233_v17 = vpop.permute.xlu0 %1232 }
 0x676   :  { %v3697_v11 = vpop.eup %3696  ;;  %v4836_v54 = vadd.f32 %v1233_v17, %v1171_v63 }
 0x677   :  { %1276 = vrot.lane.b32.xlu2 %v3697_v11, %s4165_s18 }
 0x678   :  { %3698 = vtanh.f32 %v4836_v54 }
 0x67e   :  { %v3699_v43 = vpop.eup %3698 }
 0x67f   :  { %1280 = vrot.lane.b32.xlu2 %v3699_v43, %s4165_s18 }
 0x6cf   :  { %v1275_v0 = vpop.permute.xlu0 %1274 }
 0x6d0   :  { %v1296_v5 = vmul.f32 %v1275_v0, %v4696_v14 }
 0x6d1   :  { %v1277_v2 = vpop.permute.xlu2 %1276 }
 0x6d2   :  { %v1273_v23 = vpop.permute.xlu1 %1272  ;;  %v1297_v50 = vmul.f32 %v1277_v2, %v4758_v24 }
 0x6d3   :  { %v1295_v13 = vmul.f32 %v1273_v23, %v4763_v45 }
 0x6d4   :  { %v1314_v31 = vrot.slane %v1297_v50, 7 }
 0x6d5   :  { %v1311_v62 = vrot.slane %v1295_v13, 1 }
 0x6d7   :  { %v1271_v35 = vpop.permute.xlu0 %1270 }
 0x6d8   :  { %v1294_v59 = vmul.f32 %v1271_v35, %v4711_v28 }
 0x6d9   :  { %v1281_v44 = vpop.permute.xlu2 %1280 }
 0x6da   :  { %v1310_v21 = vrot.slane %v1294_v59, 2  ;;  %v1279_v47 = vpop.permute.xlu1 %1278  ;;  %v1299_v45 = vmul.f32 %v1281_v44, %v4778_v53 }
 0x6db   :  { %v1298_v38 = vmul.f32 %v1279_v47, %v4781_v58 }
 0x6dc   :  { %v1312_v40 = vsel %vm524_vm3, %v1311_v62, %v1310_v21  ;;  %v1318_v9 = vrot.slane %v1299_v45, 5 }
 0x6dd   :  { %v1313_v19 = vsel %vm527_vm4, %v1296_v5, %v1312_v40  ;;  %v1316_v28 = vrot.slane %v1298_v38, 6 }
 0x6de   :  { %v1315_v55 = vsel %vm530_vm5, %v1314_v31, %v1313_v19 }
 0x6df   :  { %v1283_v6 = vpop.permute.xlu0 %1282  ;;  %v1317_v33 = vsel %vm533_vm6, %v1316_v28, %v1315_v55 }
 0x6e0   :  { %v1300_v24 = vmul.f32 %v1283_v6, %v4732_v61  ;;  %v1319_v60 = vsel %vm536_vm7, %v1318_v9, %v1317_v33 }
 0x6e2   :  { %v1320_v14 = vrot.slane %v1300_v24, 4  ;;  %v1285_v34 = vpop.permute.xlu1 %1284 }
 0x6e3   :  { %v1301_v37 = vmul.f32 %v1285_v34, %v4789_v36 }
 0x6e4   :  { %v1321_v39 = vsel %vm539_vm8, %v1320_v14, %v1319_v60 }
 0x6e5   :  { %v1322_v58 = vrot.slane %v1301_v37, 3 }
 0x6e7   :  { %v1323_v53 = vsel %vm542_vm9, %v1322_v58, %v1321_v39 }
 0x6e8   :  { %1324 = vrot.lane.b32.xlu2 %v1323_v53, %s4166_s19 }
 0x742   :  { %v1325_v30 = vpop.permute.xlu2 %1324 }
 0x743   :  { %3434 = vmatmul.msk.f32.vlgmr.msra.gmra.mxu1 %vm171_vm10, %v1325_v30 }
 0x7c0   :  { %v1345_v61 = vpop.f32.mrf.mxu1 }
 0x7c1   :  { %v1367_v1 = vadd.f32 %v1345_v61, %v4265_v42  ;;  %v1351_v7 = vrot.slane %v1345_v61, 7  ;;  %v1349_v8 = vrot.slane %v1345_v61, 5  ;;  %v1350_v52 = vrot.slane %v1345_v61, 6 }
 0x7c2   :  { %v1353_v16 = vrot.slane %v1345_v61, 2  ;;  %v1352_v27 = vrot.slane %v1345_v61, 1  ;;  %v1355_v17 = vrot.slane %v1345_v61, 4  ;;  %v1354_v43 = vrot.slane %v1345_v61, 3 }
 0x7c3   :  { %3700 = vtanh.f32 %v1367_v1  ;;  %v1366_v36 = vadd.f32 %v1351_v7, %v4256_v32  ;;  %v1364_v56 = vadd.f32 %v1349_v8, %v4245_v18  ;;  %v1365_v51 = vadd.f32 %v1350_v52, %v4247_v20 }
 0x7c4   :  { %v1369_v57 = vadd.f32 %v1353_v16, %v4254_v29  ;;  %v1368_v12 = vadd.f32 %v1352_v27, %v4249_v22  ;;  %v1371_v0 = vadd.f32 %v1355_v17, %v4268_v49  ;;  %v1370_v23 = vadd.f32 %v1354_v43, %v4263_v41 }
 0x7c5   :  { %3702 = vtanh.f32 %v1366_v36  ;;  %v3437_v62 = vmul.f32 -1.442695, %v1366_v36  ;;  %v3438_v31 = vmul.f32 -1.442695, %v1367_v1  ;;  %v3435_v38 = vmul.f32 -1.442695, %v1364_v56 }
 0x7c6   :  { %3704 = vtanh.f32 %v1364_v56  ;;  %v3440_v21 = vmul.f32 -1.442695, %v1369_v57  ;;  %v3436_v55 = vmul.f32 -1.442695, %v1365_v51  ;;  %v3439_v33 = vmul.f32 -1.442695, %v1368_v12 }
 0x7c7   :  { %3706 = vtanh.f32 %v1365_v51  ;;  %v3442_v60 = vmul.f32 -1.442695, %v1371_v0  ;;  %v3441_v7 = vmul.f32 -1.442695, %v1370_v23 }
 0x7c8   :  { %3708 = vtanh.f32 %v1369_v57 }
 0x7c9   :  { %v3701_v10 = vpop.eup %3700  ;;  %3710 = vtanh.f32 %v1368_v12 }
 0x7ca   :  { %1578 = vrot.lane.b32.xlu1 %v3701_v10, %s4163_s3  ;;  %3712 = vtanh.f32 %v1371_v0 }
 0x7cb   :  { %v3703_v63 = vpop.eup %3702  ;;  %3714 = vtanh.f32 %v1370_v23 }
 0x7cc   :  { %v3705_v11 = vpop.eup %3704  ;;  %1576 = vrot.lane.b32.xlu2 %v3703_v63, %s4163_s3  ;;  %3716 = vpow2.f32 %v3437_v62 }
 0x7cd   :  { %1572 = vrot.lane.b32.xlu0 %v3705_v11, %s4163_s3  ;;  %v3707_v2 = vpop.eup %3706  ;;  %3718 = vpow2.f32 %v3440_v21 }
 0x7ce   :  { %v3709_v13 = vpop.eup %3708 }
 0x7cf   :  { %v3711_v35 = vpop.eup %3710 }
 0x7d0   :  { %v3713_v59 = vpop.eup %3712 }
 0x7d1   :  { %v3715_v50 = vpop.eup %3714 }
 0x7d2   :  { %1574 = vrot.lane.b32.xlu1 %v3707_v2, %s4163_s3  ;;  %v3717_v5 = vpop.eup %3716 }
 0x7d3   :  { %v1398_v40 = vadd.f32 1.0, %v3717_v5  ;;  %v3719_v44 = vpop.eup %3718 }
 0x7d4   :  { %1582 = vrot.lane.b32.xlu2 %v3709_v13, %s4163_s3  ;;  %v1401_v47 = vadd.f32 1.0, %v3719_v44 }
 0x7d5   :  { %1580 = vrot.lane.b32.xlu0 %v3711_v35, %s4163_s3  ;;  %3720 = vrcp.f32 %v1398_v40  ;;  %v1445_v30 = vand.u32 2147483648, %v1398_v40  ;;  %vm1439_vm13 = vweird.f32 %v1398_v40  ;;  %v1443_v1 = vand.u32 2147483647, %v1398_v40 }
 0x7d6   :  { %3722 = vrcp.f32 %v1401_v47  ;;  %v1490_v11 = vand.u32 2147483648, %v1401_v47  ;;  %vm1484_vm2 = vweird.f32 %v1401_v47  ;;  %v1488_v0 = vand.u32 2147483647, %v1401_v47 }
 0x7d7   :  { %3724 = vpow2.f32 %v3438_v31  ;;  %v1446_v52 = vor.u32 1.1754944e-38, %v1445_v30  ;;  %vm1444_vm15 = vcmp.eq.f32.partialorder %v1443_v1, 8.507059e+37 }
 0x7d8   :  { %3726 = vpow2.f32 %v3435_v38  ;;  %v1491_v35 = vor.u32 1.1754944e-38, %v1490_v11 }
 0x7d9   :  { %3728 = vpow2.f32 %v3436_v55 }
 0x7da   :  { %1586 = vrot.lane.b32.xlu1 %v3713_v59, %s4163_s3  ;;  %3730 = vpow2.f32 %v3439_v33 }
 0x7db   :  { %v3721_v19 = vpop.eup %3720 }
 0x7dc   :  { %v1435_v45 = vmul.f32 %v3721_v19, %v1398_v40  ;;  %v3723_v6 = vpop.eup %3722  ;;  %vm1440_vm12 = vweird.f32 %v3721_v19 }
 0x7dd   :  { %1584 = vrot.lane.b32.xlu0 %v3715_v50, %s4163_s3  ;;  %v3725_v24 = vpop.eup %3724  ;;  %v1480_v9 = vmul.f32 %v3723_v6, %v1401_v47  ;;  %vm1441_vm14 = vmor %vm1439_vm13, %vm1440_vm12  ;;  %vm1485_vm1 = vweird.f32 %v3723_v6  ;;  %vm1489_vm12 = vcmp.eq.f32.partialorder %v1488_v0, 8.507059e+37 }
 0x7de   :  { %v1436_v28 = vsub.f32 1.0, %v1435_v45  ;;  %v3727_v34 = vpop.eup %3726  ;;  %v4874_v37 = vadd.f32 1.0, %v3725_v24  ;;  %vm1486_vm11 = vmor %vm1484_vm2, %vm1485_vm1 }
 0x7df   :  { %v1481_v58 = vsub.f32 1.0, %v1480_v9  ;;  %v4876_v53 = vadd.f32 1.0, %v3727_v34  ;;  %v3729_v61 = vpop.eup %3728 }
 0x7e0   :  { %v1437_v14 = vmul.f32 %v3721_v19, %v1436_v28  ;;  %3732 = vrcp.f32 %v4874_v37  ;;  %v3731_v56 = vpop.eup %3730  ;;  %v4880_v16 = vadd.f32 1.0, %v3729_v61  ;;  %v1458_v9 = vand.u32 2147483647, %v4874_v37 }
 0x7e1   :  { %3734 = vpow2.f32 %v3442_v60  ;;  %v1482_v36 = vmul.f32 %v3723_v6, %v1481_v58  ;;  %v4887_v63 = vadd.f32 1.0, %v3731_v56  ;;  %v1415_v34 = vand.u32 2147483648, %v4876_v53 }
 0x7e2   :  { %v1438_v39 = vadd.f32 %v3721_v19, %v1437_v14  ;;  %3736 = vrcp.f32 %v4876_v53  ;;  %v1460_v14 = vand.u32 2147483648, %v4874_v37  ;;  %vm1409_vm2 = vweird.f32 %v4876_v53 }
 0x7e3   :  { %3738 = vpow2.f32 %v3441_v7  ;;  %v1483_v12 = vadd.f32 %v3723_v6, %v1482_v36  ;;  %v1416_v36 = vor.u32 1.1754944e-38, %v1415_v34  ;;  %v1430_v11 = vand.u32 2147483648, %v4880_v16 }
 0x7e4   :  { %v1442_v8 = vsel %vm1441_vm14, %v3721_v19, %v1438_v39  ;;  %3740 = vrcp.f32 %v4880_v16  ;;  %vm1454_vm14 = vweird.f32 %v4874_v37  ;;  %v1461_v7 = vor.u32 1.1754944e-38, %v1460_v14 }
 0x7e5   :  { %v4884_v10 = vsel %vm1444_vm15, %v1446_v52, %v1442_v8  ;;  %v1487_v23 = vsel %vm1486_vm11, %v3723_v6, %v1483_v12  ;;  %3742 = vrcp.f32 %v4887_v63  ;;  %v1413_v8 = vand.u32 2147483647, %v4876_v53 }
 0x7e6   :  { %v4882_v27 = vpop.eup %3732  ;;  %v4902_v5 = vsel %vm1489_vm12, %v1491_v35, %v1487_v23  ;;  %vm1459_vm11 = vcmp.eq.f32.partialorder %v1458_v9, 8.507059e+37 }
 0x7e7   :  { %v3735_v17 = vpop.eup %3734  ;;  %v1450_v2 = vmul.f32 %v4882_v27, %v4874_v37  ;;  %vm1455_vm13 = vweird.f32 %v4882_v27 }
 0x7e8   :  { %v4890_v43 = vpop.eup %3736  ;;  %v4898_v50 = vadd.f32 1.0, %v3735_v17  ;;  %vm4926_vm15 = vmor %vm1454_vm14, %vm1455_vm13  ;;  %vm1414_vm14 = vcmp.eq.f32.partialorder %v1413_v8, 8.507059e+37 }
 0x7e9   :  { %v3739_v13 = vpop.eup %3738  ;;  %v1405_v59 = vmul.f32 %v4890_v43, %v4876_v53  ;;  %v1451_v62 = vsub.f32 1.0, %v1450_v2  ;;  %vm1410_vm1 = vweird.f32 %v4890_v43 }
 0x7ea   :  { %v4900_v21 = vpop.eup %3740  ;;  %v4905_v47 = vadd.f32 1.0, %v3739_v13  ;;  %3744 = vrcp.f32 %v4898_v50  ;;  %vm1411_vm12 = vmor %vm1409_vm2, %vm1410_vm1 }
 0x7eb   :  { %v1406_v31 = vsub.f32 1.0, %v1405_v59  ;;  %v4908_v19 = vpop.eup %3742  ;;  %v1452_v38 = vmul.f32 %v4882_v27, %v1451_v62  ;;  %v1420_v45 = vmul.f32 %v4900_v21, %v4880_v16  ;;  %vm1425_vm13 = vweird.f32 %v4900_v21 }
 0x7ec   :  { %3746 = vrcp.f32 %v4905_v47  ;;  %v1465_v28 = vmul.f32 %v4908_v19, %v4887_v63  ;;  %vm1470_vm2 = vweird.f32 %v4908_v19  ;;  %v1475_v62 = vand.u32 2147483648, %v4887_v63 }
 0x7ed   :  { %v1407_v55 = vmul.f32 %v4890_v43, %v1406_v31  ;;  %v1453_v6 = vadd.f32 %v4882_v27, %v1452_v38  ;;  %v1421_v24 = vsub.f32 1.0, %v1420_v45 }
 0x7ee   :  { %v1466_v58 = vsub.f32 1.0, %v1465_v28  ;;  %v1476_v28 = vor.u32 1.1754944e-38, %v1475_v62 }
 0x7ef   :  { %v1408_v39 = vadd.f32 %v4890_v43, %v1407_v55  ;;  %v1457_v61 = vsel %vm4926_vm15, %v4882_v27, %v1453_v6  ;;  %v1422_v1 = vmul.f32 %v4900_v21, %v1421_v24  ;;  %vm1424_vm15 = vweird.f32 %v4880_v16 }
 0x7f0   :  { %v4920_v33 = vpop.eup %3744  ;;  %v4942_v52 = vsel %vm1459_vm11, %v1461_v7, %v1457_v61  ;;  %v1467_v27 = vmul.f32 %v4908_v19, %v1466_v58  ;;  %vm1426_vm1 = vmor %vm1424_vm15, %vm1425_vm13  ;;  %vm1469_vm11 = vweird.f32 %v4887_v63  ;;  %v1520_v24 = vand.u32 2147483648, %v4898_v50 }
 0x7f1   :  { %v1510_v37 = vmul.f32 %v4920_v33, %v4898_v50  ;;  %v1423_v17 = vadd.f32 %v4900_v21, %v1422_v1  ;;  %vm1471_vm13 = vmor %vm1469_vm11, %vm1470_vm2  ;;  %v1503_v61 = vand.u32 2147483647, %v4905_v47 }
 0x7f2   :  { %v4932_v30 = vpop.eup %3746  ;;  %v1468_v13 = vadd.f32 %v4908_v19, %v1467_v27  ;;  %v1521_v58 = vor.u32 1.1754944e-38, %v1520_v24 }
 0x7f3   :  { %v1511_v53 = vsub.f32 1.0, %v1510_v37  ;;  %v1427_v59 = vsel %vm1426_vm1, %v4900_v21, %v1423_v17  ;;  %vm1514_vm1 = vweird.f32 %v4898_v50  ;;  %vm1500_vm11 = vweird.f32 %v4932_v30 }
 0x7f4   :  { %v1472_v45 = vsel %vm1471_vm13, %v4908_v19, %v1468_v13  ;;  %v1518_v19 = vand.u32 2147483647, %v4898_v50 }
 0x7f6   :  { %vm1519_vm13 = vcmp.eq.f32.partialorder %v1518_v19, 8.507059e+37 }
 0x826   :  { %v1577_v51 = vpop.permute.xlu2 %1576 }
 0x827   :  { %v1598_v57 = vmul.f32 %v1577_v51, %v4884_v10  ;;  %v1412_v51 = vsel %vm1411_vm12, %v4890_v43, %v1408_v39  ;;  %v1428_v43 = vand.u32 2147483647, %v4880_v16  ;;  %v1473_v16 = vand.u32 2147483647, %v4887_v63 }
 0x828   :  { %v4952_v2 = vsel %vm1414_vm14, %v1416_v36, %v1412_v51  ;;  %vm1515_vm14 = vweird.f32 %v4920_v33  ;;  %v1505_v39 = vand.u32 2147483648, %v4905_v47  ;;  %v1540_v51 = vrot.slane %v4805_v25, 7 }
 0x829   :  { %1616 = vrot.lane.b32.xlu1 %v1598_v57, %s4164_s17  ;;  %v1495_v57 = vmul.f32 %v4932_v30, %v4905_v47  ;;  %vm1429_vm12 = vcmp.eq.f32.partialorder %v1428_v43, 8.507059e+37  ;;  %vm1474_vm15 = vcmp.eq.f32.partialorder %v1473_v16, 8.507059e+37  ;;  %vm1516_vm2 = vmor %vm1514_vm1, %vm1515_vm14  ;;  %vm1504_vm14 = vcmp.eq.f32.partialorder %v1503_v61, 8.507059e+37 }
 0x82a   :  { %v4974_v63 = vsel %vm1474_vm15, %v1476_v28, %v1472_v45  ;;  %v1506_v8 = vor.u32 1.1754944e-38, %v1505_v39  ;;  %v1543_v45 = vrot.slane %v4830_v46, 7 }
 0x82b   :  { %v1496_v35 = vsub.f32 1.0, %v1495_v57  ;;  %v1556_v57 = vmul.f32 %v1540_v51, %v4952_v2 }
 0x82d   :  { %v1497_v21 = vmul.f32 %v4932_v30, %v1496_v35 }
 0x82e   :  { %v1583_v40 = vpop.permute.xlu2 %1582 }
 0x82f   :  { %v1601_v44 = vmul.f32 %v1583_v40, %v4902_v5  ;;  %v1512_v40 = vmul.f32 %v4920_v33, %v1511_v53  ;;  %v1498_v34 = vadd.f32 %v4932_v30, %v1497_v21  ;;  %v1559_v21 = vmul.f32 %v1543_v45, %v4942_v52 }
 0x831   :  { %1622 = vrot.lane.b32.xlu1 %v1601_v44, %s4164_s17  ;;  %v1431_v44 = vor.u32 1.1754944e-38, %v1430_v11  ;;  %v1513_v6 = vadd.f32 %v4920_v33, %v1512_v40  ;;  %v1545_v11 = vrot.slane %v4836_v54, 7 }
 0x833   :  { %v4966_v38 = vsel %vm1429_vm12, %v1431_v44, %v1427_v59  ;;  %v1517_v60 = vsel %vm1516_vm2, %v4920_v33, %v1513_v6  ;;  %vm1499_vm12 = vweird.f32 %v4905_v47  ;;  %v1542_v47 = vrot.slane %v4795_v3, 7 }
 0x834   :  { %vm1501_vm15 = vmor %vm1499_vm12, %vm1500_vm11  ;;  %v4987_v50 = vsel %vm1519_vm13, %v1521_v58, %v1517_v60  ;;  %v1544_v3 = vrot.slane %v4812_v4, 7  ;;  %v1561_v25 = vmul.f32 %v1545_v11, %v4902_v5  ;;  %v1546_v4 = vrot.slane %v4817_v48, 7 }
 0x835   :  { %v1502_v37 = vsel %vm1501_vm15, %v4932_v30, %v1498_v34  ;;  %v1558_v27 = vmul.f32 %v1542_v47, %v4884_v10  ;;  %v1541_v6 = vrot.slane %v4801_v15, 7 }
 0x836   :  { %v4991_v33 = vsel %vm1504_vm14, %v1506_v8, %v1502_v37  ;;  %v1560_v43 = vmul.f32 %v1544_v3, %v4974_v63 }
 0x837   :  { %v1562_v54 = vmul.f32 %v1546_v4, %v4991_v33  ;;  %v1557_v24 = vmul.f32 %v1541_v6, %v4966_v38 }
 0x83c   :  { %v1579_v56 = vpop.permute.xlu1 %1578 }
 0x83d   :  { %v1599_v12 = vmul.f32 %v1579_v56, %v4942_v52 }
 0x83f   :  { %v1573_v0 = vpop.permute.xlu0 %1572  ;;  %1618 = vrot.lane.b32.xlu0 %v1599_v12, %s4164_s17 }
 0x840   :  { %v1596_v23 = vmul.f32 %v1573_v0, %v4952_v2 }
 0x842   :  { %1612 = vrot.lane.b32.xlu2 %v1596_v23, %s4164_s17 }
 0x844   :  { %v1575_v31 = vpop.permute.xlu1 %1574 }
 0x845   :  { %v1597_v55 = vmul.f32 %v1575_v31, %v4966_v38 }
 0x847   :  { %v1581_v14 = vpop.permute.xlu0 %1580  ;;  %1614 = vrot.lane.b32.xlu0 %v1597_v55, %s4164_s17 }
 0x848   :  { %v1600_v9 = vmul.f32 %v1581_v14, %v4974_v63 }
 0x84a   :  { %1620 = vrot.lane.b32.xlu2 %v1600_v9, %s4164_s17  ;;  %v1547_v9 = vrot.slane %v4823_v26, 7 }
 0x84c   :  { %v1587_v1 = vpop.permute.xlu1 %1586  ;;  %v1563_v34 = vmul.f32 %v1547_v9, %v4987_v50 }
 0x84d   :  { %v1603_v7 = vmul.f32 %v1587_v1, %v4987_v50 }
 0x84f   :  { %v1585_v36 = vpop.permute.xlu0 %1584  ;;  %1626 = vrot.lane.b32.xlu0 %v1603_v7, %s4164_s17 }
 0x850   :  { %v1602_v56 = vmul.f32 %v1585_v36, %v4991_v33 }
 0x852   :  { %1624 = vrot.lane.b32.xlu2 %v1602_v56, %s4164_s17 }
 0x89b   :  { %v1617_v30 = vpop.permute.xlu1 %1616 }
 0x89c   :  { %v5000_v12 = vadd.f32 %v1617_v30, %v1558_v27  ;;  %v1613_v17 = vpop.permute.xlu2 %1612 }
 0x89d   :  { %v5002_v53 = vadd.f32 %v1613_v17, %v1556_v57 }
 0x89e   :  { %3748 = vtanh.f32 %v5000_v12 }
 0x89f   :  { %3750 = vtanh.f32 %v5002_v53 }
 0x8a3   :  { %v1623_v0 = vpop.permute.xlu1 %1622 }
 0x8a4   :  { %v3749_v23 = vpop.eup %3748  ;;  %v5010_v13 = vadd.f32 %v1623_v0, %v1561_v25  ;;  %v1621_v35 = vpop.permute.xlu2 %1620 }
 0x8a5   :  { %v3751_v59 = vpop.eup %3750  ;;  %v5012_v62 = vadd.f32 %v1621_v35, %v1560_v43  ;;  %1664 = vrot.lane.b32.xlu0 %v3749_v23, %s4165_s18 }
 0x8a6   :  { %3752 = vtanh.f32 %v5010_v13  ;;  %1660 = vrot.lane.b32.xlu1 %v3751_v59, %s4165_s18 }
 0x8a7   :  { %3754 = vtanh.f32 %v5012_v62 }
 0x8ac   :  { %v3753_v40 = vpop.eup %3752  ;;  %v1625_v44 = vpop.permute.xlu2 %1624 }
 0x8ad   :  { %v3755_v16 = vpop.eup %3754  ;;  %v5020_v31 = vadd.f32 %v1625_v44, %v1562_v54  ;;  %1670 = vrot.lane.b32.xlu0 %v3753_v40, %s4165_s18 }
 0x8ae   :  { %1668 = vrot.lane.b32.xlu1 %v3755_v16, %s4165_s18 }
 0x8af   :  { %3756 = vtanh.f32 %v5020_v31 }
 0x8b1   :  { %v1619_v55 = vpop.permute.xlu0 %1618 }
 0x8b2   :  { %v5027_v28 = vadd.f32 %v1619_v55, %v1559_v21 }
 0x8b4   :  { %3758 = vtanh.f32 %v5027_v28 }
 0x8b5   :  { %v3757_v48 = vpop.eup %3756 }
 0x8b6   :  { %1672 = vrot.lane.b32.xlu1 %v3757_v48, %s4165_s18 }
 0x8b9   :  { %v1615_v14 = vpop.permute.xlu0 %1614 }
 0x8ba   :  { %v3759_v46 = vpop.eup %3758  ;;  %v5033_v19 = vadd.f32 %v1615_v14, %v1557_v24 }
 0x8bb   :  { %1666 = vrot.lane.b32.xlu2 %v3759_v46, %s4165_s18 }
 0x8bc   :  { %3760 = vtanh.f32 %v5033_v19 }
 0x8c1   :  { %v1627_v60 = vpop.permute.xlu0 %1626 }
 0x8c2   :  { %v3761_v39 = vpop.eup %3760  ;;  %v5039_v58 = vadd.f32 %v1627_v60, %v1563_v34 }
 0x8c3   :  { %1662 = vrot.lane.b32.xlu2 %v3761_v39, %s4165_s18 }
 0x8c4   :  { %3762 = vtanh.f32 %v5039_v58 }
 0x8ca   :  { %v3763_v15 = vpop.eup %3762 }
 0x8cb   :  { %1674 = vrot.lane.b32.xlu2 %v3763_v15, %s4165_s18 }
 0x915   :  { %v1667_v61 = vpop.permute.xlu2 %1666 }
 0x916   :  { %v1687_v3 = vmul.f32 %v1667_v61, %v4942_v52 }
 0x917   :  { %v1665_v37 = vpop.permute.xlu0 %1664 }
 0x918   :  { %v1661_v1 = vpop.permute.xlu1 %1660  ;;  %v1686_v26 = vmul.f32 %v1665_v37, %v4884_v10 }
 0x919   :  { %v1684_v7 = vmul.f32 %v1661_v1, %v4952_v2 }
 0x91a   :  { %v1703_v27 = vrot.slane %v1686_v26, 1 }
 0x91b   :  { %v1700_v56 = vrot.slane %v1684_v7, 3 }
 0x91d   :  { %v1663_v8 = vpop.permute.xlu2 %1662 }
 0x91e   :  { %v1685_v36 = vmul.f32 %v1663_v8, %v4966_v38 }
 0x91f   :  { %v1671_v11 = vpop.permute.xlu0 %1670 }
 0x920   :  { %v1701_v47 = vrot.slane %v1685_v36, 2  ;;  %v1669_v51 = vpop.permute.xlu1 %1668  ;;  %v1689_v10 = vmul.f32 %v1671_v11, %v4902_v5 }
 0x921   :  { %v1688_v30 = vmul.f32 %v1669_v51, %v4974_v63 }
 0x922   :  { %v1702_v57 = vsel %vm524_vm3, %v1701_v47, %v1700_v56  ;;  %v1708_v35 = vrot.slane %v1689_v10, 6 }
 0x923   :  { %v1704_v17 = vsel %vm527_vm4, %v1703_v27, %v1702_v57  ;;  %v1706_v25 = vrot.slane %v1688_v30, 7 }
 0x924   :  { %v1705_v0 = vsel %vm530_vm5, %v1687_v3, %v1704_v17 }
 0x925   :  { %v1675_v2 = vpop.permute.xlu2 %1674  ;;  %v1707_v23 = vsel %vm533_vm6, %v1706_v25, %v1705_v0 }
 0x926   :  { %v1691_v38 = vmul.f32 %v1675_v2, %v4987_v50  ;;  %v1709_v54 = vsel %vm536_vm7, %v1708_v35, %v1707_v23 }
 0x928   :  { %v1673_v43 = vpop.permute.xlu1 %1672  ;;  %v1712_v4 = vrot.slane %v1691_v38, 4 }
 0x929   :  { %v1690_v63 = vmul.f32 %v1673_v43, %v4991_v33 }
 0x92b   :  { %v1710_v59 = vrot.slane %v1690_v63, 5 }
 0x92d   :  { %v1711_v52 = vsel %vm539_vm8, %v1710_v59, %v1709_v54 }
 0x92e   :  { %v1713_v40 = vsel %vm542_vm9, %v1712_v4, %v1711_v52 }
 0x92f   :  { %1714 = vrot.lane.b32.xlu0 %v1713_v40, %s4166_s19 }
 0x9a1   :  { %v1715_v5 = vpop.permute.xlu0 %1714 }
 0x9a2   :  { %3443 = vmatmul.msk.f32.vlgmr.msra.gmra.mxu2 %vm171_vm10, %v1715_v5 }
 0xa25   :  { %v1735_v50 = vpop.f32.mrf.mxu2 }
 0xa26   :  { %v1741_v44 = vrot.slane %v1735_v50, 6  ;;  %v1740_v16 = vrot.slane %v1735_v50, 5  ;;  %v1739_v45 = vrot.slane %v1735_v50, 4  ;;  %v1743_v48 = vrot.slane %v1735_v50, 1 }
 0xa27   :  { %v1742_v6 = vrot.slane %v1735_v50, 7  ;;  %v1758_v24 = vadd.f32 %v1735_v50, %v4249_v22  ;;  %v1745_v39 = vrot.slane %v1735_v50, 3  ;;  %v1744_v15 = vrot.slane %v1735_v50, 2 }
 0xa28   :  { %v1756_v33 = vadd.f32 %v1741_v44, %v4256_v32  ;;  %v1755_v21 = vadd.f32 %v1740_v16, %v4247_v20  ;;  %v1754_v55 = vadd.f32 %v1739_v45, %v4245_v18  ;;  %v1759_v14 = vadd.f32 %v1743_v48, %v4254_v29 }
 0xa29   :  { %v1757_v9 = vadd.f32 %v1742_v6, %v4265_v42  ;;  %v1761_v61 = vadd.f32 %v1745_v39, %v4268_v49  ;;  %v1760_v37 = vadd.f32 %v1744_v15, %v4263_v41  ;;  %v3448_v23 = vmul.f32 -1.442695, %v1758_v24 }
 0xa2a   :  { %3764 = vtanh.f32 %v1756_v33  ;;  %v3445_v56 = vmul.f32 -1.442695, %v1755_v21  ;;  %v3449_v47 = vmul.f32 -1.442695, %v1759_v14  ;;  %v3446_v3 = vmul.f32 -1.442695, %v1756_v33 }
 0xa2b   :  { %3766 = vtanh.f32 %v1755_v21  ;;  %v3451_v30 = vmul.f32 -1.442695, %v1761_v61  ;;  %v3444_v25 = vmul.f32 -1.442695, %v1754_v55  ;;  %v3447_v35 = vmul.f32 -1.442695, %v1757_v9 }
 0xa2c   :  { %3768 = vtanh.f32 %v1754_v55  ;;  %v3450_v21 = vmul.f32 -1.442695, %v1760_v37 }
 0xa2d   :  { %3770 = vtanh.f32 %v1758_v24 }
 0xa2e   :  { %3772 = vtanh.f32 %v1759_v14 }
 0xa2f   :  { %3774 = vtanh.f32 %v1757_v9 }
 0xa30   :  { %v3765_v46 = vpop.eup %3764  ;;  %3776 = vtanh.f32 %v1761_v61 }
 0xa31   :  { %v3767_v34 = vpop.eup %3766  ;;  %1966 = vrot.lane.b32.xlu0 %v3765_v46, %s4163_s3  ;;  %3778 = vtanh.f32 %v1760_v37 }
 0xa32   :  { %v3769_v60 = vpop.eup %3768  ;;  %1964 = vrot.lane.b32.xlu2 %v3767_v34, %s4163_s3  ;;  %3780 = vpow2.f32 %v3445_v56 }
 0xa33   :  { %1962 = vrot.lane.b32.xlu1 %v3769_v60, %s4163_s3  ;;  %v3771_v1 = vpop.eup %3770  ;;  %3782 = vpow2.f32 %v3449_v47 }
 0xa34   :  { %v3773_v7 = vpop.eup %3772 }
 0xa35   :  { %v3775_v26 = vpop.eup %3774 }
 0xa36   :  { %v3777_v8 = vpop.eup %3776 }
 0xa37   :  { %v3779_v36 = vpop.eup %3778 }
 0xa38   :  { %v3781_v51 = vpop.eup %3780 }
 0xa39   :  { %1970 = vrot.lane.b32.xlu0 %v3771_v1, %s4163_s3  ;;  %v1787_v27 = vadd.f32 1.0, %v3781_v51  ;;  %v3783_v57 = vpop.eup %3782 }
 0xa3a   :  { %1972 = vrot.lane.b32.xlu2 %v3773_v7, %s4163_s3  ;;  %v5077_v17 = vadd.f32 1.0, %v3783_v57 }
 0xa3b   :  { %1968 = vrot.lane.b32.xlu1 %v3775_v26, %s4163_s3  ;;  %3784 = vrcp.f32 %v1787_v27  ;;  %v1820_v16 = vand.u32 2147483648, %v1787_v27  ;;  %vm1814_vm2 = vweird.f32 %v1787_v27  ;;  %v1818_v45 = vand.u32 2147483647, %v1787_v27 }
 0xa3c   :  { %3786 = vpow2.f32 %v3451_v30  ;;  %v1880_v37 = vand.u32 2147483648, %v5077_v17  ;;  %vm1874_vm15 = vweird.f32 %v5077_v17  ;;  %v1878_v26 = vand.u32 2147483647, %v5077_v17 }
 0xa3d   :  { %3788 = vrcp.f32 %v5077_v17  ;;  %v1821_v14 = vor.u32 1.1754944e-38, %v1820_v16  ;;  %vm1819_vm12 = vcmp.eq.f32.partialorder %v1818_v45, 8.507059e+37 }
 0xa3e   :  { %3790 = vpow2.f32 %v3446_v3  ;;  %v1881_v51 = vor.u32 1.1754944e-38, %v1880_v37 }
 0xa3f   :  { %3792 = vpow2.f32 %v3444_v25 }
 0xa41   :  { %v3785_v11 = vpop.eup %3784 }
 0xa42   :  { %1976 = vrot.lane.b32.xlu2 %v3777_v8, %s4163_s3  ;;  %v3787_v2 = vpop.eup %3786  ;;  %v1810_v10 = vmul.f32 %v3785_v11, %v1787_v27  ;;  %vm1815_vm1 = vweird.f32 %v3785_v11 }
 0xa43   :  { %1974 = vrot.lane.b32.xlu1 %v3779_v36, %s4163_s3  ;;  %v5080_v0 = vadd.f32 1.0, %v3787_v2  ;;  %v3789_v43 = vpop.eup %3788  ;;  %vm1816_vm11 = vmor %vm1814_vm2, %vm1815_vm1  ;;  %vm1879_vm1 = vcmp.eq.f32.partialorder %v1878_v26, 8.507059e+37 }
 0xa44   :  { %v1811_v38 = vsub.f32 1.0, %v1810_v10  ;;  %v3791_v63 = vpop.eup %3790  ;;  %v1870_v4 = vmul.f32 %v3789_v43, %v5077_v17  ;;  %vm1875_vm13 = vweird.f32 %v3789_v43 }
 0xa45   :  { %3794 = vrcp.f32 %v5080_v0  ;;  %v3793_v54 = vpop.eup %3792  ;;  %v5084_v52 = vadd.f32 1.0, %v3791_v63  ;;  %vm1876_vm14 = vmor %vm1874_vm15, %vm1875_vm13  ;;  %v1910_v10 = vand.u32 2147483648, %v5080_v0 }
 0xa46   :  { %v1812_v59 = vmul.f32 %v3785_v11, %v1811_v38  ;;  %3796 = vpow2.f32 %v3448_v23  ;;  %v1871_v5 = vsub.f32 1.0, %v1870_v4  ;;  %v5086_v50 = vadd.f32 1.0, %v3793_v54 }
 0xa47   :  { %3798 = vpow2.f32 %v3447_v35  ;;  %v1908_v23 = vand.u32 2147483647, %v5080_v0  ;;  %v1911_v4 = vor.u32 1.1754944e-38, %v1910_v10 }
 0xa48   :  { %v1813_v40 = vadd.f32 %v3785_v11, %v1812_v59  ;;  %3800 = vrcp.f32 %v5084_v52  ;;  %v1872_v48 = vmul.f32 %v3789_v43, %v1871_v5 }
 0xa49   :  { %3802 = vrcp.f32 %v5086_v50  ;;  %vm1909_vm13 = vcmp.eq.f32.partialorder %v1908_v23, 8.507059e+37 }
 0xa4a   :  { %v1817_v55 = vsel %vm1816_vm11, %v3785_v11, %v1813_v40  ;;  %3804 = vpow2.f32 %v3450_v21  ;;  %v1873_v15 = vadd.f32 %v3789_v43, %v1872_v48  ;;  %vm1904_vm11 = vweird.f32 %v5080_v0 }
 0xa4b   :  { %v5088_v44 = vpop.eup %3794  ;;  %v5096_v34 = vsel %vm1819_vm12, %v1821_v14, %v1817_v55  ;;  %v1833_v21 = vand.u32 2147483647, %v5084_v52 }
 0xa4c   :  { %v3797_v33 = vpop.eup %3796  ;;  %v1900_v6 = vmul.f32 %v5088_v44, %v5080_v0  ;;  %v1877_v36 = vsel %vm1876_vm14, %v3789_v43, %v1873_v15  ;;  %vm1905_vm2 = vweird.f32 %v5088_v44  ;;  %vm1829_vm14 = vweird.f32 %v5084_v52 }
 0xa4d   :  { %v3799_v24 = vpop.eup %3798  ;;  %v5094_v46 = vadd.f32 1.0, %v3797_v33  ;;  %v5116_v30 = vsel %vm1879_vm1, %v1881_v51, %v1877_v36  ;;  %vm1906_vm12 = vmor %vm1904_vm11, %vm1905_vm2  ;;  %vm1799_vm11 = vweird.f32 %v5086_v50 }
 0xa4e   :  { %v5098_v60 = vpop.eup %3800  ;;  %v1901_v61 = vsub.f32 1.0, %v1900_v6  ;;  %v5101_v1 = vadd.f32 1.0, %v3799_v24  ;;  %v1805_v24 = vand.u32 2147483648, %v5086_v50 }
 0xa4f   :  { %v5104_v7 = vpop.eup %3802  ;;  %3806 = vrcp.f32 %v5094_v46  ;;  %v1825_v8 = vmul.f32 %v5098_v60, %v5084_v52  ;;  %vm1830_vm15 = vweird.f32 %v5098_v60  ;;  %v1865_v51 = vand.u32 2147483648, %v5094_v46 }
 0xa50   :  { %v1902_v56 = vmul.f32 %v5088_v44, %v1901_v61  ;;  %3808 = vrcp.f32 %v5101_v1  ;;  %v3805_v47 = vpop.eup %3804  ;;  %v1795_v27 = vmul.f32 %v5104_v7, %v5086_v50  ;;  %vm1800_vm1 = vweird.f32 %v5104_v7  ;;  %vm1831_vm2 = vmor %vm1829_vm14, %vm1830_vm15 }
 0xa51   :  { %v1826_v17 = vsub.f32 1.0, %v1825_v8  ;;  %v5123_v2 = vadd.f32 1.0, %v3805_v47  ;;  %v1866_v10 = vor.u32 1.1754944e-38, %v1865_v51 }
 0xa52   :  { %v1903_v25 = vadd.f32 %v5088_v44, %v1902_v56  ;;  %v1796_v38 = vsub.f32 1.0, %v1795_v27 }
 0xa53   :  { %v1827_v63 = vmul.f32 %v5098_v60, %v1826_v17  ;;  %3810 = vrcp.f32 %v5123_v2 }
 0xa54   :  { %v1907_v59 = vsel %vm1906_vm12, %v5088_v44, %v1903_v25  ;;  %v1797_v54 = vmul.f32 %v5104_v7, %v1796_v38  ;;  %v1835_v44 = vand.u32 2147483648, %v5084_v52  ;;  %vm1801_vm12 = vmor %vm1799_vm11, %vm1800_vm1  ;;  %vm1859_vm1 = vweird.f32 %v5094_v46 }
 0xa55   :  { %v5118_v11 = vpop.eup %3806  ;;  %v5139_v5 = vsel %vm1909_vm13, %v1911_v4, %v1907_v59  ;;  %v1828_v16 = vadd.f32 %v5098_v60, %v1827_v63  ;;  %vm1834_vm13 = vcmp.eq.f32.partialorder %v1833_v21, 8.507059e+37 }
 0xa56   :  { %v5126_v43 = vpop.eup %3808  ;;  %v1855_v35 = vmul.f32 %v5118_v11, %v5094_v46  ;;  %v1798_v55 = vadd.f32 %v5104_v7, %v1797_v54  ;;  %vm1860_vm14 = vweird.f32 %v5118_v11 }
 0xa57   :  { %v1840_v40 = vmul.f32 %v5126_v43, %v5101_v1  ;;  %v1832_v14 = vsel %vm1831_vm2, %v5098_v60, %v1828_v16  ;;  %v1806_v60 = vor.u32 1.1754944e-38, %v1805_v24  ;;  %vm1845_vm2 = vweird.f32 %v5126_v43  ;;  %vm1861_vm11 = vmor %vm1859_vm1, %vm1860_vm14 }
 0xa58   :  { %v1856_v45 = vsub.f32 1.0, %v1855_v35  ;;  %v1802_v15 = vsel %vm1801_vm12, %v5104_v7, %v1798_v55  ;;  %v1863_v7 = vand.u32 2147483647, %v5094_v46  ;;  %vm1844_vm12 = vweird.f32 %v5101_v1 }
 0xa59   :  { %v1841_v48 = vsub.f32 1.0, %v1840_v40  ;;  %v5149_v6 = vpop.eup %3810  ;;  %v1848_v46 = vand.u32 2147483647, %v5101_v1  ;;  %v1932_v55 = vrot.slane %v5000_v12, 7  ;;  %v1935_v12 = vrot.slane %v5010_v13, 7 }
 0xa5a   :  { %v1857_v52 = vmul.f32 %v5118_v11, %v1856_v45  ;;  %v1885_v37 = vmul.f32 %v5149_v6, %v5123_v2  ;;  %vm1890_vm1 = vweird.f32 %v5149_v6  ;;  %v1937_v13 = vrot.slane %v5039_v58, 7 }
 0xa5b   :  { %v1842_v61 = vmul.f32 %v5126_v43, %v1841_v48  ;;  %vm1849_vm14 = vcmp.eq.f32.partialorder %v1848_v46, 8.507059e+37  ;;  %v1931_v48 = vrot.slane %v5033_v19, 7  ;;  %v1933_v46 = vrot.slane %v5027_v28, 7 }
 0xa5c   :  { %v1886_v17 = vsub.f32 1.0, %v1885_v37 }
 0xa5e   :  { %v1887_v23 = vmul.f32 %v5149_v6, %v1886_v17 }
 0xa8c   :  { %v1965_v9 = vpop.permute.xlu2 %1964 }
 0xa8d   :  { %v1987_v39 = vmul.f32 %v1965_v9, %v5096_v34  ;;  %v1803_v9 = vand.u32 2147483647, %v5086_v50  ;;  %v1858_v50 = vadd.f32 %v5118_v11, %v1857_v52 }
 0xa8f   :  { %2004 = vrot.lane.b32.xlu1 %v1987_v39, %s4164_s17  ;;  %v1836_v39 = vor.u32 1.1754944e-38, %v1835_v44  ;;  %vm1804_vm15 = vcmp.eq.f32.partialorder %v1803_v9, 8.507059e+37  ;;  %v1862_v25 = vsel %vm1861_vm11, %v5118_v11, %v1858_v50 }
 0xa90   :  { %v5166_v47 = vsel %vm1804_vm15, %v1806_v60, %v1802_v15  ;;  %vm1864_vm15 = vcmp.eq.f32.partialorder %v1863_v7, 8.507059e+37 }
 0xa91   :  { %v5161_v8 = vsel %vm1834_vm13, %v1836_v39, %v1832_v14  ;;  %vm1846_vm13 = vmor %vm1844_vm12, %vm1845_vm2  ;;  %v5182_v63 = vsel %vm1864_vm15, %v1866_v10, %v1862_v25  ;;  %vm1889_vm2 = vweird.f32 %v5123_v2  ;;  %v1934_v39 = vrot.slane %v5012_v62, 7 }
 0xa92   :  { %vm1891_vm11 = vmor %vm1889_vm2, %vm1890_vm1  ;;  %v1948_v24 = vmul.f32 %v1932_v55, %v5161_v8  ;;  %v1953_v62 = vmul.f32 %v1937_v13, %v5139_v5 }
 0xa93   :  { %v1950_v19 = vmul.f32 %v1934_v39, %v5182_v63 }
 0xa94   :  { %v1973_v57 = vpop.permute.xlu2 %1972 }
 0xa95   :  { %v1991_v3 = vmul.f32 %v1973_v57, %v5116_v30  ;;  %v1843_v57 = vadd.f32 %v5126_v43, %v1842_v61  ;;  %v1951_v61 = vmul.f32 %v1935_v12, %v5116_v30 }
 0xa97   :  { %2012 = vrot.lane.b32.xlu1 %v1991_v3, %s4164_s17  ;;  %v1850_v3 = vand.u32 2147483648, %v5101_v1  ;;  %v1847_v38 = vsel %vm1846_vm13, %v5126_v43, %v1843_v57  ;;  %v1888_v1 = vadd.f32 %v5149_v6, %v1887_v23  ;;  %v1895_v43 = vand.u32 2147483648, %v5123_v2 }
 0xa98   :  { %v1930_v57 = vrot.slane %v5002_v53, 7  ;;  %v1936_v53 = vrot.slane %v5020_v31, 7 }
 0xa99   :  { %v1851_v59 = vor.u32 1.1754944e-38, %v1850_v3  ;;  %v1892_v16 = vsel %vm1891_vm11, %v5149_v6, %v1888_v1  ;;  %v1896_v45 = vor.u32 1.1754944e-38, %v1895_v43 }
 0xa9a   :  { %v1946_v17 = vmul.f32 %v1930_v57, %v5166_v47 }
 0xa9b   :  { %v5185_v54 = vsel %vm1849_vm14, %v1851_v59, %v1847_v38 }
 0xa9c   :  { %v1977_v0 = vpop.permute.xlu2 %1976  ;;  %v1949_v10 = vmul.f32 %v1933_v46, %v5185_v54 }
 0xa9d   :  { %v1993_v33 = vmul.f32 %v1977_v0, %v5139_v5  ;;  %v1893_v0 = vand.u32 2147483647, %v5123_v2  ;;  %v1947_v2 = vmul.f32 %v1931_v48, %v5096_v34 }
 0xa9f   :  { %2016 = vrot.lane.b32.xlu1 %v1993_v33, %s4164_s17  ;;  %vm1894_vm12 = vcmp.eq.f32.partialorder %v1893_v0, 8.507059e+37 }
 0xaa0   :  { %v5196_v33 = vsel %vm1894_vm12, %v1896_v45, %v1892_v16 }
 0xaa1   :  { %v1952_v59 = vmul.f32 %v1936_v53, %v5196_v33 }
 0xaa3   :  { %v1967_v26 = vpop.permute.xlu0 %1966 }
 0xaa4   :  { %v1988_v36 = vmul.f32 %v1967_v26, %v5161_v8 }
 0xaa5   :  { %v1963_v56 = vpop.permute.xlu1 %1962 }
 0xaa6   :  { %v1986_v27 = vmul.f32 %v1963_v56, %v5166_v47  ;;  %2006 = vrot.lane.b32.xlu2 %v1988_v36, %s4164_s17 }
 0xaa8   :  { %2002 = vrot.lane.b32.xlu0 %v1986_v27, %s4164_s17 }
 0xaab   :  { %v1971_v35 = vpop.permute.xlu0 %1970 }
 0xaac   :  { %v1990_v4 = vmul.f32 %v1971_v35, %v5182_v63 }
 0xaad   :  { %v1969_v11 = vpop.permute.xlu1 %1968 }
 0xaae   :  { %v1989_v40 = vmul.f32 %v1969_v11, %v5185_v54  ;;  %2010 = vrot.lane.b32.xlu2 %v1990_v4, %s4164_s17 }
 0xab0   :  { %2008 = vrot.lane.b32.xlu0 %v1989_v40, %s4164_s17 }
 0xab5   :  { %v1975_v44 = vpop.permute.xlu1 %1974 }
 0xab6   :  { %v1992_v21 = vmul.f32 %v1975_v44, %v5196_v33 }
 0xab8   :  { %2014 = vrot.lane.b32.xlu0 %v1992_v21, %s4164_s17 }
 0xb00   :  { %v2007_v14 = vpop.permute.xlu2 %2006 }
 0xb01   :  { %v5204_v9 = vadd.f32 %v2007_v14, %v1948_v24  ;;  %v2005_v6 = vpop.permute.xlu1 %2004 }
 0xb02   :  { %v5206_v52 = vadd.f32 %v2005_v6, %v1947_v2 }
 0xb03   :  { %3812 = vtanh.f32 %v5204_v9 }
 0xb04   :  { %3814 = vtanh.f32 %v5206_v52 }
 0xb08   :  { %v2011_v15 = vpop.permute.xlu2 %2010 }
 0xb09   :  { %v3813_v37 = vpop.eup %3812  ;;  %v5214_v26 = vadd.f32 %v2011_v15, %v1950_v19  ;;  %v2013_v60 = vpop.permute.xlu1 %2012 }
 0xb0a   :  { %v3815_v36 = vpop.eup %3814  ;;  %v5216_v50 = vadd.f32 %v2013_v60, %v1951_v61  ;;  %2054 = vrot.lane.b32.xlu1 %v3813_v37, %s4165_s18 }
 0xb0b   :  { %3816 = vtanh.f32 %v5214_v26  ;;  %2052 = vrot.lane.b32.xlu0 %v3815_v36, %s4165_s18 }
 0xb0c   :  { %3818 = vtanh.f32 %v5216_v50 }
 0xb11   :  { %v3817_v56 = vpop.eup %3816  ;;  %v2017_v7 = vpop.permute.xlu1 %2016 }
 0xb12   :  { %v3819_v51 = vpop.eup %3818  ;;  %v5224_v27 = vadd.f32 %v2017_v7, %v1953_v62  ;;  %2058 = vrot.lane.b32.xlu1 %v3817_v56, %s4165_s18 }
 0xb13   :  { %2060 = vrot.lane.b32.xlu0 %v3819_v51, %s4165_s18 }
 0xb14   :  { %3820 = vtanh.f32 %v5224_v27 }
 0xb1a   :  { %v3821_v3 = vpop.eup %3820  ;;  %v2003_v25 = vpop.permute.xlu0 %2002 }
 0xb1b   :  { %v5231_v58 = vadd.f32 %v2003_v25, %v1946_v17  ;;  %2064 = vrot.lane.b32.xlu0 %v3821_v3, %s4165_s18 }
 0xb1d   :  { %3822 = vtanh.f32 %v5231_v58 }
 0xb22   :  { %v2009_v38 = vpop.permute.xlu0 %2008 }
 0xb23   :  { %v3823_v23 = vpop.eup %3822  ;;  %v5237_v35 = vadd.f32 %v2009_v38, %v1949_v10 }
 0xb24   :  { %2050 = vrot.lane.b32.xlu2 %v3823_v23, %s4165_s18 }
 0xb25   :  { %3824 = vtanh.f32 %v5237_v35 }
 0xb2a   :  { %v2015_v4 = vpop.permute.xlu0 %2014 }
 0xb2b   :  { %v3825_v11 = vpop.eup %3824  ;;  %v5243_v40 = vadd.f32 %v2015_v4, %v1952_v59 }
 0xb2c   :  { %2056 = vrot.lane.b32.xlu2 %v3825_v11, %s4165_s18 }
 0xb2d   :  { %3826 = vtanh.f32 %v5243_v40 }
 0xb33   :  { %v3827_v28 = vpop.eup %3826 }
 0xb34   :  { %2062 = vrot.lane.b32.xlu2 %v3827_v28, %s4165_s18 }
 0xb7c   :  { %v2055_v0 = vpop.permute.xlu1 %2054 }
 0xb7d   :  { %v2053_v1 = vpop.permute.xlu0 %2052  ;;  %v2076_v45 = vmul.f32 %v2055_v0, %v5161_v8 }
 0xb7e   :  { %v2051_v43 = vpop.permute.xlu2 %2050  ;;  %v2075_v16 = vmul.f32 %v2053_v1, %v5096_v34 }
 0xb7f   :  { %v2074_v31 = vmul.f32 %v2051_v43, %v5166_v47  ;;  %v2093_v24 = vrot.slane %v2076_v45, 2 }
 0xb80   :  { %v2091_v44 = vrot.slane %v2075_v16, 3 }
 0xb81   :  { %v2090_v21 = vrot.slane %v2074_v31, 4 }
 0xb83   :  { %v2092_v2 = vsel %vm524_vm3, %v2091_v44, %v2090_v21 }
 0xb84   :  { %v2059_v39 = vpop.permute.xlu1 %2058  ;;  %v2094_v12 = vsel %vm527_vm4, %v2093_v24, %v2092_v2 }
 0xb85   :  { %v2061_v55 = vpop.permute.xlu0 %2060  ;;  %v2078_v47 = vmul.f32 %v2059_v39, %v5182_v63 }
 0xb86   :  { %v2057_v48 = vpop.permute.xlu2 %2056  ;;  %v2079_v19 = vmul.f32 %v2061_v55, %v5116_v30 }
 0xb87   :  { %v2077_v14 = vmul.f32 %v2057_v48, %v5185_v54 }
 0xb88   :  { %v2098_v60 = vrot.slane %v2079_v19, 7 }
 0xb89   :  { %v2095_v6 = vrot.slane %v2077_v14, 1 }
 0xb8b   :  { %v2096_v34 = vsel %vm530_vm5, %v2095_v6, %v2094_v12 }
 0xb8c   :  { %v2097_v37 = vsel %vm533_vm6, %v2078_v47, %v2096_v34 }
 0xb8d   :  { %v2065_v8 = vpop.permute.xlu0 %2064  ;;  %v2099_v62 = vsel %vm536_vm7, %v2098_v60, %v2097_v37 }
 0xb8e   :  { %v2081_v15 = vmul.f32 %v2065_v8, %v5139_v5  ;;  %v2063_v61 = vpop.permute.xlu2 %2062 }
 0xb8f   :  { %v2080_v54 = vmul.f32 %v2063_v61, %v5196_v33 }
 0xb90   :  { %v2102_v36 = vrot.slane %v2081_v15, 5 }
 0xb91   :  { %v2100_v13 = vrot.slane %v2080_v54, 6 }
 0xb93   :  { %v2101_v56 = vsel %vm539_vm8, %v2100_v13, %v2099_v62 }
 0xb94   :  { %v2103_v30 = vsel %vm542_vm9, %v2102_v36, %v2101_v56 }
 0xb95   :  { %2104 = vrot.lane.b32.xlu1 %v2103_v30, %s4166_s19 }
 0xc07   :  { %v2105_v63 = vpop.permute.xlu1 %2104 }
 0xc08   :  { %3452 = vmatmul.msk.f32.vlgmr.msra.gmra.mxu3 %vm171_vm10, %v2105_v63 }
 0xc8b   :  { %v2125_v5 = vpop.f32.mrf.mxu3 }
 0xc8c   :  { %v2131_v7 = vrot.slane %v2125_v5, 5  ;;  %v2130_v51 = vrot.slane %v2125_v5, 4  ;;  %v2129_v57 = vrot.slane %v2125_v5, 3  ;;  %v2134_v25 = vrot.slane %v2125_v5, 1 }
 0xc8d   :  { %v2133_v46 = vrot.slane %v2125_v5, 7  ;;  %v2132_v10 = vrot.slane %v2125_v5, 6  ;;  %v2135_v28 = vrot.slane %v2125_v5, 2  ;;  %v2149_v0 = vadd.f32 %v2125_v5, %v4254_v29 }
 0xc8e   :  { %v2146_v33 = vadd.f32 %v2131_v7, %v4256_v32  ;;  %v2145_v17 = vadd.f32 %v2130_v51, %v4247_v20  ;;  %v2144_v3 = vadd.f32 %v2129_v57, %v4245_v18  ;;  %v2150_v38 = vadd.f32 %v2134_v25, %v4263_v41 }
 0xc8f   :  { %v2148_v23 = vadd.f32 %v2133_v46, %v4249_v22  ;;  %v2147_v59 = vadd.f32 %v2132_v10, %v4265_v42  ;;  %v2151_v1 = vadd.f32 %v2135_v28, %v4268_v49  ;;  %v3458_v14 = vmul.f32 -1.442695, %v2149_v0 }
 0xc90   :  { %3828 = vtanh.f32 %v2146_v33  ;;  %v3453_v21 = vmul.f32 -1.442695, %v2144_v3  ;;  %v3455_v39 = vmul.f32 -1.442695, %v2146_v33  ;;  %v3454_v19 = vmul.f32 -1.442695, %v2145_v17 }
 0xc91   :  { %3830 = vtanh.f32 %v2145_v17  ;;  %v3456_v55 = vmul.f32 -1.442695, %v2147_v59  ;;  %v3459_v15 = vmul.f32 -1.442695, %v2150_v38  ;;  %v3457_v54 = vmul.f32 -1.442695, %v2148_v23 }
 0xc92   :  { %3832 = vtanh.f32 %v2144_v3  ;;  %v3460_v51 = vmul.f32 -1.442695, %v2151_v1 }
 0xc93   :  { %3834 = vtanh.f32 %v2150_v38 }
 0xc94   :  { %3836 = vtanh.f32 %v2148_v23 }
 0xc95   :  { %3838 = vtanh.f32 %v2147_v59 }
 0xc96   :  { %v3829_v53 = vpop.eup %3828  ;;  %3840 = vtanh.f32 %v2151_v1 }
 0xc97   :  { %v3831_v4 = vpop.eup %3830  ;;  %2356 = vrot.lane.b32.xlu1 %v3829_v53, %s4163_s3  ;;  %3842 = vtanh.f32 %v2149_v0 }
 0xc98   :  { %v3833_v11 = vpop.eup %3832  ;;  %2354 = vrot.lane.b32.xlu0 %v3831_v4, %s4163_s3  ;;  %3844 = vpow2.f32 %v3453_v21 }
 0xc99   :  { %2352 = vrot.lane.b32.xlu2 %v3833_v11, %s4163_s3  ;;  %v3835_v43 = vpop.eup %3834  ;;  %3846 = vpow2.f32 %v3456_v55 }
 0xc9a   :  { %v3837_v16 = vpop.eup %3836 }
 0xc9b   :  { %v3839_v31 = vpop.eup %3838 }
 0xc9c   :  { %v3841_v45 = vpop.eup %3840 }
 0xc9d   :  { %v3843_v44 = vpop.eup %3842 }
 0xc9e   :  { %v3845_v48 = vpop.eup %3844 }
 0xc9f   :  { %2364 = vrot.lane.b32.xlu1 %v3835_v43, %s4163_s3  ;;  %v2176_v24 = vadd.f32 1.0, %v3845_v48  ;;  %v3847_v2 = vpop.eup %3846 }
 0xca0   :  { %2360 = vrot.lane.b32.xlu0 %v3837_v16, %s4163_s3  ;;  %v5281_v6 = vadd.f32 1.0, %v3847_v2 }
 0xca1   :  { %2358 = vrot.lane.b32.xlu2 %v3839_v31, %s4163_s3  ;;  %3848 = vrcp.f32 %v2176_v24  ;;  %v2195_v57 = vand.u32 2147483648, %v2176_v24  ;;  %vm2189_vm15 = vweird.f32 %v2176_v24  ;;  %v2193_v17 = vand.u32 2147483647, %v2176_v24 }
 0xca2   :  { %3850 = vpow2.f32 %v3458_v14  ;;  %v2240_v16 = vand.u32 2147483648, %v5281_v6  ;;  %vm2234_vm11 = vweird.f32 %v5281_v6  ;;  %v2238_v31 = vand.u32 2147483647, %v5281_v6 }
 0xca3   :  { %3852 = vrcp.f32 %v5281_v6  ;;  %v2196_v38 = vor.u32 1.1754944e-38, %v2195_v57  ;;  %vm2194_vm1 = vcmp.eq.f32.partialorder %v2193_v17, 8.507059e+37 }
 0xca4   :  { %3854 = vpow2.f32 %v3455_v39 }
 0xca5   :  { %3856 = vpow2.f32 %v3454_v19 }
 0xca7   :  { %v3849_v12 = vpop.eup %3848 }
 0xca8   :  { %2366 = vrot.lane.b32.xlu0 %v3841_v45, %s4163_s3  ;;  %v3851_v34 = vpop.eup %3850  ;;  %v2185_v47 = vmul.f32 %v3849_v12, %v2176_v24  ;;  %vm2190_vm13 = vweird.f32 %v3849_v12  ;;  %v2241_v24 = vor.u32 1.1754944e-38, %v2240_v16 }
 0xca9   :  { %2362 = vrot.lane.b32.xlu2 %v3843_v44, %s4163_s3  ;;  %v5284_v8 = vadd.f32 1.0, %v3851_v34  ;;  %v3853_v37 = vpop.eup %3852  ;;  %vm2191_vm14 = vmor %vm2189_vm15, %vm2190_vm13  ;;  %vm2239_vm13 = vcmp.eq.f32.partialorder %v2238_v31, 8.507059e+37 }
 0xcaa   :  { %v2186_v61 = vsub.f32 1.0, %v2185_v47  ;;  %v3855_v60 = vpop.eup %3854  ;;  %v2230_v62 = vmul.f32 %v3853_v37, %v5281_v6  ;;  %vm2235_vm2 = vweird.f32 %v3853_v37 }
 0xcab   :  { %v3857_v36 = vpop.eup %3856  ;;  %3858 = vrcp.f32 %v5284_v8  ;;  %v5288_v56 = vadd.f32 1.0, %v3855_v60  ;;  %vm2236_vm12 = vmor %vm2234_vm11, %vm2235_vm2 }
 0xcac   :  { %v2187_v13 = vmul.f32 %v3849_v12, %v2186_v61  ;;  %3860 = vpow2.f32 %v3459_v15  ;;  %v5290_v30 = vadd.f32 1.0, %v3857_v36  ;;  %v2231_v5 = vsub.f32 1.0, %v2230_v62 }
 0xcad   :  { %3862 = vpow2.f32 %v3457_v54  ;;  %v2270_v61 = vand.u32 2147483648, %v5284_v8 }
 0xcae   :  { %v2188_v63 = vadd.f32 %v3849_v12, %v2187_v13  ;;  %3864 = vrcp.f32 %v5288_v56  ;;  %v2232_v46 = vmul.f32 %v3853_v37, %v2231_v5  ;;  %v2225_v5 = vand.u32 2147483648, %v5288_v56 }
 0xcaf   :  { %3866 = vrcp.f32 %v5290_v30 }
 0xcb0   :  { %v2192_v25 = vsel %vm2191_vm14, %v3849_v12, %v2188_v63  ;;  %3868 = vpow2.f32 %v3460_v51  ;;  %v2233_v43 = vadd.f32 %v3853_v37, %v2232_v46  ;;  %vm2264_vm14 = vweird.f32 %v5284_v8 }
 0xcb1   :  { %v5292_v7 = vpop.eup %3858  ;;  %v5304_v11 = vsel %vm2194_vm1, %v2196_v38, %v2192_v25  ;;  %v2271_v63 = vor.u32 1.1754944e-38, %v2270_v61  ;;  %v2223_v46 = vand.u32 2147483647, %v5288_v56  ;;  %v2208_v38 = vand.u32 2147483647, %v5290_v30 }
 0xcb2   :  { %v3861_v33 = vpop.eup %3860  ;;  %v2260_v10 = vmul.f32 %v5292_v7, %v5284_v8  ;;  %v2237_v55 = vsel %vm2236_vm12, %v3853_v37, %v2233_v43  ;;  %vm2265_vm15 = vweird.f32 %v5292_v7  ;;  %v2268_v37 = vand.u32 2147483647, %v5284_v8 }
 0xcb3   :  { %v3863_v3 = vpop.eup %3862  ;;  %v5298_v23 = vadd.f32 1.0, %v3861_v33  ;;  %v5324_v6 = vsel %vm2239_vm13, %v2241_v24, %v2237_v55  ;;  %vm2266_vm1 = vmor %vm2264_vm14, %vm2265_vm15  ;;  %vm2219_vm13 = vweird.f32 %v5288_v56  ;;  %vm2204_vm14 = vweird.f32 %v5290_v30 }
 0xcb4   :  { %v5300_v53 = vadd.f32 1.0, %v3863_v3  ;;  %v5302_v59 = vpop.eup %3864  ;;  %v2261_v0 = vsub.f32 1.0, %v2260_v10  ;;  %vm2269_vm2 = vcmp.eq.f32.partialorder %v2268_v37, 8.507059e+37  ;;  %v2210_v10 = vand.u32 2147483648, %v5290_v30 }
 0xcb5   :  { %v5306_v28 = vpop.eup %3866  ;;  %3870 = vrcp.f32 %v5298_v23  ;;  %v2215_v45 = vmul.f32 %v5302_v59, %v5288_v56  ;;  %vm2220_vm11 = vweird.f32 %v5302_v59  ;;  %v2226_v43 = vor.u32 1.1754944e-38, %v2225_v5 }
 0xcb6   :  { %3872 = vrcp.f32 %v5300_v53  ;;  %v3869_v44 = vpop.eup %3868  ;;  %v2200_v21 = vmul.f32 %v5306_v28, %v5290_v30  ;;  %v2262_v48 = vmul.f32 %v5292_v7, %v2261_v0  ;;  %vm2205_vm12 = vweird.f32 %v5306_v28  ;;  %vm2221_vm15 = vmor %vm2219_vm13, %vm2220_vm11 }
 0xcb7   :  { %v2216_v14 = vsub.f32 1.0, %v2215_v45  ;;  %v5320_v2 = vadd.f32 1.0, %v3869_v44  ;;  %v2211_v31 = vor.u32 1.1754944e-38, %v2210_v10  ;;  %vm2209_vm11 = vcmp.eq.f32.partialorder %v2208_v38, 8.507059e+37 }
 0xcb8   :  { %v2201_v19 = vsub.f32 1.0, %v2200_v21  ;;  %v2263_v15 = vadd.f32 %v5292_v7, %v2262_v48  ;;  %v2285_v30 = vand.u32 2147483648, %v5298_v23 }
 0xcb9   :  { %v2217_v54 = vmul.f32 %v5302_v59, %v2216_v14  ;;  %3874 = vrcp.f32 %v5320_v2  ;;  %v2298_v5 = vand.u32 2147483647, %v5320_v2 }
 0xcba   :  { %v2202_v36 = vmul.f32 %v5306_v28, %v2201_v19  ;;  %v2267_v62 = vsel %vm2266_vm1, %v5292_v7, %v2263_v15  ;;  %vm2206_vm1 = vmor %vm2204_vm14, %vm2205_vm12  ;;  %v2255_v19 = vand.u32 2147483648, %v5300_v53  ;;  %v2286_v61 = vor.u32 1.1754944e-38, %v2285_v30 }
 0xcbb   :  { %v5322_v39 = vpop.eup %3870  ;;  %v2218_v8 = vadd.f32 %v5302_v59, %v2217_v54  ;;  %v5346_v57 = vsel %vm2269_vm2, %v2271_v63, %v2267_v62  ;;  %vm2224_vm2 = vcmp.eq.f32.partialorder %v2223_v46, 8.507059e+37  ;;  %v2320_v46 = vrot.slane %v5231_v58, 7 }
 0xcbc   :  { %v5326_v34 = vpop.eup %3872  ;;  %v2275_v60 = vmul.f32 %v5322_v39, %v5298_v23  ;;  %v2203_v17 = vadd.f32 %v5306_v28, %v2202_v36  ;;  %vm2280_vm12 = vweird.f32 %v5322_v39 }
 0xcbd   :  { %v2245_v13 = vmul.f32 %v5326_v34, %v5300_v53  ;;  %vm2250_vm13 = vweird.f32 %v5326_v34 }
 0xcbe   :  { %v2276_v51 = vsub.f32 1.0, %v2275_v60  ;;  %v2207_v0 = vsel %vm2206_vm1, %v5306_v28, %v2203_v17  ;;  %vm2249_vm1 = vweird.f32 %v5300_v53  ;;  %v2256_v60 = vor.u32 1.1754944e-38, %v2255_v19 }
 0xcbf   :  { %v2246_v3 = vsub.f32 1.0, %v2245_v13  ;;  %v5350_v25 = vpop.eup %3874  ;;  %v5369_v55 = vsel %vm2209_vm11, %v2211_v31, %v2207_v0 }
 0xcc0   :  { %v2290_v56 = vmul.f32 %v5350_v25, %v5320_v2 }
 0xcc1   :  { %v2247_v16 = vmul.f32 %v5326_v34, %v2246_v3 }
 0xcc2   :  { %v2291_v14 = vsub.f32 1.0, %v2290_v56 }
 0xcc3   :  { %v2248_v24 = vadd.f32 %v5326_v34, %v2247_v16 }
 0xcc4   :  { %v2292_v54 = vmul.f32 %v5350_v25, %v2291_v14 }
 0xcf3   :  { %v2353_v4 = vpop.permute.xlu2 %2352 }
 0xcf4   :  { %v2376_v1 = vmul.f32 %v2353_v4, %v5304_v11  ;;  %v2222_v4 = vsel %vm2221_vm15, %v5302_v59, %v2218_v8  ;;  %vm2279_vm15 = vweird.f32 %v5298_v23 }
 0xcf5   :  { %v5365_v44 = vsel %vm2224_vm2, %v2226_v43, %v2222_v4  ;;  %vm2281_vm14 = vmor %vm2279_vm15, %vm2280_vm12  ;;  %vm2295_vm12 = vweird.f32 %v5350_v25  ;;  %v2324_v43 = vrot.slane %v5214_v26, 7  ;;  %v2327_v26 = vrot.slane %v5224_v27, 7 }
 0xcf6   :  { %2392 = vrot.lane.b32.xlu1 %v2376_v1, %s4164_s17  ;;  %v2277_v1 = vmul.f32 %v5322_v39, %v2276_v51  ;;  %vm2251_vm2 = vmor %vm2249_vm1, %vm2250_vm13  ;;  %vm2294_vm13 = vweird.f32 %v5320_v2 }
 0xcf7   :  { %v2252_v37 = vsel %vm2251_vm2, %v5326_v34, %v2248_v24  ;;  %v2300_v34 = vand.u32 2147483648, %v5320_v2  ;;  %vm2296_vm15 = vmor %vm2294_vm13, %vm2295_vm12  ;;  %v2336_v2 = vmul.f32 %v2320_v46, %v5304_v11 }
 0xcf8   :  { %v2278_v28 = vadd.f32 %v5322_v39, %v2277_v1 }
 0xcf9   :  { %v2301_v51 = vor.u32 1.1754944e-38, %v2300_v34 }
 0xcfa   :  { %v2282_v15 = vsel %vm2281_vm14, %v5322_v39, %v2278_v28  ;;  %v2293_v39 = vadd.f32 %v5350_v25, %v2292_v54 }
 0xcfb   :  { %v2359_v12 = vpop.permute.xlu2 %2358 }
 0xcfc   :  { %v2379_v47 = vmul.f32 %v2359_v12, %v5324_v6  ;;  %v2283_v12 = vand.u32 2147483647, %v5298_v23  ;;  %v2297_v8 = vsel %vm2296_vm15, %v5350_v25, %v2293_v39 }
 0xcfe   :  { %2398 = vrot.lane.b32.xlu1 %v2379_v47, %s4164_s17  ;;  %v2253_v47 = vand.u32 2147483647, %v5300_v53  ;;  %vm2284_vm11 = vcmp.eq.f32.partialorder %v2283_v12, 8.507059e+37 }
 0xcff   :  { %v5386_v23 = vsel %vm2284_vm11, %v2286_v61, %v2282_v15 }
 0xd00   :  { %vm2254_vm0 = vcmp.eq.f32.partialorder %v2253_v47, 8.507059e+37 }
 0xd01   :  { %v5389_v62 = vsel %vm2254_vm0, %v2256_v60, %v2252_v37  ;;  %vm2299_vm0 = vcmp.eq.f32.partialorder %v2298_v5, 8.507059e+37  ;;  %v2326_v60 = vrot.slane %v5243_v40, 7 }
 0xd02   :  { %v2340_v58 = vmul.f32 %v2324_v43, %v5389_v62 }
 0xd03   :  { %v2363_v33 = vpop.permute.xlu2 %2362 }
 0xd04   :  { %v2381_v7 = vmul.f32 %v2363_v33, %v5346_v57  ;;  %v5400_v33 = vsel %vm2299_vm0, %v2301_v51, %v2297_v8 }
 0xd06   :  { %2402 = vrot.lane.b32.xlu1 %v2381_v7, %s4164_s17  ;;  %v2321_v7 = vrot.slane %v5206_v52, 7  ;;  %v2323_v52 = vrot.slane %v5237_v35, 7  ;;  %v2325_v35 = vrot.slane %v5216_v50, 7  ;;  %v2322_v50 = vrot.slane %v5204_v9, 7 }
 0xd08   :  { %v2337_v10 = vmul.f32 %v2321_v7, %v5369_v55  ;;  %v2339_v16 = vmul.f32 %v2323_v52, %v5324_v6  ;;  %v2338_v27 = vmul.f32 %v2322_v50, %v5365_v44 }
 0xd09   :  { %v2357_v45 = vpop.permute.xlu1 %2356 }
 0xd0a   :  { %v2378_v59 = vmul.f32 %v2357_v45, %v5365_v44  ;;  %v2355_v21 = vpop.permute.xlu0 %2354 }
 0xd0b   :  { %v2377_v48 = vmul.f32 %v2355_v21, %v5369_v55  ;;  %v2343_v21 = vmul.f32 %v2327_v26, %v5400_v33 }
 0xd0c   :  { %2396 = vrot.lane.b32.xlu0 %v2378_v59, %s4164_s17 }
 0xd0d   :  { %2394 = vrot.lane.b32.xlu2 %v2377_v48, %s4164_s17  ;;  %v2341_v48 = vmul.f32 %v2325_v35, %v5346_v57 }
 0xd11   :  { %v2365_v36 = vpop.permute.xlu1 %2364 }
 0xd12   :  { %v2382_v13 = vmul.f32 %v2365_v36, %v5386_v23  ;;  %v2361_v63 = vpop.permute.xlu0 %2360  ;;  %v2342_v36 = vmul.f32 %v2326_v60, %v5386_v23 }
 0xd13   :  { %v2380_v53 = vmul.f32 %v2361_v63, %v5389_v62 }
 0xd14   :  { %2404 = vrot.lane.b32.xlu0 %v2382_v13, %s4164_s17 }
 0xd15   :  { %2400 = vrot.lane.b32.xlu2 %v2380_v53, %s4164_s17 }
 0xd1a   :  { %v2367_v17 = vpop.permute.xlu0 %2366 }
 0xd1b   :  { %v2383_v3 = vmul.f32 %v2367_v17, %v5400_v33 }
 0xd1d   :  { %2406 = vrot.lane.b32.xlu2 %v2383_v3, %s4164_s17 }
 0xd67   :  { %v2395_v38 = vpop.permute.xlu2 %2394 }
 0xd68   :  { %v5408_v4 = vadd.f32 %v2395_v38, %v2337_v10  ;;  %v2393_v25 = vpop.permute.xlu1 %2392 }
 0xd69   :  { %v5410_v1 = vadd.f32 %v2393_v25, %v2336_v2 }
 0xd6a   :  { %3876 = vtanh.f32 %v5408_v4 }
 0xd6b   :  { %3878 = vtanh.f32 %v5410_v1 }
 0xd6f   :  { %v2401_v0 = vpop.permute.xlu2 %2400 }
 0xd70   :  { %v3877_v56 = vpop.eup %3876  ;;  %v5418_v31 = vadd.f32 %v2401_v0, %v2340_v58  ;;  %v2399_v45 = vpop.permute.xlu1 %2398 }
 0xd71   :  { %v3879_v30 = vpop.eup %3878  ;;  %v5420_v59 = vadd.f32 %v2399_v45, %v2339_v16  ;;  %2442 = vrot.lane.b32.xlu1 %v3877_v56, %s4165_s18 }
 0xd72   :  { %3880 = vtanh.f32 %v5418_v31  ;;  %2440 = vrot.lane.b32.xlu0 %v3879_v30, %s4165_s18 }
 0xd73   :  { %3882 = vtanh.f32 %v5420_v59 }
 0xd77   :  { %v2407_v28 = vpop.permute.xlu2 %2406 }
 0xd78   :  { %v3881_v24 = vpop.eup %3880  ;;  %v5430_v14 = vadd.f32 %v2407_v28, %v2343_v21  ;;  %v2403_v12 = vpop.permute.xlu1 %2402 }
 0xd79   :  { %v3883_v19 = vpop.eup %3882  ;;  %v5432_v47 = vadd.f32 %v2403_v12, %v2341_v48  ;;  %2448 = vrot.lane.b32.xlu1 %v3881_v24, %s4165_s18 }
 0xd7a   :  { %3884 = vtanh.f32 %v5430_v14  ;;  %2446 = vrot.lane.b32.xlu0 %v3883_v19, %s4165_s18 }
 0xd7b   :  { %3886 = vtanh.f32 %v5432_v47 }
 0xd7e   :  { %v2397_v15 = vpop.permute.xlu0 %2396 }
 0xd7f   :  { %v5440_v61 = vadd.f32 %v2397_v15, %v2338_v27 }
 0xd80   :  { %v3885_v37 = vpop.eup %3884 }
 0xd81   :  { %v3887_v54 = vpop.eup %3886  ;;  %3888 = vtanh.f32 %v5440_v61  ;;  %2454 = vrot.lane.b32.xlu1 %v3885_v37, %s4165_s18 }
 0xd82   :  { %2450 = vrot.lane.b32.xlu0 %v3887_v54, %s4165_s18 }
 0xd86   :  { %v2405_v9 = vpop.permute.xlu0 %2404 }
 0xd87   :  { %v3889_v13 = vpop.eup %3888  ;;  %v5447_v63 = vadd.f32 %v2405_v9, %v2342_v36 }
 0xd88   :  { %2444 = vrot.lane.b32.xlu2 %v3889_v13, %s4165_s18 }
 0xd89   :  { %3890 = vtanh.f32 %v5447_v63 }
 0xd8f   :  { %v3891_v53 = vpop.eup %3890 }
 0xd90   :  { %2452 = vrot.lane.b32.xlu2 %v3891_v53, %s4165_s18 }
 0xde2   :  { %v2445_v5 = vpop.permute.xlu2 %2444 }
 0xde3   :  { %v2443_v39 = vpop.permute.xlu1 %2442  ;;  %v2466_v51 = vmul.f32 %v2445_v5, %v5365_v44 }
 0xde4   :  { %v2441_v34 = vpop.permute.xlu0 %2440  ;;  %v2465_v8 = vmul.f32 %v2443_v39, %v5369_v55 }
 0xde5   :  { %v2464_v40 = vmul.f32 %v2441_v34, %v5304_v11  ;;  %v2483_v38 = vrot.slane %v2466_v51, 3 }
 0xde6   :  { %v2481_v17 = vrot.slane %v2465_v8, 4 }
 0xde7   :  { %v2480_v3 = vrot.slane %v2464_v40, 5 }
 0xde9   :  { %v2482_v25 = vsel %vm524_vm3, %v2481_v17, %v2480_v3 }
 0xdea   :  { %v2453_v43 = vpop.permute.xlu2 %2452  ;;  %v2484_v11 = vsel %vm527_vm4, %v2483_v38, %v2482_v25 }
 0xdeb   :  { %v2449_v7 = vpop.permute.xlu1 %2448  ;;  %v2470_v58 = vmul.f32 %v2453_v43, %v5386_v23 }
 0xdec   :  { %v2447_v46 = vpop.permute.xlu0 %2446  ;;  %v2468_v2 = vmul.f32 %v2449_v7, %v5389_v62 }
 0xded   :  { %v2467_v10 = vmul.f32 %v2447_v46, %v5324_v6  ;;  %v2490_v45 = vrot.slane %v2470_v58, 7 }
 0xdee   :  { %v2487_v55 = vrot.slane %v2468_v2, 1 }
 0xdef   :  { %v2485_v52 = vrot.slane %v2467_v10, 2 }
 0xdf1   :  { %v2486_v44 = vsel %vm530_vm5, %v2485_v52, %v2484_v11 }
 0xdf2   :  { %v2488_v62 = vsel %vm533_vm6, %v2487_v55, %v2486_v44 }
 0xdf3   :  { %v2455_v0 = vpop.permute.xlu1 %2454 }
 0xdf4   :  { %v2471_v16 = vmul.f32 %v2455_v0, %v5400_v33  ;;  %v2451_v56 = vpop.permute.xlu0 %2450 }
 0xdf5   :  { %v2469_v6 = vmul.f32 %v2451_v56, %v5346_v57 }
 0xdf6   :  { %v2492_v30 = vrot.slane %v2471_v16, 6 }
 0xdf7   :  { %v2489_v26 = vsel %vm536_vm7, %v2469_v6, %v2488_v62 }
 0xdf8   :  { %v2491_v35 = vsel %vm539_vm8, %v2490_v45, %v2489_v26 }
 0xdf9   :  { %v2493_v23 = vsel %vm542_vm9, %v2492_v30, %v2491_v35 }
 0xdfa   :  { %2494 = vrot.lane.b32.xlu2 %v2493_v23, %s4166_s19 }
 0xe54   :  { %v2495_v21 = vpop.permute.xlu2 %2494 }
 0xe55   :  { %3461 = vmatmul.msk.f32.vlgmr.msrb.gmra.mxu1 %vm171_vm10, %v2495_v21 }
 0xed2   :  { %v2515_v28 = vpop.f32.mrf.mxu1 }
 0xed3   :  { %v2519_v33 = vrot.slane %v2515_v28, 2  ;;  %v2520_v48 = vrot.slane %v2515_v28, 3  ;;  %v2521_v24 = vrot.slane %v2515_v28, 4  ;;  %v2522_v50 = vrot.slane %v2515_v28, 5 }
 0xed4   :  { %v2523_v27 = vrot.slane %v2515_v28, 6  ;;  %v2524_v15 = vrot.slane %v2515_v28, 7  ;;  %v2525_v13 = vrot.slane %v2515_v28, 1  ;;  %v2540_v5 = vadd.f32 %v2515_v28, %v4263_v41 }
 0xed5   :  { %v2534_v57 = vadd.f32 %v2519_v33, %v4245_v18  ;;  %v2535_v12 = vadd.f32 %v2520_v48, %v4247_v20  ;;  %v2536_v19 = vadd.f32 %v2521_v24, %v4256_v32  ;;  %v2537_v37 = vadd.f32 %v2522_v50, %v4265_v42 }
 0xed6   :  { %v2538_v60 = vadd.f32 %v2523_v27, %v4249_v22  ;;  %v2539_v36 = vadd.f32 %v2524_v15, %v4254_v29  ;;  %v2541_v39 = vadd.f32 %v2525_v13, %v4268_v49  ;;  %v3468_v28 = vmul.f32 -1.442695, %v2540_v5 }
 0xed7   :  { %3892 = vtanh.f32 %v2534_v57  ;;  %v3464_v3 = vmul.f32 -1.442695, %v2536_v19  ;;  %v3462_v2 = vmul.f32 -1.442695, %v2534_v57  ;;  %v3463_v52 = vmul.f32 -1.442695, %v2535_v12 }
 0xed8   :  { %3894 = vtanh.f32 %v2535_v12  ;;  %v3467_v7 = vmul.f32 -1.442695, %v2539_v36  ;;  %v3465_v55 = vmul.f32 -1.442695, %v2537_v37  ;;  %v3466_v16 = vmul.f32 -1.442695, %v2538_v60 }
 0xed9   :  { %3896 = vtanh.f32 %v2536_v19  ;;  %v3469_v26 = vmul.f32 -1.442695, %v2541_v39 }
 0xeda   :  { %3898 = vtanh.f32 %v2537_v37 }
 0xedb   :  { %3900 = vtanh.f32 %v2538_v60 }
 0xedc   :  { %3902 = vtanh.f32 %v2539_v36 }
 0xedd   :  { %v3893_v54 = vpop.eup %3892  ;;  %3904 = vtanh.f32 %v2541_v39 }
 0xede   :  { %2742 = vrot.lane.b32.xlu0 %v3893_v54, %s4163_s3  ;;  %v3895_v9 = vpop.eup %3894  ;;  %3906 = vtanh.f32 %v2540_v5 }
 0xedf   :  { %v3897_v53 = vpop.eup %3896  ;;  %2744 = vrot.lane.b32.xlu1 %v3895_v9, %s4163_s3  ;;  %3908 = vpow2.f32 %v3464_v3 }
 0xee0   :  { %2746 = vrot.lane.b32.xlu2 %v3897_v53, %s4163_s3  ;;  %v3899_v34 = vpop.eup %3898  ;;  %3910 = vpow2.f32 %v3467_v7 }
 0xee1   :  { %v3901_v8 = vpop.eup %3900 }
 0xee2   :  { %v3903_v40 = vpop.eup %3902 }
 0xee3   :  { %v3905_v51 = vpop.eup %3904 }
 0xee4   :  { %v3907_v17 = vpop.eup %3906 }
 0xee5   :  { %v3909_v46 = vpop.eup %3908 }
 0xee6   :  { %2748 = vrot.lane.b32.xlu0 %v3899_v34, %s4163_s3  ;;  %v2568_v10 = vadd.f32 1.0, %v3909_v46  ;;  %v3911_v38 = vpop.eup %3910 }
 0xee7   :  { %2750 = vrot.lane.b32.xlu1 %v3901_v8, %s4163_s3  ;;  %v5485_v25 = vadd.f32 1.0, %v3911_v38 }
 0xee8   :  { %2752 = vrot.lane.b32.xlu2 %v3903_v40, %s4163_s3  ;;  %3912 = vrcp.f32 %v2568_v10  ;;  %v2615_v33 = vand.u32 2147483648, %v2568_v10  ;;  %vm2609_vm1 = vweird.f32 %v2568_v10  ;;  %v2613_v48 = vand.u32 2147483647, %v2568_v10 }
 0xee9   :  { %3914 = vpow2.f32 %v3462_v2  ;;  %v2660_v53 = vand.u32 2147483648, %v5485_v25  ;;  %vm2654_vm13 = vweird.f32 %v5485_v25  ;;  %v2658_v34 = vand.u32 2147483647, %v5485_v25 }
 0xeea   :  { %3916 = vrcp.f32 %v5485_v25  ;;  %v2616_v50 = vor.u32 1.1754944e-38, %v2615_v33  ;;  %vm2614_vm11 = vcmp.eq.f32.partialorder %v2613_v48, 8.507059e+37 }
 0xeeb   :  { %3918 = vpow2.f32 %v3463_v52  ;;  %vm2659_vm0 = vcmp.eq.f32.partialorder %v2658_v34, 8.507059e+37 }
 0xeec   :  { %3920 = vpow2.f32 %v3465_v55 }
 0xeed   :  { %3922 = vpow2.f32 %v3466_v16 }
 0xeee   :  { %2756 = vrot.lane.b32.xlu0 %v3905_v51, %s4163_s3  ;;  %v3913_v43 = vpop.eup %3912 }
 0xeef   :  { %2754 = vrot.lane.b32.xlu1 %v3907_v17, %s4163_s3  ;;  %v2605_v58 = vmul.f32 %v3913_v43, %v2568_v10  ;;  %v3915_v11 = vpop.eup %3914  ;;  %vm2610_vm14 = vweird.f32 %v3913_v43  ;;  %v2661_v17 = vor.u32 1.1754944e-38, %v2660_v53 }
 0xef0   :  { %v3917_v0 = vpop.eup %3916  ;;  %v5489_v30 = vadd.f32 1.0, %v3915_v11  ;;  %vm2611_vm2 = vmor %vm2609_vm1, %vm2610_vm14 }
 0xef1   :  { %v2606_v44 = vsub.f32 1.0, %v2605_v58  ;;  %v3919_v56 = vpop.eup %3918  ;;  %v2650_v45 = vmul.f32 %v3917_v0, %v5485_v25  ;;  %vm2655_vm12 = vweird.f32 %v3917_v0 }
 0xef2   :  { %v5491_v62 = vadd.f32 1.0, %v3919_v56  ;;  %3924 = vrcp.f32 %v5489_v30  ;;  %v3921_v21 = vpop.eup %3920  ;;  %vm2656_vm15 = vmor %vm2654_vm13, %vm2655_vm12  ;;  %vm2579_vm1 = vweird.f32 %v5489_v30  ;;  %v2585_v56 = vand.u32 2147483648, %v5489_v30 }
 0xef3   :  { %v2607_v6 = vmul.f32 %v3913_v43, %v2606_v44  ;;  %v2651_v23 = vsub.f32 1.0, %v2650_v45  ;;  %v3923_v24 = vpop.eup %3922  ;;  %v5495_v19 = vadd.f32 1.0, %v3921_v21  ;;  %v2583_v45 = vand.u32 2147483647, %v5489_v30 }
 0xef4   :  { %3926 = vrcp.f32 %v5491_v62  ;;  %v5499_v15 = vadd.f32 1.0, %v3923_v24  ;;  %v2600_v21 = vand.u32 2147483648, %v5491_v62  ;;  %vm2594_vm12 = vweird.f32 %v5491_v62 }
 0xef5   :  { %v2608_v35 = vadd.f32 %v3913_v43, %v2607_v6  ;;  %3928 = vpow2.f32 %v3469_v26  ;;  %v2652_v12 = vmul.f32 %v3917_v0, %v2651_v23  ;;  %v2598_v23 = vand.u32 2147483647, %v5491_v62 }
 0xef6   :  { %3930 = vpow2.f32 %v3468_v28  ;;  %v2630_v34 = vand.u32 2147483648, %v5495_v19 }
 0xef7   :  { %v2612_v57 = vsel %vm2611_vm2, %v3913_v43, %v2608_v35  ;;  %v2653_v9 = vadd.f32 %v3917_v0, %v2652_v12  ;;  %3932 = vrcp.f32 %v5495_v19 }
 0xef8   :  { %v5497_v27 = vpop.eup %3924  ;;  %v5501_v54 = vsel %vm2614_vm11, %v2616_v50, %v2612_v57  ;;  %3934 = vrcp.f32 %v5499_v15  ;;  %v2601_v50 = vor.u32 1.1754944e-38, %v2600_v21 }
 0xef9   :  { %v2575_v39 = vmul.f32 %v5497_v27, %v5489_v30  ;;  %v2657_v40 = vsel %vm2656_vm15, %v3917_v0, %v2653_v9  ;;  %vm2580_vm14 = vweird.f32 %v5497_v27  ;;  %v2586_v30 = vor.u32 1.1754944e-38, %v2585_v56 }
 0xefa   :  { %v5503_v60 = vpop.eup %3926  ;;  %v5522_v10 = vsel %vm2659_vm0, %v2661_v17, %v2657_v40  ;;  %vm2581_vm11 = vmor %vm2579_vm1, %vm2580_vm14  ;;  %vm2584_vm15 = vcmp.eq.f32.partialorder %v2583_v45, 8.507059e+37  ;;  %vm2599_vm0 = vcmp.eq.f32.partialorder %v2598_v23, 8.507059e+37  ;;  %vm2624_vm1 = vweird.f32 %v5495_v19 }
 0xefb   :  { %v3929_v13 = vpop.eup %3928  ;;  %v2590_v8 = vmul.f32 %v5503_v60, %v5491_v62  ;;  %v2576_v3 = vsub.f32 1.0, %v2575_v39  ;;  %vm2595_vm2 = vweird.f32 %v5503_v60  ;;  %v2628_v39 = vand.u32 2147483647, %v5495_v19 }
 0xefc   :  { %v3931_v5 = vpop.eup %3930  ;;  %v5516_v51 = vadd.f32 1.0, %v3929_v13  ;;  %vm5554_vm13 = vmor %vm2594_vm12, %vm2595_vm2  ;;  %v2645_v17 = vand.u32 2147483648, %v5499_v15  ;;  %vm2639_vm12 = vweird.f32 %v5499_v15 }
 0xefd   :  { %v5518_v7 = vpop.eup %3932  ;;  %v5520_v46 = vadd.f32 1.0, %v3931_v5  ;;  %v2591_v2 = vsub.f32 1.0, %v2590_v8  ;;  %v2577_v52 = vmul.f32 %v5497_v27, %v2576_v3  ;;  %v2643_v3 = vand.u32 2147483647, %v5499_v15 }
 0xefe   :  { %v5524_v25 = vpop.eup %3934  ;;  %3936 = vrcp.f32 %v5516_v51  ;;  %v2620_v58 = vmul.f32 %v5518_v7, %v5495_v19  ;;  %vm2625_vm14 = vweird.f32 %v5518_v7  ;;  %v2688_v45 = vand.u32 2147483647, %v5516_v51 }
 0xeff   :  { %3938 = vrcp.f32 %v5520_v46  ;;  %v2592_v55 = vmul.f32 %v5503_v60, %v2591_v2  ;;  %v2635_v11 = vmul.f32 %v5524_v25, %v5499_v15  ;;  %v2578_v44 = vadd.f32 %v5497_v27, %v2577_v52 }
 0xf00   :  { %v2621_v0 = vsub.f32 1.0, %v2620_v58  ;;  %vm2640_vm2 = vweird.f32 %v5524_v25  ;;  %v2631_v2 = vor.u32 1.1754944e-38, %v2630_v34  ;;  %v2646_v58 = vor.u32 1.1754944e-38, %v2645_v17 }
 0xf01   :  { %v2593_v6 = vadd.f32 %v5503_v60, %v2592_v55  ;;  %v2636_v26 = vsub.f32 1.0, %v2635_v11  ;;  %v2582_v28 = vsel %vm2581_vm11, %v5497_v27, %v2578_v44  ;;  %vm2626_vm11 = vmor %vm2624_vm1, %vm2625_vm14  ;;  %v2673_v23 = vand.u32 2147483647, %v5520_v46 }
 0xf02   :  { %v2622_v33 = vmul.f32 %v5518_v7, %v2621_v0 }
 0xf03   :  { %v2597_v57 = vsel %vm5554_vm13, %v5503_v60, %v2593_v6  ;;  %v2637_v12 = vmul.f32 %v5524_v25, %v2636_v26  ;;  %vm2641_vm13 = vmor %vm2639_vm12, %vm2640_vm2  ;;  %vm2684_vm2 = vweird.f32 %v5516_v51  ;;  %v2675_v26 = vand.u32 2147483648, %v5520_v46 }
 0xf04   :  { %v5538_v16 = vpop.eup %3936  ;;  %v2623_v9 = vadd.f32 %v5518_v7, %v2622_v33  ;;  %v5569_v60 = vsel %vm2599_vm0, %v2601_v50, %v2597_v57  ;;  %vm2644_vm0 = vcmp.eq.f32.partialorder %v2643_v3, 8.507059e+37  ;;  %vm2669_vm12 = vweird.f32 %v5520_v46 }
 0xf05   :  { %v5545_v35 = vpop.eup %3938  ;;  %v2680_v48 = vmul.f32 %v5538_v16, %v5516_v51  ;;  %v2638_v8 = vadd.f32 %v5524_v25, %v2637_v12  ;;  %vm2685_vm14 = vweird.f32 %v5538_v16 }
 0xf06   :  { %v2665_v62 = vmul.f32 %v5545_v35, %v5520_v46  ;;  %v2627_v19 = vsel %vm2626_vm11, %v5518_v7, %v2623_v9  ;;  %vm2670_vm1 = vweird.f32 %v5545_v35  ;;  %vm2686_vm11 = vmor %vm2684_vm2, %vm2685_vm14  ;;  %v2710_v46 = vrot.slane %v5410_v1, 7 }
 0xf07   :  { %v2681_v13 = vsub.f32 1.0, %v2680_v48  ;;  %v2676_v48 = vor.u32 1.1754944e-38, %v2675_v26  ;;  %vm5902_vm14 = vcmask 261120  }
 0xf08   :  { %v2666_v40 = vsub.f32 1.0, %v2665_v62 }
 0xf0a   :  { %v2667_v52 = vmul.f32 %v5545_v35, %v2666_v40 }
 0xf0c   :  { %v2668_v6 = vadd.f32 %v5545_v35, %v2667_v52  ;;  %v2711_v52 = vrot.slane %v5408_v4, 7  ;;  %v2716_v4 = vrot.slane %v5447_v63, 7 }
 0xf3a   :  { %v2747_v37 = vpop.permute.xlu2 %2746 }
 0xf3b   :  { %v2768_v36 = vmul.f32 %v2747_v37, %v5501_v54  ;;  %v5564_v37 = vsel %vm2584_vm15, %v2586_v30, %v2582_v28  ;;  %vm2629_vm15 = vcmp.eq.f32.partialorder %v2628_v39, 8.507059e+37  ;;  %v2715_v39 = vrot.slane %v5432_v47, 7 }
 0xf3c   :  { %v5586_v55 = vsel %vm2629_vm15, %v2631_v2, %v2627_v19  ;;  %vm2689_vm15 = vcmp.eq.f32.partialorder %v2688_v45, 8.507059e+37 }
 0xf3d   :  { %2786 = vrot.lane.b32.xlu1 %v2768_v36, %s4164_s17 }
 0xf42   :  { %v2753_v38 = vpop.permute.xlu2 %2752 }
 0xf43   :  { %v2771_v43 = vmul.f32 %v2753_v38, %v5522_v10  ;;  %v2682_v38 = vmul.f32 %v5538_v16, %v2681_v13 }
 0xf45   :  { %2792 = vrot.lane.b32.xlu1 %v2771_v43, %s4164_s17  ;;  %v2642_v43 = vsel %vm2641_vm13, %v5524_v25, %v2638_v8  ;;  %v2683_v15 = vadd.f32 %v5538_v16, %v2682_v38  ;;  %v2690_v25 = vand.u32 2147483648, %v5516_v51  ;;  %vm2671_vm13 = vmor %vm2669_vm12, %vm2670_vm1  ;;  %v2731_v8 = vmul.f32 %v2715_v39, %v5522_v10 }
 0xf46   :  { %v5591_v7 = vsel %vm2644_vm0, %v2646_v58, %v2642_v43  ;;  %v2672_v33 = vsel %vm2671_vm13, %v5545_v35, %v2668_v6  ;;  %vm2674_vm0 = vcmp.eq.f32.partialorder %v2673_v23, 8.507059e+37  ;;  %v2712_v35 = vrot.slane %v5440_v61, 7 }
 0xf47   :  { %v2687_v21 = vsel %vm2686_vm11, %v5538_v16, %v2683_v15  ;;  %v2691_v28 = vor.u32 1.1754944e-38, %v2690_v25  ;;  %v5609_v57 = vsel %vm2674_vm0, %v2676_v48, %v2672_v33  ;;  %v2726_v16 = vmul.f32 %v2710_v46, %v5564_v37 }
 0xf48   :  { %v2727_v58 = vmul.f32 %v2711_v52, %v5569_v60  ;;  %v2714_v15 = vrot.slane %v5418_v31, 7  ;;  %v2732_v45 = vmul.f32 %v2716_v4, %v5609_v57  ;;  %v3253_v52 = vld [vmem:[#allocation2 + $0xf] sm:$0x1] }
 0xf49   :  { %v5606_v24 = vsel %vm2689_vm15, %v2691_v28, %v2687_v21 }
 0xf50   :  { %v2743_v27 = vpop.permute.xlu0 %2742 }
 0xf51   :  { %v2766_v36 = vmul.f32 %v2743_v27, %v5564_v37  ;;  %v2745_v53 = vpop.permute.xlu1 %2744 }
 0xf52   :  { %v2767_v5 = vmul.f32 %v2745_v53, %v5569_v60  ;;  %v2713_v53 = vrot.slane %v5420_v59, 7  ;;  %v2717_v59 = vrot.slane %v5430_v14, 7 }
 0xf53   :  { %2782 = vrot.lane.b32.xlu2 %v2766_v36, %s4164_s17  ;;  %v2728_v36 = vmul.f32 %v2712_v35, %v5501_v54 }
 0xf54   :  { %2784 = vrot.lane.b32.xlu0 %v2767_v5, %s4164_s17  ;;  %v2729_v1 = vmul.f32 %v2713_v53, %v5586_v55  ;;  %v2733_v47 = vmul.f32 %v2717_v59, %v5606_v24 }
 0xf58   :  { %v2749_v11 = vpop.permute.xlu0 %2748 }
 0xf59   :  { %v2769_v44 = vmul.f32 %v2749_v11, %v5586_v55  ;;  %v2751_v0 = vpop.permute.xlu1 %2750 }
 0xf5a   :  { %v2770_v56 = vmul.f32 %v2751_v0, %v5591_v7  ;;  %v2730_v0 = vmul.f32 %v2714_v15, %v5591_v7  ;;  %v3260_v15 = vld [vmem:[#allocation8] sm:$0xff] }
 0xf5b   :  { %2788 = vrot.lane.b32.xlu2 %v2769_v44, %s4164_s17 }
 0xf5c   :  { %2790 = vrot.lane.b32.xlu0 %v2770_v56, %s4164_s17 }
 0xf60   :  { %v2757_v51 = vpop.permute.xlu0 %2756 }
 0xf61   :  { %v2773_v30 = vmul.f32 %v2757_v51, %v5606_v24  ;;  %v2755_v12 = vpop.permute.xlu1 %2754 }
 0xf62   :  { %v2772_v62 = vmul.f32 %v2755_v12, %v5609_v57 }
 0xf63   :  { %2796 = vrot.lane.b32.xlu2 %v2773_v30, %s4164_s17 }
 0xf64   :  { %2794 = vrot.lane.b32.xlu0 %v2772_v62, %s4164_s17 }
 0xfad   :  { %v2783_v50 = vpop.permute.xlu2 %2782 }
 0xfae   :  { %v5617_v27 = vadd.f32 %v2783_v50, %v2726_v16 }
 0xfaf   :  { %v2787_v9 = vpop.permute.xlu1 %2786 }
 0xfb0   :  { %3940 = vtanh.f32 %v5617_v27  ;;  %v5621_v13 = vadd.f32 %v2787_v9, %v2728_v36 }
 0xfb2   :  { %3942 = vtanh.f32 %v5621_v13 }
 0xfb5   :  { %v2789_v34 = vpop.permute.xlu2 %2788 }
 0xfb6   :  { %v3941_v61 = vpop.eup %3940  ;;  %v5627_v5 = vadd.f32 %v2789_v34, %v2729_v1 }
 0xfb7   :  { %2830 = vrot.lane.b32.xlu1 %v3941_v61, %s4165_s18  ;;  %v2793_v40 = vpop.permute.xlu1 %2792 }
 0xfb8   :  { %3944 = vtanh.f32 %v5627_v5  ;;  %v3943_v17 = vpop.eup %3942  ;;  %v5632_v3 = vadd.f32 %v2793_v40, %v2731_v8 }
 0xfb9   :  { %2834 = vrot.lane.b32.xlu0 %v3943_v17, %s4165_s18 }
 0xfba   :  { %3946 = vtanh.f32 %v5632_v3 }
 0xfbd   :  { %v2797_v19 = vpop.permute.xlu2 %2796 }
 0xfbe   :  { %v3945_v38 = vpop.eup %3944  ;;  %v5638_v2 = vadd.f32 %v2797_v19, %v2733_v47 }
 0xfbf   :  { %2836 = vrot.lane.b32.xlu1 %v3945_v38, %s4165_s18  ;;  %v3262_v38 = vld [vmem:[#allocation8 + $0x10] sm:$0xff] }
 0xfc0   :  { %3948 = vtanh.f32 %v5638_v2  ;;  %v3947_v43 = vpop.eup %3946 }
 0xfc1   :  { %2840 = vrot.lane.b32.xlu0 %v3947_v43, %s4165_s18  ;;  %v3261_v43 = vld [vmem:[#allocation8 + $0x8] sm:$0xff] }
 0xfc6   :  { %v3949_v14 = vpop.eup %3948  ;;  %v2785_v11 = vpop.permute.xlu0 %2784 }
 0xfc7   :  { %2844 = vrot.lane.b32.xlu1 %v3949_v14, %s4165_s18  ;;  %v5646_v44 = vadd.f32 %v2785_v11, %v2727_v58  ;;  %v3254_v14 = vld [vmem:[#allocation2 + $0x17] sm:$0x1]  ;;  %v3256_v58 = vld [vmem:[#allocation2 + $0x27] sm:$0x1] }
 0xfc8   :  { %v3252_v11 = vld [vmem:[#allocation2 + $0x7] sm:$0x1] }
 0xfc9   :  { %3950 = vtanh.f32 %v5646_v44 }
 0xfce   :  { %v2791_v25 = vpop.permute.xlu0 %2790 }
 0xfcf   :  { %v3951_v56 = vpop.eup %3950  ;;  %v5651_v6 = vadd.f32 %v2791_v25, %v2730_v0  ;;  %v3258_v0 = vld [vmem:[#allocation2 + $0x37] sm:$0x1]  ;;  %v3276_v25 = vrot.slane %v3253_v52, 7 }
 0xfd0   :  { %2832 = vrot.lane.b32.xlu2 %v3951_v56, %s4165_s18  ;;  %v3278_v56 = vrot.slane %v3254_v14, 6 }
 0xfd1   :  { %3952 = vtanh.f32 %v5651_v6 }
 0xfd6   :  { %v2795_v26 = vpop.permute.xlu0 %2794 }
 0xfd7   :  { %v3953_v23 = vpop.eup %3952  ;;  %v5657_v21 = vadd.f32 %v2795_v26, %v2732_v45  ;;  %v3259_v45 = vld [vmem:[#allocation2 + $0x3f] sm:$0x1]  ;;  %v3282_v26 = vrot.slane %v3256_v58, 4 }
 0xfd8   :  { %2838 = vrot.lane.b32.xlu2 %v3953_v23, %s4165_s18  ;;  %v3277_v23 = vsel %vm524_vm3, %v3276_v25, %v3252_v11 }
 0xfd9   :  { %3954 = vtanh.f32 %v5657_v21 }
 0xfdf   :  { %v3955_v31 = vpop.eup %3954 }
 0xfe0   :  { %2842 = vrot.lane.b32.xlu2 %v3955_v31, %s4165_s18 }
0x1029   :  { %v2831_v28 = vpop.permute.xlu1 %2830 }
0x102a   :  { %v2833_v33 = vpop.permute.xlu2 %2832  ;;  %v2854_v48 = vmul.f32 %v2831_v28, %v5564_v37  ;;  %v3279_v28 = vsel %vm527_vm4, %v3278_v56, %v3277_v23 }
0x102b   :  { %v2835_v51 = vpop.permute.xlu0 %2834  ;;  %v2855_v63 = vmul.f32 %v2833_v33, %v5569_v60  ;;  %v3286_v33 = vrot.slane %v3258_v0, 2 }
0x102c   :  { %v2856_v30 = vmul.f32 %v2835_v51, %v5501_v54  ;;  %v2870_v62 = vrot.slane %v2854_v48, 6  ;;  %v3288_v51 = vrot.slane %v3259_v45, 1 }
0x102d   :  { %v2871_v12 = vrot.slane %v2855_v63, 5 }
0x102e   :  { %v2873_v16 = vrot.slane %v2856_v30, 4 }
0x102f   :  { %v2872_v50 = vsel %vm524_vm3, %v2871_v12, %v2870_v62 }
0x1030   :  { %v2874_v37 = vsel %vm527_vm4, %v2873_v16, %v2872_v50 }
0x1031   :  { %v2837_v46 = vpop.permute.xlu1 %2836 }
0x1032   :  { %v2857_v35 = vmul.f32 %v2837_v46, %v5586_v55  ;;  %v2839_v36 = vpop.permute.xlu2 %2838 }
0x1033   :  { %v2841_v9 = vpop.permute.xlu0 %2840  ;;  %v2858_v53 = vmul.f32 %v2839_v36, %v5591_v7 }
0x1034   :  { %v2875_v1 = vrot.slane %v2857_v35, 3  ;;  %v2859_v60 = vmul.f32 %v2841_v9, %v5522_v10  ;;  %v3263_v10 = vld [vmem:[#allocation8 + $0x18] sm:$0xff] }
0x1035   :  { %v2877_v39 = vrot.slane %v2858_v53, 2  ;;  %3304 = vmatpush.msrb.mxu3 %v3263_v10 }
0x1036   :  { %v2876_v54 = vsel %vm530_vm5, %v2875_v1, %v2874_v37  ;;  %v2879_v55 = vrot.slane %v2859_v60, 1 }
0x1037   :  { %v2878_v61 = vsel %vm533_vm6, %v2877_v39, %v2876_v54  ;;  %3305 = vmatpush.msrb.mxu3 %v3262_v38 }
0x1038   :  { %v2880_v7 = vsel %vm536_vm7, %v2879_v55, %v2878_v61 }
0x1039   :  { %v2845_v34 = vpop.permute.xlu1 %2844  ;;  %3306 = vmatpush.msrb.mxu3 %v3261_v43 }
0x103a   :  { %v2861_v8 = vmul.f32 %v2845_v34, %v5606_v24  ;;  %v2843_v40 = vpop.permute.xlu2 %2842  ;;  %v3255_v24 = vld [vmem:[#allocation2 + $0x1f] sm:$0x1] }
0x103b   :  { %v2860_v17 = vmul.f32 %v2843_v40, %v5609_v57  ;;  %v3257_v57 = vld [vmem:[#allocation2 + $0x2f] sm:$0x1]  ;;  %v3280_v4 = vrot.slane %v3255_v24, 5  ;;  %3307 = vmatpush.msrb.mxu3 %v3260_v15 }
0x103c   :  { %v2882_v59 = vrot.slane %v2861_v8, 7  ;;  %v3284_v31 = vrot.slane %v3257_v57, 3 }
0x103d   :  { %v2881_v47 = vsel %vm539_vm8, %v2860_v17, %v2880_v7  ;;  %v3281_v48 = vsel %vm530_vm5, %v3280_v4, %v3279_v28 }
0x103e   :  { %v2883_v19 = vsel %vm542_vm9, %v2882_v59, %v2881_v47  ;;  %v3283_v63 = vsel %vm533_vm6, %v3282_v26, %v3281_v48 }
0x103f   :  { %2884 = vrot.lane.b32.xlu0 %v2883_v19, %s4166_s19  ;;  %v3285_v30 = vsel %vm536_vm7, %v3284_v31, %v3283_v63 }
0x1040   :  { %v3287_v12 = vsel %vm539_vm8, %v3286_v33, %v3285_v30 }
0x1041   :  { %v3289_v62 = vsel %vm542_vm9, %v3288_v51, %v3287_v12 }
0x1042   :  { %3479 = vmatmul.msk.f32.vlgmr.msrb.gmra.mxu3 %vm5902_vm14, %v3289_v62 }
0x10b1   :  { %v2885_v46 = vpop.permute.xlu0 %2884 }
0x10b2   :  { %3470 = vmatmul.msk.f32.vlgmr.msrb.gmra.mxu2 %vm171_vm10, %v2885_v46 }
0x1135   :  { %v2905_v16 = vpop.f32.mrf.mxu2 }
0x1136   :  { %v2910_v35 = vrot.slane %v2905_v16, 2  ;;  %v2911_v50 = vrot.slane %v2905_v16, 3  ;;  %v2912_v36 = vrot.slane %v2905_v16, 4  ;;  %v2913_v39 = vrot.slane %v2905_v16, 5 }
0x1137   :  { %v2914_v37 = vrot.slane %v2905_v16, 6  ;;  %v2915_v60 = vrot.slane %v2905_v16, 7 }
0x1138   :  { %v2925_v9 = vadd.f32 %v2910_v35, %v4247_v20  ;;  %v2926_v53 = vadd.f32 %v2911_v50, %v4256_v32  ;;  %v2927_v1 = vadd.f32 %v2912_v36, %v4265_v42  ;;  %v2928_v54 = vadd.f32 %v2913_v39, %v4249_v22  ;;  %v3507_v39 = vld [vmem:[%s5891_s5] ss:$0 sm:$0xff]  ;;  %s4167_s5 = smov 48  }
0x1139   :  { %v2929_v34 = vadd.f32 %v2914_v37, %v4254_v29  ;;  %v2930_v8 = vadd.f32 %v2915_v60, %v4263_v41  ;;  %v2909_v32 = vrot.slane %v2905_v16, 1  ;;  %v2931_v42 = vadd.f32 %v2905_v16, %v4268_v49 }
0x113a   :  { %3956 = vtanh.f32 %v2925_v9  ;;  %v3473_v49 = vmul.f32 -1.442695, %v2926_v53  ;;  %v3472_v43 = vmul.f32 -1.442695, %v2925_v9  ;;  %v3474_v52 = vmul.f32 -1.442695, %v2927_v1 }
0x113b   :  { %3958 = vtanh.f32 %v2926_v53  ;;  %v2924_v22 = vadd.f32 %v2909_v32, %v4245_v18  ;;  %v3476_v18 = vmul.f32 -1.442695, %v2929_v34  ;;  %v3475_v11 = vmul.f32 -1.442695, %v2928_v54 }
0x113c   :  { %3960 = vtanh.f32 %v2927_v1  ;;  %v3477_v15 = vmul.f32 -1.442695, %v2930_v8  ;;  %v3478_v31 = vmul.f32 -1.442695, %v2931_v42 }
0x113d   :  { %3962 = vtanh.f32 %v2928_v54  ;;  %v3471_v33 = vmul.f32 -1.442695, %v2924_v22  ;;  %v3309_v54 = vpop.f32.mrf.mxu3 }
0x113e   :  { %3964 = vtanh.f32 %v2929_v34  ;;  %v5735_v32 = vadd.f32 %v3507_v39, %v3309_v54 }
0x113f   :  { %3966 = vtanh.f32 %v2930_v8 }
0x1140   :  { %v3957_v61 = vpop.eup %3956  ;;  %3968 = vtanh.f32 %v2931_v42 }
0x1141   :  { %v3959_v55 = vpop.eup %3958  ;;  %3134 = vrot.lane.b32.xlu1 %v3957_v61, %s4163_s3  ;;  %3970 = vtanh.f32 %v2924_v22 }
0x1142   :  { %v3961_v20 = vpop.eup %3960  ;;  %3136 = vrot.lane.b32.xlu2 %v3959_v55, %s4163_s3  ;;  %3972 = vpow2.f32 %v3473_v49 }
0x1143   :  { %3138 = vrot.lane.b32.xlu0 %v3961_v20, %s4163_s3  ;;  %v3963_v29 = vpop.eup %3962  ;;  %3974 = vpow2.f32 %v3476_v18 }
0x1144   :  { %v3965_v40 = vpop.eup %3964 }
0x1145   :  { %v3967_v41 = vpop.eup %3966 }
0x1146   :  { %v3969_v17 = vpop.eup %3968 }
0x1147   :  { %v3971_v59 = vpop.eup %3970 }
0x1148   :  { %v3973_v7 = vpop.eup %3972 }
0x1149   :  { %3140 = vrot.lane.b32.xlu1 %v3963_v29, %s4163_s3  ;;  %v2958_v47 = vadd.f32 1.0, %v3973_v7  ;;  %v3975_v19 = vpop.eup %3974 }
0x114a   :  { %3142 = vrot.lane.b32.xlu2 %v3965_v40, %s4163_s3  ;;  %v5703_v10 = vadd.f32 1.0, %v3975_v19 }
0x114b   :  { %3144 = vrot.lane.b32.xlu0 %v3967_v41, %s4163_s3  ;;  %3976 = vrcp.f32 %v2958_v47  ;;  %v3005_v28 = vand.u32 2147483648, %v2958_v47  ;;  %vm2999_vm1 = vweird.f32 %v2958_v47  ;;  %v3003_v48 = vand.u32 2147483647, %v2958_v47 }
0x114c   :  { %3978 = vrcp.f32 %v5703_v10  ;;  %v3050_v1 = vand.u32 2147483648, %v5703_v10  ;;  %vm3044_vm13 = vweird.f32 %v5703_v10  ;;  %v3048_v60 = vand.u32 2147483647, %v5703_v10 }
0x114d   :  { %3980 = vpow2.f32 %v3472_v43  ;;  %v3006_v62 = vor.u32 1.1754944e-38, %v3005_v28  ;;  %vm3004_vm11 = vcmp.eq.f32.partialorder %v3003_v48, 8.507059e+37  ;;  %v3103_v28 = vrot.slane %v5627_v5, 7 }
0x114e   :  { %3982 = vpow2.f32 %v3474_v52  ;;  %v3051_v20 = vor.u32 1.1754944e-38, %v3050_v1  ;;  %vm3049_vm0 = vcmp.eq.f32.partialorder %v3048_v60, 8.507059e+37 }
0x114f   :  { %3984 = vpow2.f32 %v3475_v11 }
0x1150   :  { %3986 = vpow2.f32 %v3477_v15 }
0x1151   :  { %3146 = vrot.lane.b32.xlu1 %v3969_v17, %s4163_s3  ;;  %v3977_v38 = vpop.eup %3976 }
0x1152   :  { %3132 = vrot.lane.b32.xlu2 %v3971_v59, %s4163_s3  ;;  %v2995_v14 = vmul.f32 %v3977_v38, %v2958_v47  ;;  %v3979_v58 = vpop.eup %3978  ;;  %vm3000_vm9 = vweird.f32 %v3977_v38 }
0x1153   :  { %v3981_v57 = vpop.eup %3980  ;;  %v3040_v25 = vmul.f32 %v3979_v58, %v5703_v10  ;;  %vm3001_vm2 = vmor %vm2999_vm1, %vm3000_vm9  ;;  %vm3045_vm12 = vweird.f32 %v3979_v58 }
0x1154   :  { %v2996_v24 = vsub.f32 1.0, %v2995_v14  ;;  %v3983_v56 = vpop.eup %3982  ;;  %v5707_v4 = vadd.f32 1.0, %v3981_v57  ;;  %vm3046_vm15 = vmor %vm3044_vm13, %vm3045_vm12 }
0x1155   :  { %v3041_v26 = vsub.f32 1.0, %v3040_v25  ;;  %v5709_v23 = vadd.f32 1.0, %v3983_v56  ;;  %v3985_v51 = vpop.eup %3984 }
0x1156   :  { %v2997_v0 = vmul.f32 %v3977_v38, %v2996_v24  ;;  %3988 = vrcp.f32 %v5707_v4  ;;  %v3987_v12 = vpop.eup %3986  ;;  %v5713_v46 = vadd.f32 1.0, %v3985_v51  ;;  %vm2984_vm9 = vweird.f32 %v5707_v4 }
0x1157   :  { %v3042_v30 = vmul.f32 %v3979_v58, %v3041_v26  ;;  %3990 = vrcp.f32 %v5709_v23  ;;  %v5720_v53 = vadd.f32 1.0, %v3987_v12  ;;  %v2988_v15 = vand.u32 2147483647, %v5707_v4 }
0x1158   :  { %v2998_v45 = vadd.f32 %v3977_v38, %v2997_v0  ;;  %3992 = vpow2.f32 %v3478_v31  ;;  %v3018_v25 = vand.u32 2147483647, %v5709_v23  ;;  %v3020_v56 = vand.u32 2147483648, %v5709_v23 }
0x1159   :  { %3994 = vpow2.f32 %v3471_v33  ;;  %v3043_v9 = vadd.f32 %v3979_v58, %v3042_v30  ;;  %vm2989_vm13 = vcmp.eq.f32.partialorder %v2988_v15, 8.507059e+37  ;;  %v3035_v1 = vand.u32 2147483648, %v5713_v46 }
0x115a   :  { %v3002_v63 = vsel %vm3001_vm2, %v3977_v38, %v2998_v45  ;;  %3996 = vrcp.f32 %v5713_v46  ;;  %v3021_v51 = vor.u32 1.1754944e-38, %v3020_v56  ;;  %v3033_v60 = vand.u32 2147483647, %v5713_v46 }
0x115b   :  { %v5715_v35 = vsel %vm3004_vm11, %v3006_v62, %v3002_v63  ;;  %v3047_v55 = vsel %vm3046_vm15, %v3979_v58, %v3043_v9  ;;  %3998 = vrcp.f32 %v5720_v53  ;;  %v2990_v58 = vand.u32 2147483648, %v5707_v4 }
0x115c   :  { %v5717_v50 = vpop.eup %3988  ;;  %v5741_v29 = vsel %vm3049_vm0, %v3051_v20, %v3047_v55  ;;  %4000 = vtanh.f32 %v5735_v32  ;;  %vm3014_vm11 = vweird.f32 %v5709_v23  ;;  %vm3019_vm15 = vcmp.eq.f32.partialorder %v3018_v25, 8.507059e+37 }
0x115d   :  { %v5726_v37 = vpop.eup %3990  ;;  %v2980_v61 = vmul.f32 %v5717_v50, %v5707_v4  ;;  %vm2985_vm14 = vweird.f32 %v5717_v50  ;;  %v2991_v33 = vor.u32 1.1754944e-38, %v2990_v58  ;;  %v3065_v54 = vand.u32 2147483648, %v5720_v53 }
0x115e   :  { %v3993_v34 = vpop.eup %3992  ;;  %v3010_v42 = vmul.f32 %v5726_v37, %v5709_v23  ;;  %vm3015_vm1 = vweird.f32 %v5726_v37  ;;  %vm2986_vm2 = vmor %vm2984_vm9, %vm2985_vm14  ;;  %vm3029_vm9 = vweird.f32 %v5713_v46  ;;  %v3036_v55 = vor.u32 1.1754944e-38, %v3035_v1 }
0x115f   :  { %v3995_v8 = vpop.eup %3994  ;;  %v5739_v22 = vadd.f32 1.0, %v3993_v34  ;;  %v2981_v17 = vsub.f32 1.0, %v2980_v61  ;;  %vm5781_vm12 = vmor %vm3014_vm11, %vm3015_vm1  ;;  %v3063_v34 = vand.u32 2147483647, %v5720_v53 }
0x1160   :  { %v5743_v41 = vadd.f32 1.0, %v3995_v8  ;;  %v5745_v59 = vpop.eup %3996  ;;  %v3011_v18 = vsub.f32 1.0, %v3010_v42 }
0x1161   :  { %v5749_v7 = vpop.eup %3998  ;;  %4002 = vrcp.f32 %v5739_v22  ;;  %v2982_v47 = vmul.f32 %v5717_v50, %v2981_v17  ;;  %v3025_v19 = vmul.f32 %v5745_v59, %v5713_v46  ;;  %vm3030_vm0 = vweird.f32 %v5745_v59 }
0x1162   :  { %4004 = vrcp.f32 %v5743_v41  ;;  %v3012_v10 = vmul.f32 %v5726_v37, %v3011_v18  ;;  %v3055_v38 = vmul.f32 %v5749_v7, %v5720_v53  ;;  %v4001_v43 = vpop.eup %4000  ;;  %vm3060_vm14 = vweird.f32 %v5749_v7  ;;  %vm3031_vm1 = vmor %vm3029_vm9, %vm3030_vm0 }
0x1163   :  { %v2983_v52 = vadd.f32 %v5717_v50, %v2982_v47  ;;  %v3026_v14 = vsub.f32 1.0, %v3025_v19  ;;  %v3066_v46 = vor.u32 1.1754944e-38, %v3065_v54  ;;  %vm3074_vm0 = vweird.f32 %v5739_v22 }
0x1164   :  { %v3013_v57 = vadd.f32 %v5726_v37, %v3012_v10  ;;  %v3056_v0 = vsub.f32 1.0, %v3055_v38  ;;  %v3080_v47 = vand.u32 2147483648, %v5739_v22  ;;  %v3078_v10 = vand.u32 2147483647, %v5739_v22 }
0x1165   :  { %v2987_v45 = vsel %vm2986_vm2, %v5717_v50, %v2983_v52  ;;  %v3027_v26 = vmul.f32 %v5745_v59, %v3026_v14  ;;  %vm3059_vm2 = vweird.f32 %v5720_v53  ;;  %v2975_v38 = vand.u32 2147483648, %v5743_v41 }
0x1166   :  { %v3017_v48 = vsel %vm5781_vm12, %v5726_v37, %v3013_v57  ;;  %v3057_v23 = vmul.f32 %v5749_v7, %v3056_v0  ;;  %v5789_v30 = vsel %vm2989_vm13, %v2991_v33, %v2987_v45  ;;  %vm3061_vm11 = vmor %vm3059_vm2, %vm3060_vm14  ;;  %vm3034_vm12 = vcmp.eq.f32.partialorder %v3033_v60, 8.507059e+37 }
0x1167   :  { %v5762_v24 = vpop.eup %4002  ;;  %v3028_v62 = vadd.f32 %v5745_v59, %v3027_v26  ;;  %v5794_v9 = vsel %vm3019_vm15, %v3021_v51, %v3017_v48  ;;  %vm3064_vm13 = vcmp.eq.f32.partialorder %v3063_v34, 8.507059e+37  ;;  %v3081_v14 = vor.u32 1.1754944e-38, %v3080_v47 }
0x1168   :  { %v5766_v11 = vpop.eup %4004  ;;  %v3070_v31 = vmul.f32 %v5762_v24, %v5739_v22  ;;  %v3058_v37 = vadd.f32 %v5749_v7, %v3057_v23  ;;  %vm3075_vm15 = vweird.f32 %v5762_v24  ;;  %v2976_v15 = vor.u32 1.1754944e-38, %v2975_v38 }
0x1169   :  { %v2965_v4 = vmul.f32 %v5766_v11, %v5743_v41  ;;  %v3032_v61 = vsel %vm3031_vm1, %v5745_v59, %v3028_v62  ;;  %vm2970_vm14 = vweird.f32 %v5766_v11  ;;  %vm3076_vm9 = vmor %vm3074_vm0, %vm3075_vm15  ;;  %vm2969_vm1 = vweird.f32 %v5743_v41 }
0x116a   :  { %v3062_v42 = vsel %vm3061_vm11, %v5749_v7, %v3058_v37  ;;  %vm2971_vm2 = vmor %vm2969_vm1, %vm2970_vm14  ;;  %vm3079_vm11 = vcmp.eq.f32.partialorder %v3078_v10, 8.507059e+37  ;;  %v3119_v23 = vmul.f32 %v3103_v28, %v5794_v9 }
0x116b   :  { %v2966_v50 = vsub.f32 1.0, %v2965_v4  ;;  %v5816_v59 = vsel %vm3064_vm13, %v3066_v46, %v3062_v42 }
0x116d   :  { %v2967_v20 = vmul.f32 %v5766_v11, %v2966_v50  ;;  %v3106_v50 = vrot.slane %v5657_v21, 7 }
0x116f   :  { %v2968_v7 = vadd.f32 %v5766_v11, %v2967_v20 }
0x1171   :  { %v2972_v58 = vsel %vm2971_vm2, %v5766_v11, %v2968_v7  ;;  %v3101_v7 = vrot.slane %v5646_v44, 7  ;;  %v3107_v44 = vrot.slane %v5638_v2, 7 }
0x119c   :  { %v3137_v16 = vpop.permute.xlu2 %3136 }
0x119d   :  { %v3158_v36 = vmul.f32 %v3137_v16, %v5715_v35  ;;  %v3071_v16 = vsub.f32 1.0, %v3070_v31  ;;  %v3102_v31 = vrot.slane %v5621_v13, 7 }
0x119f   :  { %3176 = vrot.lane.b32.xlu1 %v3158_v36, %s4164_s17  ;;  %v3072_v8 = vmul.f32 %v5762_v24, %v3071_v16  ;;  %v3118_v33 = vmul.f32 %v3102_v31, %v5715_v35 }
0x11a1   :  { %v3073_v53 = vadd.f32 %v5762_v24, %v3072_v8 }
0x11a3   :  { %v3077_v52 = vsel %vm3076_vm9, %v5762_v24, %v3073_v53  ;;  %v3480_v24 = vmul.f32 -1.442695, %v5735_v32  ;;  %v3105_v32 = vrot.slane %v5632_v3, 7 }
0x11a4   :  { %v3143_v40 = vpop.permute.xlu2 %3142  ;;  %v5831_v0 = vsel %vm3079_vm11, %v3081_v14, %v3077_v52  ;;  %v3104_v52 = vrot.slane %v5651_v6, 7 }
0x11a5   :  { %v3161_v49 = vmul.f32 %v3143_v40, %v5741_v29  ;;  %v5811_v40 = vsel %vm3034_vm12, %v3036_v55, %v3032_v61  ;;  %4006 = vpow2.f32 %v3480_v24  ;;  %v3121_v13 = vmul.f32 %v3105_v32, %v5741_v29 }
0x11a6   :  { %v3100_v55 = vrot.slane %v5617_v27, 7  ;;  %v3120_v14 = vmul.f32 %v3104_v52, %v5811_v40 }
0x11a7   :  { %3182 = vrot.lane.b32.xlu1 %v3161_v49, %s4164_s17 }
0x11ab   :  { %v4007_v11 = vpop.eup %4006 }
0x11ac   :  { %v3133_v57 = vpop.permute.xlu2 %3132  ;;  %v3315_v45 = vadd.f32 1.0, %v4007_v11 }
0x11ae   :  { %4008 = vrcp.f32 %v3315_v45  ;;  %vm3321_vm13 = vweird.f32 %v3315_v45  ;;  %v3327_v1 = vand.u32 2147483648, %v3315_v45  ;;  %v3325_v34 = vand.u32 2147483647, %v3315_v45 }
0x11af   :  { %3333 = vrot.lane.b32.xlu1 %v4001_v43, %s4163_s3  ;;  %v2973_v43 = vand.u32 2147483647, %v5743_v41 }
0x11b0   :  { %v3328_v3 = vor.u32 1.1754944e-38, %v3327_v1  ;;  %vm3326_vm14 = vcmp.eq.f32.partialorder %v3325_v34, 8.507059e+37 }
0x11b1   :  { %vm2974_vm12 = vcmp.eq.f32.partialorder %v2973_v43, 8.507059e+37 }
0x11b2   :  { %v5834_v56 = vsel %vm2974_vm12, %v2976_v15, %v2972_v58 }
0x11b3   :  { %v3135_v63 = vpop.permute.xlu1 %3134  ;;  %v3156_v41 = vmul.f32 %v3133_v57, %v5834_v56  ;;  %v3116_v46 = vmul.f32 %v3100_v55, %v5834_v56 }
0x11b4   :  { %v3157_v12 = vmul.f32 %v3135_v63, %v5789_v30  ;;  %v4009_v26 = vpop.eup %4008 }
0x11b5   :  { %v3139_v36 = vpop.permute.xlu0 %3138  ;;  %v3317_v4 = vmul.f32 %v4009_v26, %v3315_v45  ;;  %vm3322_vm15 = vweird.f32 %v4009_v26 }
0x11b6   :  { %v3159_v39 = vmul.f32 %v3139_v36, %v5794_v9  ;;  %3174 = vrot.lane.b32.xlu0 %v3157_v12, %s4164_s17  ;;  %v3122_v36 = vmul.f32 %v3106_v50, %v5816_v59  ;;  %vm3323_vm0 = vmor %vm3321_vm13, %vm3322_vm15 }
0x11b7   :  { %v3318_v12 = vsub.f32 1.0, %v3317_v4 }
0x11b8   :  { %3178 = vrot.lane.b32.xlu2 %v3159_v39, %s4164_s17 }
0x11b9   :  { %v3319_v16 = vmul.f32 %v4009_v26, %v3318_v12 }
0x11bb   :  { %v3141_v17 = vpop.permute.xlu1 %3140  ;;  %v3320_v54 = vadd.f32 %v4009_v26, %v3319_v16 }
0x11bc   :  { %v3160_v49 = vmul.f32 %v3141_v17, %v5811_v40 }
0x11bd   :  { %v3145_v18 = vpop.permute.xlu0 %3144  ;;  %v3324_v21 = vsel %vm3323_vm0, %v4009_v26, %v3320_v54 }
0x11be   :  { %v3162_v19 = vmul.f32 %v3145_v18, %v5816_v59  ;;  %3180 = vrot.lane.b32.xlu0 %v3160_v49, %s4164_s17  ;;  %v3329_v20 = vsel %vm3326_vm14, %v3328_v3, %v3324_v21 }
0x11c0   :  { %3184 = vrot.lane.b32.xlu2 %v3162_v19, %s4164_s17  ;;  %v3117_v19 = vmul.f32 %v3101_v7, %v5789_v30 }
0x11c3   :  { %v3147_v22 = vpop.permute.xlu1 %3146 }
0x11c4   :  { %v3163_v25 = vmul.f32 %v3147_v22, %v5831_v0  ;;  %v3123_v22 = vmul.f32 %v3107_v44, %v5831_v0 }
0x11c6   :  { %3186 = vrot.lane.b32.xlu0 %v3163_v25, %s4164_s17 }
0x11c8   :  { %3172 = vrot.lane.b32.xlu2 %v3156_v41, %s4164_s17 }
0x1211   :  { %v3177_v48 = vpop.permute.xlu1 %3176 }
0x1212   :  { %v3198_v51 = vadd.f32 %v3177_v48, %v3118_v33  ;;  %v3179_v63 = vpop.permute.xlu2 %3178 }
0x1213   :  { %v3199_v62 = vadd.f32 %v3179_v63, %v3119_v23 }
0x1214   :  { %4010 = vtanh.f32 %v3198_v51 }
0x1215   :  { %4012 = vtanh.f32 %v3199_v62 }
0x1219   :  { %v3183_v5 = vpop.permute.xlu1 %3182 }
0x121a   :  { %v4011_v39 = vpop.eup %4010  ;;  %v3201_v37 = vadd.f32 %v3183_v5, %v3121_v13  ;;  %v3185_v60 = vpop.permute.xlu2 %3184 }
0x121b   :  { %v4013_v61 = vpop.eup %4012  ;;  %v3202_v8 = vadd.f32 %v3185_v60, %v3122_v36  ;;  %3224 = vrot.lane.b32.xlu1 %v4011_v39, %s4165_s18 }
0x121c   :  { %4014 = vtanh.f32 %v3201_v37  ;;  %3226 = vrot.lane.b32.xlu2 %v4013_v61, %s4165_s18 }
0x121d   :  { %4016 = vtanh.f32 %v3202_v8 }
0x1221   :  { %v3334_v42 = vpop.permute.xlu1 %3333 }
0x1222   :  { %v4015_v17 = vpop.eup %4014  ;;  %v3336_v49 = vmul.f32 %v3334_v42, %v3329_v20  ;;  %v3173_v53 = vpop.permute.xlu2 %3172 }
0x1223   :  { %v4017_v18 = vpop.eup %4016  ;;  %v3196_v47 = vadd.f32 %v3173_v53, %v3116_v46  ;;  %3230 = vrot.lane.b32.xlu1 %v4015_v17, %s4165_s18 }
0x1224   :  { %4018 = vtanh.f32 %v3336_v49  ;;  %3232 = vrot.lane.b32.xlu2 %v4017_v18, %s4165_s18 }
0x1225   :  { %4020 = vtanh.f32 %v3196_v47 }
0x1228   :  { %v3175_v27 = vpop.permute.xlu0 %3174 }
0x1229   :  { %v3197_v10 = vadd.f32 %v3175_v27, %v3117_v19 }
0x122a   :  { %v4019_v38 = vpop.eup %4018 }
0x122b   :  { %v4021_v43 = vpop.eup %4020  ;;  %4022 = vtanh.f32 %v3197_v10  ;;  %3339 = vrot.lane.b32.xlu1 %v4019_v38, %s4167_s5 }
0x122c   :  { %3220 = vrot.lane.b32.xlu2 %v4021_v43, %s4165_s18 }
0x1230   :  { %v3181_v58 = vpop.permute.xlu0 %3180 }
0x1231   :  { %v4023_v57 = vpop.eup %4022  ;;  %v3200_v15 = vadd.f32 %v3181_v58, %v3120_v14 }
0x1232   :  { %3222 = vrot.lane.b32.xlu0 %v4023_v57, %s4165_s18 }
0x1233   :  { %4024 = vtanh.f32 %v3200_v15 }
0x1238   :  { %v3187_v25 = vpop.permute.xlu0 %3186 }
0x1239   :  { %v4025_v41 = vpop.eup %4024  ;;  %v3203_v24 = vadd.f32 %v3187_v25, %v3123_v22 }
0x123a   :  { %3228 = vrot.lane.b32.xlu0 %v4025_v41, %s4165_s18 }
0x123b   :  { %4026 = vtanh.f32 %v3203_v24 }
0x1241   :  { %v4027_v11 = vpop.eup %4026 }
0x1242   :  { %3234 = vrot.lane.b32.xlu0 %v4027_v11, %s4165_s18 }
0x1276   :  { %v3227_v6 = vpop.permute.xlu2 %3226 }
0x1277   :  { %v3247_v62 = vmul.f32 %v3227_v6, %v5794_v9 }
0x1279   :  { %v3354_v13 = vrot.slane %v3247_v62, 5 }
0x127e   :  { %v3233_v45 = vpop.permute.xlu2 %3232 }
0x127f   :  { %v3250_v39 = vmul.f32 %v3233_v45, %v5816_v59 }
0x1281   :  { %v3360_v54 = vrot.slane %v3250_v39, 2 }
0x1286   :  { %v3221_v26 = vpop.permute.xlu2 %3220 }
0x1287   :  { %v3244_v31 = vmul.f32 %v3221_v26, %v5834_v56 }
0x1289   :  { %3364 = vrot.lane.b32.xlu0 %v3244_v31, %s4166_s19 }
0x128d   :  { %v3225_v4 = vpop.permute.xlu1 %3224 }
0x128e   :  { %v3246_v63 = vmul.f32 %v3225_v4, %v5715_v35 }
0x1290   :  { %v3352_v32 = vrot.slane %v3246_v63, 6 }
0x1295   :  { %v3231_v2 = vpop.permute.xlu1 %3230 }
0x1296   :  { %v3249_v5 = vmul.f32 %v3231_v2, %v5741_v29 }
0x1298   :  { %v3358_v35 = vrot.slane %v3249_v5, 3 }
0x129d   :  { %v3340_v28 = vpop.permute.xlu1 %3339 }
0x129e   :  { %v3342_v33 = vmul.f32 %v3340_v28, %v3329_v20 }
0x12a0   :  { %v3371_v48 = vrot.slane %v3342_v33, 1 }
0x12a2   :  { %3372 = vrot.lane.b32.xlu2 %v3371_v48, %s4163_s3 }
0x12a4   :  { %v3223_v23 = vpop.permute.xlu0 %3222 }
0x12a5   :  { %v3245_v51 = vmul.f32 %v3223_v23, %v5789_v30 }
0x12a7   :  { %v3351_v12 = vrot.slane %v3245_v51, 7 }
0x12a9   :  { %v3353_v50 = vsel %vm524_vm3, %v3352_v32, %v3351_v12  ;;  %vm3377_vm3 = vcmask 261127  }
0x12aa   :  { %v3355_v1 = vsel %vm527_vm4, %v3354_v13, %v3353_v50  ;;  %vm3379_vm4 = vcmask 260096  }
0x12ac   :  { %v3229_v16 = vpop.permute.xlu0 %3228 }
0x12ad   :  { %v3248_v56 = vmul.f32 %v3229_v16, %v5811_v40 }
0x12af   :  { %v3356_v36 = vrot.slane %v3248_v56, 4 }
0x12b1   :  { %v3357_v30 = vsel %vm530_vm5, %v3356_v36, %v3355_v1 }
0x12b2   :  { %v3359_v9 = vsel %vm533_vm6, %v3358_v35, %v3357_v30 }
0x12b3   :  { %v3361_v34 = vsel %vm536_vm7, %v3360_v54, %v3359_v9 }
0x12b4   :  { %v3235_v37 = vpop.permute.xlu0 %3234 }
0x12b5   :  { %v3251_v60 = vmul.f32 %v3235_v37, %v5831_v0 }
0x12b7   :  { %v3362_v40 = vrot.slane %v3251_v60, 1 }
0x12b9   :  { %v3363_v61 = vsel %vm539_vm8, %v3362_v40, %v3361_v34 }
0x12ba   :  { %3366 = vrot.lane.b32.xlu1 %v3363_v61, %s4166_s19 }
0x12fb   :  { %v3365_v29 = vpop.permute.xlu0 %3364 }
0x12fc   :  { %v3373_v8 = vpop.permute.xlu2 %3372 }
0x12fd   :  { %v3375_v59 = vsel %vm171_vm10, %v3365_v29, %v3373_v8 }
0x12fe   :  { %3378 = vst.msk [vmem:[#allocation10 - $0x7] sm:$0x80] %vm3377_vm3, %v3375_v59 }
0x132c   :  { %v3367_v0 = vpop.permute.xlu1 %3366 }
0x132d   :  { %v3376_v3 = vsel %vm171_vm10, %v3367_v0, %v3373_v8 }
0x132e   :  { %3380 = vst.msk [vmem:[#allocation10 + $0x1] sm:$0x7f] %vm3379_vm4, %v3376_v3 }
0x132f   :  { %3391 = dma.vmem_to_hbm [thread:$0]  %s3387_s23, 128, %s3389_s26, [#allocation4]  }
0x1330   :  { %4154 = dma.done.wait [#allocation4], 128  }
0x1331   :  { %4155 = vsyncadd [#allocation4], 4294967168 }
0x1332   :  { %3396 = vsyncpa [#allocation3], 1 }
0x1333   :  { %3397 = vsyncpa [#allocation6], 1 }
0x1334   :  { %3398 = vsyncpa [#allocation9], 1 }
0x1335   :  { %3399 = vsyncpa [#allocation4], 1 }

</bundles_post_ra>
